<compile_context>
chip_gen: v7x
topology: tpu7x:2x2x1
jax: 0.10.0
libtpu: 0.0.40
codegen_flags: <defaults>
</compile_context>

<pallas_src>
import functools

import numpy as np
import jax
import jax.numpy as jnp
from jax.experimental import pallas as pl
from jax.experimental.pallas import tpu as pltpu


# -----------------------------------------------------------------------------
# sin-cos positional embedding (numpy, same as the PyTorch reference)
# -----------------------------------------------------------------------------
def get_1d_sincos_pos_embed_from_grid(embed_dim, pos):
    assert embed_dim % 2 == 0
    omega = np.arange(embed_dim // 2, dtype=np.float32)
    omega /= embed_dim / 2.0
    omega = 1.0 / 10000 ** omega
    pos = pos.reshape(-1)
    out = np.einsum('m,d->md', pos, omega)
    return np.concatenate([np.sin(out), np.cos(out)], axis=1)


def get_2d_sincos_pos_embed_from_grid(embed_dim, grid):
    assert embed_dim % 2 == 0
    emb_h = get_1d_sincos_pos_embed_from_grid(embed_dim // 2, grid[0])
    emb_w = get_1d_sincos_pos_embed_from_grid(embed_dim // 2, grid[1])
    return np.concatenate([emb_h, emb_w], axis=1)


def get_2d_sincos_pos_embed(embed_dim, grid_size=(), cls_token=False):
    grid_h = np.arange(grid_size[0], dtype=np.float32)
    grid_w = np.arange(grid_size[1], dtype=np.float32)
    grid = np.meshgrid(grid_w, grid_h)
    grid = np.stack(grid, axis=0)
    grid = grid.reshape([2, 1, grid_size[0], grid_size[1]])
    pos_embed = get_2d_sincos_pos_embed_from_grid(embed_dim, grid)
    if cls_token:
        pos_embed = np.concatenate([np.zeros([1, embed_dim]), pos_embed], axis=0)
    return pos_embed


LN_EPS = 1e-5
IMG_DIM = 2048  # hard-coded in fMRI_Autoencoder.__init__


# -----------------------------------------------------------------------------
# in-kernel helper
# -----------------------------------------------------------------------------
def _ln(x, g, b, eps=LN_EPS):
    """LayerNorm over the last axis; g/b are (1, D)."""
    mu = jnp.mean(x, axis=-1, keepdims=True)
    xc = x - mu
    var = jnp.mean(xc * xc, axis=-1, keepdims=True)
    return xc * jax.lax.rsqrt(var + eps) * g + b


# -----------------------------------------------------------------------------
# kernel 1: patch-embed (conv-as-matmul) + bias + pos-embed + cls-token concat
# -----------------------------------------------------------------------------
def _patch_embed_kernel(xp_ref, w_ref, b_ref, pos_ref, cls_ref, o_ref):
    tok = jnp.dot(xp_ref[0], w_ref[...],
                  preferred_element_type=jnp.float32) + b_ref[...]
    o_ref[0, 0:1, :] = cls_ref[0] + pos_ref[0, 0:1, :]
    o_ref[0, 1:, :] = tok + pos_ref[0, 1:, :]


def patch_embed(xp, w, b, pos, cls):
    B, L, K = xp.shape
    D = w.shape[1]
    T = pos.shape[1]
    return pl.pallas_call(
        _patch_embed_kernel,
        out_shape=jax.ShapeDtypeStruct((B, T, D), jnp.float32),
        grid=(B,),
        in_specs=[pl.BlockSpec((1, L, K), lambda b_: (b_, 0, 0)),
                  pl.BlockSpec((K, D), lambda b_: (0, 0)),
                  pl.BlockSpec((1, D), lambda b_: (0, 0)),
                  pl.BlockSpec((1, T, D), lambda b_: (0, 0, 0)),
                  pl.BlockSpec((1, 1, D), lambda b_: (0, 0, 0))],
        out_specs=pl.BlockSpec((1, T, D), lambda b_: (b_, 0, 0)),
        compiler_params=pltpu.CompilerParams(dimension_semantics=("parallel",)),
    )(xp, w, b, pos, cls)


# -----------------------------------------------------------------------------
# kernel 2: fused transformer stack (all layers of encoder or decoder)
#   grid = (batch, depth); residual stream resident in VMEM scratch across depth.
# -----------------------------------------------------------------------------
def _block_stack_kernel(x_ref, ln1g_ref, ln1b_ref, qkvw_ref, qkvb_ref,
                        pw_ref, pb_ref, ln2g_ref, ln2b_ref,
                        fc1w_ref, fc1b_ref, fc2w_ref, fc2b_ref,
                        o_ref, x_scr, *, num_heads, head_dim):
    layer = pl.program_id(1)

    @pl.when(layer == 0)
    def _():
        x_scr[...] = x_ref[0]

    x = x_scr[...]                                      # (T, D) residual stream

    # ---- attention: x += proj_b + sum_h softmax(q_h k_h^T) v_h @ W_proj[h] ----
    h = _ln(x, ln1g_ref[0], ln1b_ref[0])
    scale = head_dim ** -0.5
    attn = jnp.zeros_like(x)
    for hh in range(num_heads):
        q = jnp.dot(h, qkvw_ref[0, hh],
                    preferred_element_type=jnp.float32) + qkvb_ref[0, hh]
        k = jnp.dot(h, qkvw_ref[0, num_heads + hh],
                    preferred_element_type=jnp.float32) + qkvb_ref[0, num_heads + hh]
        v = jnp.dot(h, qkvw_ref[0, 2 * num_heads + hh],
                    preferred_element_type=jnp.float32) + qkvb_ref[0, 2 * num_heads + hh]
        s = jax.lax.dot_general(q, k, (((1,), (1,)), ((), ())),
                                preferred_element_type=jnp.float32) * scale
        s = s - jnp.max(s, axis=-1, keepdims=True)
        p = jnp.exp(s)
        p = p * pl.reciprocal(jnp.sum(p, axis=-1, keepdims=True), approx=True)
        oh = jnp.dot(p, v, preferred_element_type=jnp.float32)          # (T, hd)
        # head-concat folded into the output projection
        attn = attn + jnp.dot(oh, pw_ref[0, hh],
                              preferred_element_type=jnp.float32)
    x = x + attn + pb_ref[0]

    # ---- MLP: x += fc2(gelu(fc1(LN2(x)))) -------------------------------------
    h2 = _ln(x, ln2g_ref[0], ln2b_ref[0])
    m = jnp.dot(h2, fc1w_ref[0], preferred_element_type=jnp.float32) + fc1b_ref[0]
    # TODO(synk): PyTorch nn.GELU() default is exact erf-GELU; tanh approximation
    # is used here for guaranteed Mosaic lowering (~1e-3 level difference).
    m = jax.nn.gelu(m, approximate=True)
    m = jnp.dot(m, fc2w_ref[0], preferred_element_type=jnp.float32) + fc2b_ref[0]
    x = x + m

    x_scr[...] = x

    @pl.when(layer == pl.num_programs(1) - 1)
    def _():
        o_ref[0] = x


def transformer_stack(x, sp, num_heads):
    B, T, D = x.shape
    depth = sp['fc1_w'].shape[0]
    hd = D // num_heads
    H4 = sp['fc1_w'].shape[-1]
    kern = functools.partial(_block_stack_kernel, num_heads=num_heads, head_dim=hd)
    wmap3 = lambda b, l: (l, 0, 0)
    wmap4 = lambda b, l: (l, 0, 0, 0)
    return pl.pallas_call(
        kern,
        out_shape=jax.ShapeDtypeStruct((B, T, D), jnp.float32),
        grid=(B, depth),
        in_specs=[
            pl.BlockSpec((1, T, D), lambda b, l: (b, 0, 0)),             # x tokens
            pl.BlockSpec((1, 1, D), wmap3),                              # ln1_g
            pl.BlockSpec((1, 1, D), wmap3),                              # ln1_b
            pl.BlockSpec((1, 3 * num_heads, D, hd), wmap4),              # qkv_w per head
            pl.BlockSpec((1, 3 * num_heads, 1, hd), wmap4),              # qkv_b per head
            pl.BlockSpec((1, num_heads, hd, D), wmap4),                  # proj_w per head
            pl.BlockSpec((1, 1, D), wmap3),                              # proj_b
            pl.BlockSpec((1, 1, D), wmap3),                              # ln2_g
            pl.BlockSpec((1, 1, D), wmap3),                              # ln2_b
            pl.BlockSpec((1, D, H4), wmap3),                             # fc1_w
            pl.BlockSpec((1, 1, H4), wmap3),                             # fc1_b
            pl.BlockSpec((1, H4, D), wmap3),                             # fc2_w
            pl.BlockSpec((1, 1, D), wmap3),                              # fc2_b
        ],
        out_specs=pl.BlockSpec((1, T, D), lambda b, l: (b, 0, 0)),
        scratch_shapes=[pltpu.VMEM((T, D), jnp.float32)],
        compiler_params=pltpu.CompilerParams(
            dimension_semantics=("parallel", "arbitrary")),
    )(x, sp['ln1_g'], sp['ln1_b'], sp['qkv_w'], sp['qkv_b'],
      sp['proj_w'], sp['proj_b'], sp['ln2_g'], sp['ln2_b'],
      sp['fc1_w'], sp['fc1_b'], sp['fc2_w'], sp['fc2_b'])


# -----------------------------------------------------------------------------
# kernel 3: encoder head — norm(cls) -> pred -> decoder_embed -> decoder tokens
# -----------------------------------------------------------------------------
def _enc_head_kernel(xc_ref, ng_ref, nb_ref, pw_ref, pb_ref, dw_ref, db_ref,
                     mt_ref, dpos_ref, o_ref):
    h = _ln(xc_ref[0], ng_ref[...], nb_ref[...])                        # (1, D)
    z = jnp.dot(h, pw_ref[...], preferred_element_type=jnp.float32) + pb_ref[...]
    y = jnp.dot(z, dw_ref[...], preferred_element_type=jnp.float32) + db_ref[...]
    o_ref[0, 0:1, :] = y + dpos_ref[0, 0:1, :]
    o_ref[0, 1:, :] = mt_ref[0] + dpos_ref[0, 1:, :]


def encoder_head(x_cls, prep):
    B, D = x_cls.shape
    IMG = prep['pred_w'].shape[1]
    Dd = prep['dec_embed_w'].shape[1]
    T = prep['dec_pos_embed'].shape[1]
    xc = x_cls.reshape(B, 1, D)
    return pl.pallas_call(
        _enc_head_kernel,
        out_shape=jax.ShapeDtypeStruct((B, T, Dd), jnp.float32),
        grid=(B,),
        in_specs=[pl.BlockSpec((1, 1, D), lambda b_: (b_, 0, 0)),
                  pl.BlockSpec((1, D), lambda b_: (0, 0)),
                  pl.BlockSpec((1, D), lambda b_: (0, 0)),
                  pl.BlockSpec((D, IMG), lambda b_: (0, 0)),
                  pl.BlockSpec((1, IMG), lambda b_: (0, 0)),
                  pl.BlockSpec((IMG, Dd), lambda b_: (0, 0)),
                  pl.BlockSpec((1, Dd), lambda b_: (0, 0)),
                  pl.BlockSpec((1, 1, Dd), lambda b_: (0, 0, 0)),
                  pl.BlockSpec((1, T, Dd), lambda b_: (0, 0, 0))],
        out_specs=pl.BlockSpec((1, T, Dd), lambda b_: (b_, 0, 0)),
        compiler_params=pltpu.CompilerParams(dimension_semantics=("parallel",)),
    )(xc, prep['norm_g'], prep['norm_b'], prep['pred_w'], prep['pred_b'],
      prep['dec_embed_w'], prep['dec_embed_b'],
      prep['mask_token'], prep['dec_pos_embed'])


# -----------------------------------------------------------------------------
# kernel 4: decoder head — decoder norm + decoder_pred + per-sample MSE loss
# -----------------------------------------------------------------------------
def _dec_head_kernel(zz_ref, ng_ref, nb_ref, w_ref, b_ref, tgt_ref,
                     rec_ref, loss_ref):
    z = zz_ref[0]                                                       # (T, Dd)
    h = _ln(z[1:, :], ng_ref[...], nb_ref[...])                         # drop cls row
    rec = jnp.dot(h, w_ref[...], preferred_element_type=jnp.float32) + b_ref[...]
    rec_ref[0] = rec
    d = rec - tgt_ref[0]
    L, P = rec.shape
    row = jnp.sum(d * d, axis=-1, keepdims=True)                        # (L, 1)
    tot = jnp.sum(row, axis=0, keepdims=True)                           # (1, 1)
    loss_ref[0] = jnp.broadcast_to(tot * (1.0 / (L * P)), (1, 128))


def decoder_head(zz, prep, tgt):
    B, T, Dd = zz.shape
    L = T - 1
    P = prep['dec_pred_w'].shape[1]
    rec, loss = pl.pallas_call(
        _dec_head_kernel,
        out_shape=(jax.ShapeDtypeStruct((B, L, P), jnp.float32),
                   jax.ShapeDtypeStruct((B, 1, 128), jnp.float32)),
        grid=(B,),
        in_specs=[pl.BlockSpec((1, T, Dd), lambda b_: (b_, 0, 0)),
                  pl.BlockSpec((1, Dd), lambda b_: (0, 0)),
                  pl.BlockSpec((1, Dd), lambda b_: (0, 0)),
                  pl.BlockSpec((Dd, P), lambda b_: (0, 0)),
                  pl.BlockSpec((1, P), lambda b_: (0, 0)),
                  pl.BlockSpec((1, L, P), lambda b_: (b_, 0, 0))],
        out_specs=(pl.BlockSpec((1, L, P), lambda b_: (b_, 0, 0)),
                   pl.BlockSpec((1, 1, 128), lambda b_: (b_, 0, 0))),
        compiler_params=pltpu.CompilerParams(dimension_semantics=("parallel",)),
    )(zz, prep['dec_norm_g'], prep['dec_norm_b'],
      prep['dec_pred_w'], prep['dec_pred_b'], tgt)
    return rec, loss[:, 0, 0]


# -----------------------------------------------------------------------------
# Model: parameters, host-side prep, forward
# -----------------------------------------------------------------------------
def init_params(key, cfg):
    p = cfg['patch_size']
    C = cfg['in_chans']
    D = cfg['embed_dim']
    Dd = cfg['decoder_embed_dim']
    H, W = cfg['image_size']
    nh, nw = H // p, W // p
    L = nh * nw

    keys = iter(jax.random.split(key, 64))

    def w(shape, scale=0.02):
        return (scale * jax.random.normal(next(keys), shape)).astype(jnp.float32)

    def block(dim):
        return dict(
            ln1_g=jnp.ones((dim,), jnp.float32), ln1_b=jnp.zeros((dim,), jnp.float32),
            qkv_w=w((dim, 3 * dim)), qkv_b=jnp.zeros((3 * dim,), jnp.float32),
            proj_w=w((dim, dim)), proj_b=jnp.zeros((dim,), jnp.float32),
            ln2_g=jnp.ones((dim,), jnp.float32), ln2_b=jnp.zeros((dim,), jnp.float32),
            fc1_w=w((dim, 4 * dim)), fc1_b=jnp.zeros((4 * dim,), jnp.float32),
            fc2_w=w((4 * dim, dim)), fc2_b=jnp.zeros((dim,), jnp.float32),
        )

    pos = get_2d_sincos_pos_embed(D, (nh, nw), cls_token=True)   # (L+1, D)

    return dict(
        # patch-embed conv folded to matmul: weight (C*p*p, D), bias (D,)
        patch_w=w((C * p * p, D)), patch_b=w((D,)),
        cls_token=w((1, 1, D)),
        pos_embed=jnp.asarray(pos, jnp.float32)[None],            # (1, L+1, D)
        enc_blocks=[block(D) for _ in range(cfg['encoder_depth'])],
        norm_g=jnp.ones((D,), jnp.float32), norm_b=jnp.zeros((D,), jnp.float32),
        pred_w=w((D, IMG_DIM)), pred_b=jnp.zeros((IMG_DIM,), jnp.float32),
        dec_embed_w=w((IMG_DIM, Dd)), dec_embed_b=jnp.zeros((Dd,), jnp.float32),
        mask_token=jnp.zeros((1, 1, Dd), jnp.float32),            # zeros in reference init
        dec_pos_embed=jnp.zeros((1, L + 1, Dd), jnp.float32),     # not sincos-init in reference
        dec_blocks=[block(Dd) for _ in range(cfg['decoder_depth'])],
        dec_norm_g=jnp.ones((Dd,), jnp.float32), dec_norm_b=jnp.zeros((Dd,), jnp.float32),
        dec_pred_w=w((Dd, p * p * C)), dec_pred_b=jnp.zeros((p * p * C,), jnp.float32),
    )


def prepare_params(params, cfg):
    """Stack per-layer weights along a depth axis and split QKV/proj per head
    (host-side, one-time) so the stack kernel streams them via BlockSpec."""
    nheads = cfg['num_heads']

    def stack(blocks, dim):
        hd = dim // nheads

        def gather(f):
            return jnp.stack([f(b) for b in blocks], axis=0)

        return dict(
            ln1_g=gather(lambda b: b['ln1_g'].reshape(1, dim)),
            ln1_b=gather(lambda b: b['ln1_b'].reshape(1, dim)),
            # qkv_w columns ordered [q|k|v], head-major within each -> (3*heads, dim, hd)
            qkv_w=gather(lambda b: b['qkv_w'].reshape(dim, 3, nheads, hd)
                                              .transpose(1, 2, 0, 3)
                                              .reshape(3 * nheads, dim, hd)),
            qkv_b=gather(lambda b: b['qkv_b'].reshape(3 * nheads, 1, hd)),
            # proj_w rows ordered head-major -> (heads, hd, dim)
            proj_w=gather(lambda b: b['proj_w'].reshape(nheads, hd, dim)),
            proj_b=gather(lambda b: b['proj_b'].reshape(1, dim)),
            ln2_g=gather(lambda b: b['ln2_g'].reshape(1, dim)),
            ln2_b=gather(lambda b: b['ln2_b'].reshape(1, dim)),
            fc1_w=gather(lambda b: b['fc1_w']),
            fc1_b=gather(lambda b: b['fc1_b'].reshape(1, -1)),
            fc2_w=gather(lambda b: b['fc2_w']),
            fc2_b=gather(lambda b: b['fc2_b'].reshape(1, dim)),
        )

    return dict(
        patch_w=params['patch_w'],
        patch_b=params['patch_b'].reshape(1, -1),
        cls_token=params['cls_token'],
        pos_embed=params['pos_embed'],
        enc=stack(params['enc_blocks'], cfg['embed_dim']),
        norm_g=params['norm_g'].reshape(1, -1),
        norm_b=params['norm_b'].reshape(1, -1),
        pred_w=params['pred_w'],
        pred_b=params['pred_b'].reshape(1, -1),
        dec_embed_w=params['dec_embed_w'],
        dec_embed_b=params['dec_embed_b'].reshape(1, -1),
        mask_token=params['mask_token'],
        dec_pos_embed=params['dec_pos_embed'],
        dec=stack(params['dec_blocks'], cfg['decoder_embed_dim']),
        dec_norm_g=params['dec_norm_g'].reshape(1, -1),
        dec_norm_b=params['dec_norm_b'].reshape(1, -1),
        dec_pred_w=params['dec_pred_w'],
        dec_pred_b=params['dec_pred_b'].reshape(1, -1),
    )


def forward(prep, image, cfg):
    """Neural_fMRI2fMRI.forward(image) -> (rec, loss)."""
    p = cfg['patch_size']
    C = cfg['in_chans']
    nheads = cfg['num_heads']
    B, Ci, H, W = image.shape
    assert Ci == C
    nh, nw = H // p, W // p
    L = nh * nw

    # Conv2d(k=p, stride=p) == matmul on patches flattened in (C, ph, pw) order.
    xp = (image.reshape(B, C, nh, p, nw, p)
               .transpose(0, 2, 4, 1, 3, 5)
               .reshape(B, L, C * p * p))

    tokens = patch_embed(xp, prep['patch_w'], prep['patch_b'],
                         prep['pos_embed'], prep['cls_token'])      # (B, T, D)

    x = transformer_stack(tokens, prep['enc'], nheads)              # encoder blocks

    zz0 = encoder_head(x[:, 0, :], prep)                            # (B, T, Dd) decoder tokens

    zz = transformer_stack(zz0, prep['dec'], nheads)                # decoder blocks

    # loss target in token space: einsum('nchpwq->nhwpqc') patchify of the input.
    # MSE over these tokens equals MSE(unpatchify(rec), image): unpatchify is a
    # permutation and the per-sample mean is permutation invariant.
    tgt = (image.reshape(B, C, nh, p, nw, p)
                .transpose(0, 2, 4, 3, 5, 1)
                .reshape(B, L, p * p * C))

    rec, loss = decoder_head(zz, prep, tgt)                         # (B,L,p*p*C), (B,)
    return rec, loss


# -----------------------------------------------------------------------------
if __name__ == "__main__":
    cfg = dict(
        patch_size=4,
        image_size=(16, 16),
        embed_dim=32,
        decoder_embed_dim=32,
        num_heads=4,
        drop_rate=0.0,
        in_chans=1,
        encoder_depth=2,
        decoder_depth=2,
    )
    key = jax.random.PRNGKey(0)
    pkey, xkey = jax.random.split(key)
    params = init_params(pkey, cfg)
    prep = prepare_params(params, cfg)

    image = jax.random.normal(
        xkey, (2, cfg['in_chans'], cfg['image_size'][0], cfg['image_size'][1]),
        dtype=jnp.float32)

    fwd = jax.jit(functools.partial(forward, cfg=cfg))
    rec, loss = fwd(prep, image)
    (rec, loss) = jax.block_until_ready((rec, loss))

    L = (cfg['image_size'][0] // cfg['patch_size']) * (cfg['image_size'][1] // cfg['patch_size'])
    assert rec.shape == (2, L, cfg['patch_size'] ** 2 * cfg['in_chans'])
    assert loss.shape == (2,)
    assert bool(jnp.all(jnp.isfinite(rec))) and bool(jnp.all(jnp.isfinite(loss)))
    print("KERNEL_OK")
</pallas_src>

<mosaic_0001>
module attributes {stable_mosaic.version = 11 : i64} {
  func.func @_patch_embed_kernel(%arg0: i32, %arg1: memref<1x16x16xf32, #tpu.memory_space<vmem>>, %arg2: memref<16x32xf32, #tpu.memory_space<vmem>>, %arg3: memref<1x32xf32, #tpu.memory_space<vmem>>, %arg4: memref<1x17x32xf32, #tpu.memory_space<vmem>>, %arg5: memref<1x1x32xf32, #tpu.memory_space<vmem>>, %arg6: memref<1x17x32xf32, #tpu.memory_space<vmem>>) attributes {dimension_semantics = [#tpu.dimension_semantics<parallel>], iteration_bounds = array<i64: 2>, scalar_prefetch = 0 : i64, scratch_operands = 0 : i64, tpu.core_type = #tpu.core_type<tc>, window_params = [{transform_indices = @transform_0, window_bounds = array<i64: 1, 16, 16>}, {pipeline_mode = #tpu.pipeline_mode<synchronous>, transform_indices = @transform_1, window_bounds = array<i64: 16, 32>}, {pipeline_mode = #tpu.pipeline_mode<synchronous>, transform_indices = @transform_2, window_bounds = array<i64: 1, 32>}, {pipeline_mode = #tpu.pipeline_mode<synchronous>, transform_indices = @transform_3, window_bounds = array<i64: 1, 17, 32>}, {pipeline_mode = #tpu.pipeline_mode<synchronous>, transform_indices = @transform_4, window_bounds = array<i64: 1, 1, 32>}, {transform_indices = @transform_5, window_bounds = array<i64: 1, 17, 32>}]} {
    %c0 = arith.constant 0 : index
    %c0_0 = arith.constant 0 : index
    %c0_1 = arith.constant 0 : index
    %0 = vector.load %arg1[%c0, %c0_0, %c0_1] : memref<1x16x16xf32, #tpu.memory_space<vmem>>, vector<1x16x16xf32>
    %1 = vector.shape_cast %0 : vector<1x16x16xf32> to vector<16x16xf32>
    %c0_2 = arith.constant 0 : index
    %c0_3 = arith.constant 0 : index
    %2 = vector.load %arg2[%c0_2, %c0_3] : memref<16x32xf32, #tpu.memory_space<vmem>>, vector<16x32xf32>
    %cst = arith.constant dense<0.000000e+00> : vector<16x32xf32>
    %3 = tpu.matmul %1, %2, %cst {dimension_numbers = #tpu.dot_dimension_numbers<[1], [0], [0], [1], [0, 0, 1, 1], [], []>} : vector<16x16xf32>, vector<16x32xf32>, vector<16x32xf32> -> vector<16x32xf32>
    %c0_4 = arith.constant 0 : index
    %c0_5 = arith.constant 0 : index
    %4 = vector.load %arg3[%c0_4, %c0_5] : memref<1x32xf32, #tpu.memory_space<vmem>>, vector<1x32xf32>
    %5 = vector.broadcast %4 : vector<1x32xf32> to vector<16x32xf32>
    %6 = arith.addf %3, %5 : vector<16x32xf32>
    %c0_6 = arith.constant 0 : index
    %c0_7 = arith.constant 0 : index
    %c0_8 = arith.constant 0 : index
    %7 = vector.load %arg5[%c0_6, %c0_7, %c0_8] : memref<1x1x32xf32, #tpu.memory_space<vmem>>, vector<1x1x32xf32>
    %8 = vector.shape_cast %7 : vector<1x1x32xf32> to vector<1x32xf32>
    %c0_9 = arith.constant 0 : index
    %c0_10 = arith.constant 0 : index
    %c0_11 = arith.constant 0 : index
    %9 = vector.load %arg4[%c0_9, %c0_10, %c0_11] : memref<1x17x32xf32, #tpu.memory_space<vmem>>, vector<1x1x32xf32>
    %10 = vector.shape_cast %9 : vector<1x1x32xf32> to vector<1x32xf32>
    %11 = arith.addf %8, %10 : vector<1x32xf32>
    %c0_12 = arith.constant 0 : index
    %c0_13 = arith.constant 0 : index
    %c0_14 = arith.constant 0 : index
    %12 = vector.load %arg6[%c0_12, %c0_13, %c0_14] : memref<1x17x32xf32, #tpu.memory_space<vmem>>, vector<1x1x32xf32>
    %13 = vector.shape_cast %12 : vector<1x1x32xf32> to vector<1x32xf32>
    %14 = vector.shape_cast %11 : vector<1x32xf32> to vector<1x1x32xf32>
    tpu.vector_store %arg6[%c0_12, %c0_13, %c0_14], %14 {strides = array<i32>} : memref<1x17x32xf32, #tpu.memory_space<vmem>>, vector<1x1x32xf32>,
    %c0_15 = arith.constant 0 : index
    %c1 = arith.constant 1 : index
    %c0_16 = arith.constant 0 : index
    %15 = vector.load %arg4[%c0_15, %c1, %c0_16] : memref<1x17x32xf32, #tpu.memory_space<vmem>>, vector<1x16x32xf32>
    %16 = vector.shape_cast %15 : vector<1x16x32xf32> to vector<16x32xf32>
    %17 = arith.addf %6, %16 : vector<16x32xf32>
    %c0_17 = arith.constant 0 : index
    %c1_18 = arith.constant 1 : index
    %c0_19 = arith.constant 0 : index
    %18 = vector.load %arg6[%c0_17, %c1_18, %c0_19] : memref<1x17x32xf32, #tpu.memory_space<vmem>>, vector<1x16x32xf32>
    %19 = vector.shape_cast %18 : vector<1x16x32xf32> to vector<16x32xf32>
    %20 = vector.shape_cast %17 : vector<16x32xf32> to vector<1x16x32xf32>
    tpu.vector_store %arg6[%c0_17, %c1_18, %c0_19], %20 {strides = array<i32>} : memref<1x17x32xf32, #tpu.memory_space<vmem>>, vector<1x16x32xf32>,
    return
  }
  func.func @transform_0(%arg0: i32) -> (i32, i32, i32) {
    %c0_i32 = arith.constant 0 : i32
    %c0_i32_0 = arith.constant 0 : i32
    %c0_i32_1 = arith.constant 0 : i32
    return %arg0, %c0_i32, %c0_i32_0 : i32, i32, i32
  }
  func.func @transform_1(%arg0: i32) -> (i32, i32) {
    %c0_i32 = arith.constant 0 : i32
    %c0_i32_0 = arith.constant 0 : i32
    %c0_i32_1 = arith.constant 0 : i32
    return %c0_i32, %c0_i32_0 : i32, i32
  }
  func.func @transform_2(%arg0: i32) -> (i32, i32) {
    %c0_i32 = arith.constant 0 : i32
    %c0_i32_0 = arith.constant 0 : i32
    %c0_i32_1 = arith.constant 0 : i32
    return %c0_i32, %c0_i32_0 : i32, i32
  }
  func.func @transform_3(%arg0: i32) -> (i32, i32, i32) {
    %c0_i32 = arith.constant 0 : i32
    %c0_i32_0 = arith.constant 0 : i32
    %c0_i32_1 = arith.constant 0 : i32
    %c0_i32_2 = arith.constant 0 : i32
    return %c0_i32, %c0_i32_0, %c0_i32_1 : i32, i32, i32
  }
  func.func @transform_4(%arg0: i32) -> (i32, i32, i32) {
    %c0_i32 = arith.constant 0 : i32
    %c0_i32_0 = arith.constant 0 : i32
    %c0_i32_1 = arith.constant 0 : i32
    %c0_i32_2 = arith.constant 0 : i32
    return %c0_i32, %c0_i32_0, %c0_i32_1 : i32, i32, i32
  }
  func.func @transform_5(%arg0: i32) -> (i32, i32, i32) {
    %c0_i32 = arith.constant 0 : i32
    %c0_i32_0 = arith.constant 0 : i32
    %c0_i32_1 = arith.constant 0 : i32
    return %arg0, %c0_i32, %c0_i32_0 : i32, i32, i32
  }
}

module attributes {stable_mosaic.version = 11 : i64} {
  func.func @_block_stack_kernel(%arg0: i32, %arg1: i32, %arg2: memref<1x17x32xf32, #tpu.memory_space<vmem>>, %arg3: memref<1x1x32xf32, #tpu.memory_space<vmem>>, %arg4: memref<1x1x32xf32, #tpu.memory_space<vmem>>, %arg5: memref<1x12x32x8xf32, #tpu.memory_space<vmem>>, %arg6: memref<1x12x1x8xf32, #tpu.memory_space<vmem>>, %arg7: memref<1x4x8x32xf32, #tpu.memory_space<vmem>>, %arg8: memref<1x1x32xf32, #tpu.memory_space<vmem>>, %arg9: memref<1x1x32xf32, #tpu.memory_space<vmem>>, %arg10: memref<1x1x32xf32, #tpu.memory_space<vmem>>, %arg11: memref<1x32x128xf32, #tpu.memory_space<vmem>>, %arg12: memref<1x1x128xf32, #tpu.memory_space<vmem>>, %arg13: memref<1x128x32xf32, #tpu.memory_space<vmem>>, %arg14: memref<1x1x32xf32, #tpu.memory_space<vmem>>, %arg15: memref<1x17x32xf32, #tpu.memory_space<vmem>>, %arg16: memref<17x32xf32, #tpu.memory_space<vmem>>) attributes {dimension_semantics = [#tpu.dimension_semantics<parallel>, #tpu.dimension_semantics<arbitrary>], iteration_bounds = array<i64: 2, 2>, scalar_prefetch = 0 : i64, scratch_operands = 1 : i64, tpu.core_type = #tpu.core_type<tc>, window_params = [{transform_indices = @transform_0, window_bounds = array<i64: 1, 17, 32>}, {transform_indices = @transform_1, window_bounds = array<i64: 1, 1, 32>}, {transform_indices = @transform_2, window_bounds = array<i64: 1, 1, 32>}, {transform_indices = @transform_3, window_bounds = array<i64: 1, 12, 32, 8>}, {transform_indices = @transform_4, window_bounds = array<i64: 1, 12, 1, 8>}, {transform_indices = @transform_5, window_bounds = array<i64: 1, 4, 8, 32>}, {transform_indices = @transform_6, window_bounds = array<i64: 1, 1, 32>}, {transform_indices = @transform_7, window_bounds = array<i64: 1, 1, 32>}, {transform_indices = @transform_8, window_bounds = array<i64: 1, 1, 32>}, {transform_indices = @transform_9, window_bounds = array<i64: 1, 32, 128>}, {transform_indices = @transform_10, window_bounds = array<i64: 1, 1, 128>}, {transform_indices = @transform_11, window_bounds = array<i64: 1, 128, 32>}, {transform_indices = @transform_12, window_bounds = array<i64: 1, 1, 32>}, {transform_indices = @transform_13, window_bounds = array<i64: 1, 17, 32>}]} {
    %c0_i32 = arith.constant 0 : i32
    %0 = arith.cmpi eq, %arg1, %c0_i32 : i32
    %1 = arith.extui %0 : i1 to i32
    %c0_i32_0 = arith.constant 0 : i32
    %2 = arith.cmpi ne, %1, %c0_i32_0 : i32
    scf.if %2 {
      %c0_185 = arith.constant 0 : index
      %c0_186 = arith.constant 0 : index
      %c0_187 = arith.constant 0 : index
      %246 = vector.load %arg2[%c0_185, %c0_186, %c0_187] : memref<1x17x32xf32, #tpu.memory_space<vmem>>, vector<1x17x32xf32>
      %247 = vector.shape_cast %246 : vector<1x17x32xf32> to vector<17x32xf32>
      %c0_188 = arith.constant 0 : index
      %c0_189 = arith.constant 0 : index
      %248 = vector.load %arg16[%c0_188, %c0_189] : memref<17x32xf32, #tpu.memory_space<vmem>>, vector<17x32xf32>
      tpu.vector_store %arg16[%c0_188, %c0_189], %247 {strides = array<i32>} : memref<17x32xf32, #tpu.memory_space<vmem>>, vector<17x32xf32>,
    } else {
    }
    %c0 = arith.constant 0 : index
    %c0_1 = arith.constant 0 : index
    %3 = vector.load %arg16[%c0, %c0_1] : memref<17x32xf32, #tpu.memory_space<vmem>>, vector<17x32xf32>
    %c0_2 = arith.constant 0 : index
    %c0_3 = arith.constant 0 : index
    %c0_4 = arith.constant 0 : index
    %4 = vector.load %arg3[%c0_2, %c0_3, %c0_4] : memref<1x1x32xf32, #tpu.memory_space<vmem>>, vector<1x1x32xf32>
    %5 = vector.shape_cast %4 : vector<1x1x32xf32> to vector<1x32xf32>
    %c0_5 = arith.constant 0 : index
    %c0_6 = arith.constant 0 : index
    %c0_7 = arith.constant 0 : index
    %6 = vector.load %arg4[%c0_5, %c0_6, %c0_7] : memref<1x1x32xf32, #tpu.memory_space<vmem>>, vector<1x1x32xf32>
    %7 = vector.shape_cast %6 : vector<1x1x32xf32> to vector<1x32xf32>
    %cst = arith.constant dense<0.000000e+00> : vector<17xf32>
    %8 = vector.multi_reduction <add>, %3, %cst [1] : vector<17x32xf32> to vector<17xf32>
    %9 = vector.shape_cast %8 : vector<17xf32> to vector<17x1xf32>
    %cst_8 = arith.constant 3.200000e+01 : f32
    %10 = vector.broadcast %cst_8 : f32 to vector<17x1xf32>
    %11 = arith.divf %9, %10 : vector<17x1xf32>
    %12 = vector.broadcast %11 : vector<17x1xf32> to vector<17x32xf32>
    %13 = arith.subf %3, %12 : vector<17x32xf32>
    %14 = arith.mulf %13, %13 : vector<17x32xf32>
    %cst_9 = arith.constant dense<0.000000e+00> : vector<17xf32>
    %15 = vector.multi_reduction <add>, %14, %cst_9 [1] : vector<17x32xf32> to vector<17xf32>
    %16 = vector.shape_cast %15 : vector<17xf32> to vector<17x1xf32>
    %cst_10 = arith.constant 3.200000e+01 : f32
    %17 = vector.broadcast %cst_10 : f32 to vector<17x1xf32>
    %18 = arith.divf %16, %17 : vector<17x1xf32>
    %cst_11 = arith.constant 9.99999974E-6 : f32
    %19 = vector.broadcast %cst_11 : f32 to vector<17x1xf32>
    %20 = arith.addf %18, %19 : vector<17x1xf32>
    %21 = math.rsqrt %20 : vector<17x1xf32>
    %22 = vector.broadcast %21 : vector<17x1xf32> to vector<17x32xf32>
    %23 = arith.mulf %13, %22 : vector<17x32xf32>
    %24 = vector.broadcast %5 : vector<1x32xf32> to vector<17x32xf32>
    %25 = arith.mulf %23, %24 : vector<17x32xf32>
    %26 = vector.broadcast %7 : vector<1x32xf32> to vector<17x32xf32>
    %27 = arith.addf %25, %26 : vector<17x32xf32>
    %cst_12 = arith.constant 0.000000e+00 : f32
    %28 = vector.broadcast %cst_12 : f32 to vector<17x32xf32>
    %c0_13 = arith.constant 0 : index
    %c0_14 = arith.constant 0 : index
    %c0_15 = arith.constant 0 : index
    %c0_16 = arith.constant 0 : index
    %29 = vector.load %arg5[%c0_13, %c0_14, %c0_15, %c0_16] : memref<1x12x32x8xf32, #tpu.memory_space<vmem>>, vector<1x1x32x8xf32>
    %30 = vector.shape_cast %29 : vector<1x1x32x8xf32> to vector<32x8xf32>
    %cst_17 = arith.constant dense<0.000000e+00> : vector<17x8xf32>
    %31 = tpu.matmul %27, %30, %cst_17 {dimension_numbers = #tpu.dot_dimension_numbers<[1], [0], [0], [1], [0, 0, 1, 1], [], []>} : vector<17x32xf32>, vector<32x8xf32>, vector<17x8xf32> -> vector<17x8xf32>
    %c0_18 = arith.constant 0 : index
    %c0_19 = arith.constant 0 : index
    %c0_20 = arith.constant 0 : index
    %c0_21 = arith.constant 0 : index
    %32 = vector.load %arg6[%c0_18, %c0_19, %c0_20, %c0_21] : memref<1x12x1x8xf32, #tpu.memory_space<vmem>>, vector<1x1x1x8xf32>
    %33 = vector.shape_cast %32 : vector<1x1x1x8xf32> to vector<1x8xf32>
    %34 = vector.broadcast %33 : vector<1x8xf32> to vector<17x8xf32>
    %35 = arith.addf %31, %34 : vector<17x8xf32>
    %c0_22 = arith.constant 0 : index
    %c4 = arith.constant 4 : index
    %c0_23 = arith.constant 0 : index
    %c0_24 = arith.constant 0 : index
    %36 = vector.load %arg5[%c0_22, %c4, %c0_23, %c0_24] : memref<1x12x32x8xf32, #tpu.memory_space<vmem>>, vector<1x1x32x8xf32>
    %37 = vector.shape_cast %36 : vector<1x1x32x8xf32> to vector<32x8xf32>
    %cst_25 = arith.constant dense<0.000000e+00> : vector<17x8xf32>
    %38 = tpu.matmul %27, %37, %cst_25 {dimension_numbers = #tpu.dot_dimension_numbers<[1], [0], [0], [1], [0, 0, 1, 1], [], []>} : vector<17x32xf32>, vector<32x8xf32>, vector<17x8xf32> -> vector<17x8xf32>
    %c0_26 = arith.constant 0 : index
    %c4_27 = arith.constant 4 : index
    %c0_28 = arith.constant 0 : index
    %c0_29 = arith.constant 0 : index
    %39 = vector.load %arg6[%c0_26, %c4_27, %c0_28, %c0_29] : memref<1x12x1x8xf32, #tpu.memory_space<vmem>>, vector<1x1x1x8xf32>
    %40 = vector.shape_cast %39 : vector<1x1x1x8xf32> to vector<1x8xf32>
    %41 = vector.broadcast %40 : vector<1x8xf32> to vector<17x8xf32>
    %42 = arith.addf %38, %41 : vector<17x8xf32>
    %c0_30 = arith.constant 0 : index
    %c8 = arith.constant 8 : index
    %c0_31 = arith.constant 0 : index
    %c0_32 = arith.constant 0 : index
    %43 = vector.load %arg5[%c0_30, %c8, %c0_31, %c0_32] : memref<1x12x32x8xf32, #tpu.memory_space<vmem>>, vector<1x1x32x8xf32>
    %44 = vector.shape_cast %43 : vector<1x1x32x8xf32> to vector<32x8xf32>
    %cst_33 = arith.constant dense<0.000000e+00> : vector<17x8xf32>
    %45 = tpu.matmul %27, %44, %cst_33 {dimension_numbers = #tpu.dot_dimension_numbers<[1], [0], [0], [1], [0, 0, 1, 1], [], []>} : vector<17x32xf32>, vector<32x8xf32>, vector<17x8xf32> -> vector<17x8xf32>
    %c0_34 = arith.constant 0 : index
    %c8_35 = arith.constant 8 : index
    %c0_36 = arith.constant 0 : index
    %c0_37 = arith.constant 0 : index
    %46 = vector.load %arg6[%c0_34, %c8_35, %c0_36, %c0_37] : memref<1x12x1x8xf32, #tpu.memory_space<vmem>>, vector<1x1x1x8xf32>
    %47 = vector.shape_cast %46 : vector<1x1x1x8xf32> to vector<1x8xf32>
    %48 = vector.broadcast %47 : vector<1x8xf32> to vector<17x8xf32>
    %49 = arith.addf %45, %48 : vector<17x8xf32>
    %cst_38 = arith.constant dense<0.000000e+00> : vector<17x17xf32>
    %50 = tpu.matmul %35, %42, %cst_38 {dimension_numbers = #tpu.dot_dimension_numbers<[1], [1], [0], [0], [0, 0, 1, 0], [], []>} : vector<17x8xf32>, vector<17x8xf32>, vector<17x17xf32> -> vector<17x17xf32>
    %cst_39 = arith.constant 0.353553385 : f32
    %51 = vector.broadcast %cst_39 : f32 to vector<17x17xf32>
    %52 = arith.mulf %50, %51 : vector<17x17xf32>
    %cst_40 = arith.constant dense<0xFF800000> : vector<17xf32>
    %53 = vector.multi_reduction <maximumf>, %52, %cst_40 [1] : vector<17x17xf32> to vector<17xf32>
    %54 = vector.shape_cast %53 : vector<17xf32> to vector<17x1xf32>
    %55 = vector.broadcast %54 : vector<17x1xf32> to vector<17x17xf32>
    %56 = arith.subf %52, %55 : vector<17x17xf32>
    %57 = math.exp %56 : vector<17x17xf32>
    %cst_41 = arith.constant dense<0.000000e+00> : vector<17xf32>
    %58 = vector.multi_reduction <add>, %57, %cst_41 [1] : vector<17x17xf32> to vector<17xf32>
    %59 = vector.shape_cast %58 : vector<17xf32> to vector<17x1xf32>
    %60 = tpu.reciprocal %59 {approx = true} : vector<17x1xf32> -> vector<17x1xf32>
    %61 = vector.broadcast %60 : vector<17x1xf32> to vector<17x17xf32>
    %62 = arith.mulf %57, %61 : vector<17x17xf32>
    %cst_42 = arith.constant dense<0.000000e+00> : vector<17x8xf32>
    %63 = tpu.matmul %62, %49, %cst_42 {dimension_numbers = #tpu.dot_dimension_numbers<[1], [0], [0], [1], [0, 0, 1, 1], [], []>} : vector<17x17xf32>, vector<17x8xf32>, vector<17x8xf32> -> vector<17x8xf32>
    %c0_43 = arith.constant 0 : index
    %c0_44 = arith.constant 0 : index
    %c0_45 = arith.constant 0 : index
    %c0_46 = arith.constant 0 : index
    %64 = vector.load %arg7[%c0_43, %c0_44, %c0_45, %c0_46] : memref<1x4x8x32xf32, #tpu.memory_space<vmem>>, vector<1x1x8x32xf32>
    %65 = vector.shape_cast %64 : vector<1x1x8x32xf32> to vector<8x32xf32>
    %cst_47 = arith.constant dense<0.000000e+00> : vector<17x32xf32>
    %66 = tpu.matmul %63, %65, %cst_47 {dimension_numbers = #tpu.dot_dimension_numbers<[1], [0], [0], [1], [0, 0, 1, 1], [], []>} : vector<17x8xf32>, vector<8x32xf32>, vector<17x32xf32> -> vector<17x32xf32>
    %67 = arith.addf %28, %66 : vector<17x32xf32>
    %c0_48 = arith.constant 0 : index
    %c1 = arith.constant 1 : index
    %c0_49 = arith.constant 0 : index
    %c0_50 = arith.constant 0 : index
    %68 = vector.load %arg5[%c0_48, %c1, %c0_49, %c0_50] : memref<1x12x32x8xf32, #tpu.memory_space<vmem>>, vector<1x1x32x8xf32>
    %69 = vector.shape_cast %68 : vector<1x1x32x8xf32> to vector<32x8xf32>
    %cst_51 = arith.constant dense<0.000000e+00> : vector<17x8xf32>
    %70 = tpu.matmul %27, %69, %cst_51 {dimension_numbers = #tpu.dot_dimension_numbers<[1], [0], [0], [1], [0, 0, 1, 1], [], []>} : vector<17x32xf32>, vector<32x8xf32>, vector<17x8xf32> -> vector<17x8xf32>
    %c0_52 = arith.constant 0 : index
    %c1_53 = arith.constant 1 : index
    %c0_54 = arith.constant 0 : index
    %c0_55 = arith.constant 0 : index
    %71 = vector.load %arg6[%c0_52, %c1_53, %c0_54, %c0_55] : memref<1x12x1x8xf32, #tpu.memory_space<vmem>>, vector<1x1x1x8xf32>
    %72 = vector.shape_cast %71 : vector<1x1x1x8xf32> to vector<1x8xf32>
    %73 = vector.broadcast %72 : vector<1x8xf32> to vector<17x8xf32>
    %74 = arith.addf %70, %73 : vector<17x8xf32>
    %c0_56 = arith.constant 0 : index
    %c5 = arith.constant 5 : index
    %c0_57 = arith.constant 0 : index
    %c0_58 = arith.constant 0 : index
    %75 = vector.load %arg5[%c0_56, %c5, %c0_57, %c0_58] : memref<1x12x32x8xf32, #tpu.memory_space<vmem>>, vector<1x1x32x8xf32>
    %76 = vector.shape_cast %75 : vector<1x1x32x8xf32> to vector<32x8xf32>
    %cst_59 = arith.constant dense<0.000000e+00> : vector<17x8xf32>
    %77 = tpu.matmul %27, %76, %cst_59 {dimension_numbers = #tpu.dot_dimension_numbers<[1], [0], [0], [1], [0, 0, 1, 1], [], []>} : vector<17x32xf32>, vector<32x8xf32>, vector<17x8xf32> -> vector<17x8xf32>
    %c0_60 = arith.constant 0 : index
    %c5_61 = arith.constant 5 : index
    %c0_62 = arith.constant 0 : index
    %c0_63 = arith.constant 0 : index
    %78 = vector.load %arg6[%c0_60, %c5_61, %c0_62, %c0_63] : memref<1x12x1x8xf32, #tpu.memory_space<vmem>>, vector<1x1x1x8xf32>
    %79 = vector.shape_cast %78 : vector<1x1x1x8xf32> to vector<1x8xf32>
    %80 = vector.broadcast %79 : vector<1x8xf32> to vector<17x8xf32>
    %81 = arith.addf %77, %80 : vector<17x8xf32>
    %c0_64 = arith.constant 0 : index
    %c9 = arith.constant 9 : index
    %c0_65 = arith.constant 0 : index
    %c0_66 = arith.constant 0 : index
    %82 = vector.load %arg5[%c0_64, %c9, %c0_65, %c0_66] : memref<1x12x32x8xf32, #tpu.memory_space<vmem>>, vector<1x1x32x8xf32>
    %83 = vector.shape_cast %82 : vector<1x1x32x8xf32> to vector<32x8xf32>
    %cst_67 = arith.constant dense<0.000000e+00> : vector<17x8xf32>
    %84 = tpu.matmul %27, %83, %cst_67 {dimension_numbers = #tpu.dot_dimension_numbers<[1], [0], [0], [1], [0, 0, 1, 1], [], []>} : vector<17x32xf32>, vector<32x8xf32>, vector<17x8xf32> -> vector<17x8xf32>
    %c0_68 = arith.constant 0 : index
    %c9_69 = arith.constant 9 : index
    %c0_70 = arith.constant 0 : index
    %c0_71 = arith.constant 0 : index
    %85 = vector.load %arg6[%c0_68, %c9_69, %c0_70, %c0_71] : memref<1x12x1x8xf32, #tpu.memory_space<vmem>>, vector<1x1x1x8xf32>
    %86 = vector.shape_cast %85 : vector<1x1x1x8xf32> to vector<1x8xf32>
    %87 = vector.broadcast %86 : vector<1x8xf32> to vector<17x8xf32>
    %88 = arith.addf %84, %87 : vector<17x8xf32>
    %cst_72 = arith.constant dense<0.000000e+00> : vector<17x17xf32>
    %89 = tpu.matmul %74, %81, %cst_72 {dimension_numbers = #tpu.dot_dimension_numbers<[1], [1], [0], [0], [0, 0, 1, 0], [], []>} : vector<17x8xf32>, vector<17x8xf32>, vector<17x17xf32> -> vector<17x17xf32>
    %cst_73 = arith.constant 0.353553385 : f32
    %90 = vector.broadcast %cst_73 : f32 to vector<17x17xf32>
    %91 = arith.mulf %89, %90 : vector<17x17xf32>
    %cst_74 = arith.constant dense<0xFF800000> : vector<17xf32>
    %92 = vector.multi_reduction <maximumf>, %91, %cst_74 [1] : vector<17x17xf32> to vector<17xf32>
    %93 = vector.shape_cast %92 : vector<17xf32> to vector<17x1xf32>
    %94 = vector.broadcast %93 : vector<17x1xf32> to vector<17x17xf32>
    %95 = arith.subf %91, %94 : vector<17x17xf32>
    %96 = math.exp %95 : vector<17x17xf32>
    %cst_75 = arith.constant dense<0.000000e+00> : vector<17xf32>
    %97 = vector.multi_reduction <add>, %96, %cst_75 [1] : vector<17x17xf32> to vector<17xf32>
    %98 = vector.shape_cast %97 : vector<17xf32> to vector<17x1xf32>
    %99 = tpu.reciprocal %98 {approx = true} : vector<17x1xf32> -> vector<17x1xf32>
    %100 = vector.broadcast %99 : vector<17x1xf32> to vector<17x17xf32>
    %101 = arith.mulf %96, %100 : vector<17x17xf32>
    %cst_76 = arith.constant dense<0.000000e+00> : vector<17x8xf32>
    %102 = tpu.matmul %101, %88, %cst_76 {dimension_numbers = #tpu.dot_dimension_numbers<[1], [0], [0], [1], [0, 0, 1, 1], [], []>} : vector<17x17xf32>, vector<17x8xf32>, vector<17x8xf32> -> vector<17x8xf32>
    %c0_77 = arith.constant 0 : index
    %c1_78 = arith.constant 1 : index
    %c0_79 = arith.constant 0 : index
    %c0_80 = arith.constant 0 : index
    %103 = vector.load %arg7[%c0_77, %c1_78, %c0_79, %c0_80] : memref<1x4x8x32xf32, #tpu.memory_space<vmem>>, vector<1x1x8x32xf32>
    %104 = vector.shape_cast %103 : vector<1x1x8x32xf32> to vector<8x32xf32>
    %cst_81 = arith.constant dense<0.000000e+00> : vector<17x32xf32>
    %105 = tpu.matmul %102, %104, %cst_81 {dimension_numbers = #tpu.dot_dimension_numbers<[1], [0], [0], [1], [0, 0, 1, 1], [], []>} : vector<17x8xf32>, vector<8x32xf32>, vector<17x32xf32> -> vector<17x32xf32>
    %106 = arith.addf %67, %105 : vector<17x32xf32>
    %c0_82 = arith.constant 0 : index
    %c2 = arith.constant 2 : index
    %c0_83 = arith.constant 0 : index
    %c0_84 = arith.constant 0 : index
    %107 = vector.load %arg5[%c0_82, %c2, %c0_83, %c0_84] : memref<1x12x32x8xf32, #tpu.memory_space<vmem>>, vector<1x1x32x8xf32>
    %108 = vector.shape_cast %107 : vector<1x1x32x8xf32> to vector<32x8xf32>
    %cst_85 = arith.constant dense<0.000000e+00> : vector<17x8xf32>
    %109 = tpu.matmul %27, %108, %cst_85 {dimension_numbers = #tpu.dot_dimension_numbers<[1], [0], [0], [1], [0, 0, 1, 1], [], []>} : vector<17x32xf32>, vector<32x8xf32>, vector<17x8xf32> -> vector<17x8xf32>
    %c0_86 = arith.constant 0 : index
    %c2_87 = arith.constant 2 : index
    %c0_88 = arith.constant 0 : index
    %c0_89 = arith.constant 0 : index
    %110 = vector.load %arg6[%c0_86, %c2_87, %c0_88, %c0_89] : memref<1x12x1x8xf32, #tpu.memory_space<vmem>>, vector<1x1x1x8xf32>
    %111 = vector.shape_cast %110 : vector<1x1x1x8xf32> to vector<1x8xf32>
    %112 = vector.broadcast %111 : vector<1x8xf32> to vector<17x8xf32>
    %113 = arith.addf %109, %112 : vector<17x8xf32>
    %c0_90 = arith.constant 0 : index
    %c6 = arith.constant 6 : index
    %c0_91 = arith.constant 0 : index
    %c0_92 = arith.constant 0 : index
    %114 = vector.load %arg5[%c0_90, %c6, %c0_91, %c0_92] : memref<1x12x32x8xf32, #tpu.memory_space<vmem>>, vector<1x1x32x8xf32>
    %115 = vector.shape_cast %114 : vector<1x1x32x8xf32> to vector<32x8xf32>
    %cst_93 = arith.constant dense<0.000000e+00> : vector<17x8xf32>
    %116 = tpu.matmul %27, %115, %cst_93 {dimension_numbers = #tpu.dot_dimension_numbers<[1], [0], [0], [1], [0, 0, 1, 1], [], []>} : vector<17x32xf32>, vector<32x8xf32>, vector<17x8xf32> -> vector<17x8xf32>
    %c0_94 = arith.constant 0 : index
    %c6_95 = arith.constant 6 : index
    %c0_96 = arith.constant 0 : index
    %c0_97 = arith.constant 0 : index
    %117 = vector.load %arg6[%c0_94, %c6_95, %c0_96, %c0_97] : memref<1x12x1x8xf32, #tpu.memory_space<vmem>>, vector<1x1x1x8xf32>
    %118 = vector.shape_cast %117 : vector<1x1x1x8xf32> to vector<1x8xf32>
    %119 = vector.broadcast %118 : vector<1x8xf32> to vector<17x8xf32>
    %120 = arith.addf %116, %119 : vector<17x8xf32>
    %c0_98 = arith.constant 0 : index
    %c10 = arith.constant 10 : index
    %c0_99 = arith.constant 0 : index
    %c0_100 = arith.constant 0 : index
    %121 = vector.load %arg5[%c0_98, %c10, %c0_99, %c0_100] : memref<1x12x32x8xf32, #tpu.memory_space<vmem>>, vector<1x1x32x8xf32>
    %122 = vector.shape_cast %121 : vector<1x1x32x8xf32> to vector<32x8xf32>
    %cst_101 = arith.constant dense<0.000000e+00> : vector<17x8xf32>
    %123 = tpu.matmul %27, %122, %cst_101 {dimension_numbers = #tpu.dot_dimension_numbers<[1], [0], [0], [1], [0, 0, 1, 1], [], []>} : vector<17x32xf32>, vector<32x8xf32>, vector<17x8xf32> -> vector<17x8xf32>
    %c0_102 = arith.constant 0 : index
    %c10_103 = arith.constant 10 : index
    %c0_104 = arith.constant 0 : index
    %c0_105 = arith.constant 0 : index
    %124 = vector.load %arg6[%c0_102, %c10_103, %c0_104, %c0_105] : memref<1x12x1x8xf32, #tpu.memory_space<vmem>>, vector<1x1x1x8xf32>
    %125 = vector.shape_cast %124 : vector<1x1x1x8xf32> to vector<1x8xf32>
    %126 = vector.broadcast %125 : vector<1x8xf32> to vector<17x8xf32>
    %127 = arith.addf %123, %126 : vector<17x8xf32>
    %cst_106 = arith.constant dense<0.000000e+00> : vector<17x17xf32>
    %128 = tpu.matmul %113, %120, %cst_106 {dimension_numbers = #tpu.dot_dimension_numbers<[1], [1], [0], [0], [0, 0, 1, 0], [], []>} : vector<17x8xf32>, vector<17x8xf32>, vector<17x17xf32> -> vector<17x17xf32>
    %cst_107 = arith.constant 0.353553385 : f32
    %129 = vector.broadcast %cst_107 : f32 to vector<17x17xf32>
    %130 = arith.mulf %128, %129 : vector<17x17xf32>
    %cst_108 = arith.constant dense<0xFF800000> : vector<17xf32>
    %131 = vector.multi_reduction <maximumf>, %130, %cst_108 [1] : vector<17x17xf32> to vector<17xf32>
    %132 = vector.shape_cast %131 : vector<17xf32> to vector<17x1xf32>
    %133 = vector.broadcast %132 : vector<17x1xf32> to vector<17x17xf32>
    %134 = arith.subf %130, %133 : vector<17x17xf32>
    %135 = math.exp %134 : vector<17x17xf32>
    %cst_109 = arith.constant dense<0.000000e+00> : vector<17xf32>
    %136 = vector.multi_reduction <add>, %135, %cst_109 [1] : vector<17x17xf32> to vector<17xf32>
    %137 = vector.shape_cast %136 : vector<17xf32> to vector<17x1xf32>
    %138 = tpu.reciprocal %137 {approx = true} : vector<17x1xf32> -> vector<17x1xf32>
    %139 = vector.broadcast %138 : vector<17x1xf32> to vector<17x17xf32>
    %140 = arith.mulf %135, %139 : vector<17x17xf32>
    %cst_110 = arith.constant dense<0.000000e+00> : vector<17x8xf32>
    %141 = tpu.matmul %140, %127, %cst_110 {dimension_numbers = #tpu.dot_dimension_numbers<[1], [0], [0], [1], [0, 0, 1, 1], [], []>} : vector<17x17xf32>, vector<17x8xf32>, vector<17x8xf32> -> vector<17x8xf32>
    %c0_111 = arith.constant 0 : index
    %c2_112 = arith.constant 2 : index
    %c0_113 = arith.constant 0 : index
    %c0_114 = arith.constant 0 : index
    %142 = vector.load %arg7[%c0_111, %c2_112, %c0_113, %c0_114] : memref<1x4x8x32xf32, #tpu.memory_space<vmem>>, vector<1x1x8x32xf32>
    %143 = vector.shape_cast %142 : vector<1x1x8x32xf32> to vector<8x32xf32>
    %cst_115 = arith.constant dense<0.000000e+00> : vector<17x32xf32>
    %144 = tpu.matmul %141, %143, %cst_115 {dimension_numbers = #tpu.dot_dimension_numbers<[1], [0], [0], [1], [0, 0, 1, 1], [], []>} : vector<17x8xf32>, vector<8x32xf32>, vector<17x32xf32> -> vector<17x32xf32>
    %145 = arith.addf %106, %144 : vector<17x32xf32>
    %c0_116 = arith.constant 0 : index
    %c3 = arith.constant 3 : index
    %c0_117 = arith.constant 0 : index
    %c0_118 = arith.constant 0 : index
    %146 = vector.load %arg5[%c0_116, %c3, %c0_117, %c0_118] : memref<1x12x32x8xf32, #tpu.memory_space<vmem>>, vector<1x1x32x8xf32>
    %147 = vector.shape_cast %146 : vector<1x1x32x8xf32> to vector<32x8xf32>
    %cst_119 = arith.constant dense<0.000000e+00> : vector<17x8xf32>
    %148 = tpu.matmul %27, %147, %cst_119 {dimension_numbers = #tpu.dot_dimension_numbers<[1], [0], [0], [1], [0, 0, 1, 1], [], []>} : vector<17x32xf32>, vector<32x8xf32>, vector<17x8xf32> -> vector<17x8xf32>
    %c0_120 = arith.constant 0 : index
    %c3_121 = arith.constant 3 : index
    %c0_122 = arith.constant 0 : index
    %c0_123 = arith.constant 0 : index
    %149 = vector.load %arg6[%c0_120, %c3_121, %c0_122, %c0_123] : memref<1x12x1x8xf32, #tpu.memory_space<vmem>>, vector<1x1x1x8xf32>
    %150 = vector.shape_cast %149 : vector<1x1x1x8xf32> to vector<1x8xf32>
    %151 = vector.broadcast %150 : vector<1x8xf32> to vector<17x8xf32>
    %152 = arith.addf %148, %151 : vector<17x8xf32>
    %c0_124 = arith.constant 0 : index
    %c7 = arith.constant 7 : index
    %c0_125 = arith.constant 0 : index
    %c0_126 = arith.constant 0 : index
    %153 = vector.load %arg5[%c0_124, %c7, %c0_125, %c0_126] : memref<1x12x32x8xf32, #tpu.memory_space<vmem>>, vector<1x1x32x8xf32>
    %154 = vector.shape_cast %153 : vector<1x1x32x8xf32> to vector<32x8xf32>
    %cst_127 = arith.constant dense<0.000000e+00> : vector<17x8xf32>
    %155 = tpu.matmul %27, %154, %cst_127 {dimension_numbers = #tpu.dot_dimension_numbers<[1], [0], [0], [1], [0, 0, 1, 1], [], []>} : vector<17x32xf32>, vector<32x8xf32>, vector<17x8xf32> -> vector<17x8xf32>
    %c0_128 = arith.constant 0 : index
    %c7_129 = arith.constant 7 : index
    %c0_130 = arith.constant 0 : index
    %c0_131 = arith.constant 0 : index
    %156 = vector.load %arg6[%c0_128, %c7_129, %c0_130, %c0_131] : memref<1x12x1x8xf32, #tpu.memory_space<vmem>>, vector<1x1x1x8xf32>
    %157 = vector.shape_cast %156 : vector<1x1x1x8xf32> to vector<1x8xf32>
    %158 = vector.broadcast %157 : vector<1x8xf32> to vector<17x8xf32>
    %159 = arith.addf %155, %158 : vector<17x8xf32>
    %c0_132 = arith.constant 0 : index
    %c11 = arith.constant 11 : index
    %c0_133 = arith.constant 0 : index
    %c0_134 = arith.constant 0 : index
    %160 = vector.load %arg5[%c0_132, %c11, %c0_133, %c0_134] : memref<1x12x32x8xf32, #tpu.memory_space<vmem>>, vector<1x1x32x8xf32>
    %161 = vector.shape_cast %160 : vector<1x1x32x8xf32> to vector<32x8xf32>
    %cst_135 = arith.constant dense<0.000000e+00> : vector<17x8xf32>
    %162 = tpu.matmul %27, %161, %cst_135 {dimension_numbers = #tpu.dot_dimension_numbers<[1], [0], [0], [1], [0, 0, 1, 1], [], []>} : vector<17x32xf32>, vector<32x8xf32>, vector<17x8xf32> -> vector<17x8xf32>
    %c0_136 = arith.constant 0 : index
    %c11_137 = arith.constant 11 : index
    %c0_138 = arith.constant 0 : index
    %c0_139 = arith.constant 0 : index
    %163 = vector.load %arg6[%c0_136, %c11_137, %c0_138, %c0_139] : memref<1x12x1x8xf32, #tpu.memory_space<vmem>>, vector<1x1x1x8xf32>
    %164 = vector.shape_cast %163 : vector<1x1x1x8xf32> to vector<1x8xf32>
    %165 = vector.broadcast %164 : vector<1x8xf32> to vector<17x8xf32>
    %166 = arith.addf %162, %165 : vector<17x8xf32>
    %cst_140 = arith.constant dense<0.000000e+00> : vector<17x17xf32>
    %167 = tpu.matmul %152, %159, %cst_140 {dimension_numbers = #tpu.dot_dimension_numbers<[1], [1], [0], [0], [0, 0, 1, 0], [], []>} : vector<17x8xf32>, vector<17x8xf32>, vector<17x17xf32> -> vector<17x17xf32>
    %cst_141 = arith.constant 0.353553385 : f32
    %168 = vector.broadcast %cst_141 : f32 to vector<17x17xf32>
    %169 = arith.mulf %167, %168 : vector<17x17xf32>
    %cst_142 = arith.constant dense<0xFF800000> : vector<17xf32>
    %170 = vector.multi_reduction <maximumf>, %169, %cst_142 [1] : vector<17x17xf32> to vector<17xf32>
    %171 = vector.shape_cast %170 : vector<17xf32> to vector<17x1xf32>
    %172 = vector.broadcast %171 : vector<17x1xf32> to vector<17x17xf32>
    %173 = arith.subf %169, %172 : vector<17x17xf32>
    %174 = math.exp %173 : vector<17x17xf32>
    %cst_143 = arith.constant dense<0.000000e+00> : vector<17xf32>
    %175 = vector.multi_reduction <add>, %174, %cst_143 [1] : vector<17x17xf32> to vector<17xf32>
    %176 = vector.shape_cast %175 : vector<17xf32> to vector<17x1xf32>
    %177 = tpu.reciprocal %176 {approx = true} : vector<17x1xf32> -> vector<17x1xf32>
    %178 = vector.broadcast %177 : vector<17x1xf32> to vector<17x17xf32>
    %179 = arith.mulf %174, %178 : vector<17x17xf32>
    %cst_144 = arith.constant dense<0.000000e+00> : vector<17x8xf32>
    %180 = tpu.matmul %179, %166, %cst_144 {dimension_numbers = #tpu.dot_dimension_numbers<[1], [0], [0], [1], [0, 0, 1, 1], [], []>} : vector<17x17xf32>, vector<17x8xf32>, vector<17x8xf32> -> vector<17x8xf32>
    %c0_145 = arith.constant 0 : index
    %c3_146 = arith.constant 3 : index
    %c0_147 = arith.constant 0 : index
    %c0_148 = arith.constant 0 : index
    %181 = vector.load %arg7[%c0_145, %c3_146, %c0_147, %c0_148] : memref<1x4x8x32xf32, #tpu.memory_space<vmem>>, vector<1x1x8x32xf32>
    %182 = vector.shape_cast %181 : vector<1x1x8x32xf32> to vector<8x32xf32>
    %cst_149 = arith.constant dense<0.000000e+00> : vector<17x32xf32>
    %183 = tpu.matmul %180, %182, %cst_149 {dimension_numbers = #tpu.dot_dimension_numbers<[1], [0], [0], [1], [0, 0, 1, 1], [], []>} : vector<17x8xf32>, vector<8x32xf32>, vector<17x32xf32> -> vector<17x32xf32>
    %184 = arith.addf %145, %183 : vector<17x32xf32>
    %185 = arith.addf %3, %184 : vector<17x32xf32>
    %c0_150 = arith.constant 0 : index
    %c0_151 = arith.constant 0 : index
    %c0_152 = arith.constant 0 : index
    %186 = vector.load %arg8[%c0_150, %c0_151, %c0_152] : memref<1x1x32xf32, #tpu.memory_space<vmem>>, vector<1x1x32xf32>
    %187 = vector.shape_cast %186 : vector<1x1x32xf32> to vector<1x32xf32>
    %188 = vector.broadcast %187 : vector<1x32xf32> to vector<17x32xf32>
    %189 = arith.addf %185, %188 : vector<17x32xf32>
    %c0_153 = arith.constant 0 : index
    %c0_154 = arith.constant 0 : index
    %c0_155 = arith.constant 0 : index
    %190 = vector.load %arg9[%c0_153, %c0_154, %c0_155] : memref<1x1x32xf32, #tpu.memory_space<vmem>>, vector<1x1x32xf32>
    %191 = vector.shape_cast %190 : vector<1x1x32xf32> to vector<1x32xf32>
    %c0_156 = arith.constant 0 : index
    %c0_157 = arith.constant 0 : index
    %c0_158 = arith.constant 0 : index
    %192 = vector.load %arg10[%c0_156, %c0_157, %c0_158] : memref<1x1x32xf32, #tpu.memory_space<vmem>>, vector<1x1x32xf32>
    %193 = vector.shape_cast %192 : vector<1x1x32xf32> to vector<1x32xf32>
    %cst_159 = arith.constant dense<0.000000e+00> : vector<17xf32>
    %194 = vector.multi_reduction <add>, %189, %cst_159 [1] : vector<17x32xf32> to vector<17xf32>
    %195 = vector.shape_cast %194 : vector<17xf32> to vector<17x1xf32>
    %cst_160 = arith.constant 3.200000e+01 : f32
    %196 = vector.broadcast %cst_160 : f32 to vector<17x1xf32>
    %197 = arith.divf %195, %196 : vector<17x1xf32>
    %198 = vector.broadcast %197 : vector<17x1xf32> to vector<17x32xf32>
    %199 = arith.subf %189, %198 : vector<17x32xf32>
    %200 = arith.mulf %199, %199 : vector<17x32xf32>
    %cst_161 = arith.constant dense<0.000000e+00> : vector<17xf32>
    %201 = vector.multi_reduction <add>, %200, %cst_161 [1] : vector<17x32xf32> to vector<17xf32>
    %202 = vector.shape_cast %201 : vector<17xf32> to vector<17x1xf32>
    %cst_162 = arith.constant 3.200000e+01 : f32
    %203 = vector.broadcast %cst_162 : f32 to vector<17x1xf32>
    %204 = arith.divf %202, %203 : vector<17x1xf32>
    %cst_163 = arith.constant 9.99999974E-6 : f32
    %205 = vector.broadcast %cst_163 : f32 to vector<17x1xf32>
    %206 = arith.addf %204, %205 : vector<17x1xf32>
    %207 = math.rsqrt %206 : vector<17x1xf32>
    %208 = vector.broadcast %207 : vector<17x1xf32> to vector<17x32xf32>
    %209 = arith.mulf %199, %208 : vector<17x32xf32>
    %210 = vector.broadcast %191 : vector<1x32xf32> to vector<17x32xf32>
    %211 = arith.mulf %209, %210 : vector<17x32xf32>
    %212 = vector.broadcast %193 : vector<1x32xf32> to vector<17x32xf32>
    %213 = arith.addf %211, %212 : vector<17x32xf32>
    %c0_164 = arith.constant 0 : index
    %c0_165 = arith.constant 0 : index
    %c0_166 = arith.constant 0 : index
    %214 = vector.load %arg11[%c0_164, %c0_165, %c0_166] : memref<1x32x128xf32, #tpu.memory_space<vmem>>, vector<1x32x128xf32>
    %215 = vector.shape_cast %214 : vector<1x32x128xf32> to vector<32x128xf32>
    %cst_167 = arith.constant dense<0.000000e+00> : vector<17x128xf32>
    %216 = tpu.matmul %213, %215, %cst_167 {dimension_numbers = #tpu.dot_dimension_numbers<[1], [0], [0], [1], [0, 0, 1, 1], [], []>} : vector<17x32xf32>, vector<32x128xf32>, vector<17x128xf32> -> vector<17x128xf32>
    %c0_168 = arith.constant 0 : index
    %c0_169 = arith.constant 0 : index
    %c0_170 = arith.constant 0 : index
    %217 = vector.load %arg12[%c0_168, %c0_169, %c0_170] : memref<1x1x128xf32, #tpu.memory_space<vmem>>, vector<1x1x128xf32>
    %218 = vector.shape_cast %217 : vector<1x1x128xf32> to vector<1x128xf32>
    %219 = vector.broadcast %218 : vector<1x128xf32> to vector<17x128xf32>
    %220 = arith.addf %216, %219 : vector<17x128xf32>
    %221 = arith.mulf %220, %220 : vector<17x128xf32>
    %222 = arith.mulf %220, %221 : vector<17x128xf32>
    %cst_171 = arith.constant 4.471500e-02 : f32
    %223 = vector.broadcast %cst_171 : f32 to vector<17x128xf32>
    %224 = arith.mulf %223, %222 : vector<17x128xf32>
    %225 = arith.addf %220, %224 : vector<17x128xf32>
    %cst_172 = arith.constant 0.797884583 : f32
    %226 = vector.broadcast %cst_172 : f32 to vector<17x128xf32>
    %227 = arith.mulf %226, %225 : vector<17x128xf32>
    %228 = math.tanh %227 : vector<17x128xf32>
    %cst_173 = arith.constant 1.000000e+00 : f32
    %229 = vector.broadcast %cst_173 : f32 to vector<17x128xf32>
    %230 = arith.addf %229, %228 : vector<17x128xf32>
    %cst_174 = arith.constant 5.000000e-01 : f32
    %231 = vector.broadcast %cst_174 : f32 to vector<17x128xf32>
    %232 = arith.mulf %231, %230 : vector<17x128xf32>
    %233 = arith.mulf %220, %232 : vector<17x128xf32>
    %c0_175 = arith.constant 0 : index
    %c0_176 = arith.constant 0 : index
    %c0_177 = arith.constant 0 : index
    %234 = vector.load %arg13[%c0_175, %c0_176, %c0_177] : memref<1x128x32xf32, #tpu.memory_space<vmem>>, vector<1x128x32xf32>
    %235 = vector.shape_cast %234 : vector<1x128x32xf32> to vector<128x32xf32>
    %cst_178 = arith.constant dense<0.000000e+00> : vector<17x32xf32>
    %236 = tpu.matmul %233, %235, %cst_178 {dimension_numbers = #tpu.dot_dimension_numbers<[1], [0], [0], [1], [0, 0, 1, 1], [], []>} : vector<17x128xf32>, vector<128x32xf32>, vector<17x32xf32> -> vector<17x32xf32>
    %c0_179 = arith.constant 0 : index
    %c0_180 = arith.constant 0 : index
    %c0_181 = arith.constant 0 : index
    %237 = vector.load %arg14[%c0_179, %c0_180, %c0_181] : memref<1x1x32xf32, #tpu.memory_space<vmem>>, vector<1x1x32xf32>
    %238 = vector.shape_cast %237 : vector<1x1x32xf32> to vector<1x32xf32>
    %239 = vector.broadcast %238 : vector<1x32xf32> to vector<17x32xf32>
    %240 = arith.addf %236, %239 : vector<17x32xf32>
    %241 = arith.addf %189, %240 : vector<17x32xf32>
    %c0_182 = arith.constant 0 : index
    %c0_183 = arith.constant 0 : index
    %242 = vector.load %arg16[%c0_182, %c0_183] : memref<17x32xf32, #tpu.memory_space<vmem>>, vector<17x32xf32>
    tpu.vector_store %arg16[%c0_182, %c0_183], %241 {strides = array<i32>} : memref<17x32xf32, #tpu.memory_space<vmem>>, vector<17x32xf32>,
    %c1_i32 = arith.constant 1 : i32
    %243 = arith.cmpi eq, %arg1, %c1_i32 : i32
    %244 = arith.extui %243 : i1 to i32
    %c0_i32_184 = arith.constant 0 : i32
    %245 = arith.cmpi ne, %244, %c0_i32_184 : i32
    scf.if %245 {
      %c0_185 = arith.constant 0 : index
      %c0_186 = arith.constant 0 : index
      %c0_187 = arith.constant 0 : index
      %246 = vector.load %arg15[%c0_185, %c0_186, %c0_187] : memref<1x17x32xf32, #tpu.memory_space<vmem>>, vector<1x17x32xf32>
      %247 = vector.shape_cast %246 : vector<1x17x32xf32> to vector<17x32xf32>
      %248 = vector.shape_cast %241 : vector<17x32xf32> to vector<1x17x32xf32>
      tpu.vector_store %arg15[%c0_185, %c0_186, %c0_187], %248 {strides = array<i32>} : memref<1x17x32xf32, #tpu.memory_space<vmem>>, vector<1x17x32xf32>,
    } else {
    }
    return
  }
  func.func @transform_0(%arg0: i32, %arg1: i32) -> (i32, i32, i32) {
    %c0_i32 = arith.constant 0 : i32
    %c0_i32_0 = arith.constant 0 : i32
    %c0_i32_1 = arith.constant 0 : i32
    return %arg0, %c0_i32, %c0_i32_0 : i32, i32, i32
  }
  func.func @transform_1(%arg0: i32, %arg1: i32) -> (i32, i32, i32) {
    %c0_i32 = arith.constant 0 : i32
    %c0_i32_0 = arith.constant 0 : i32
    %c0_i32_1 = arith.constant 0 : i32
    return %arg1, %c0_i32, %c0_i32_0 : i32, i32, i32
  }
  func.func @transform_2(%arg0: i32, %arg1: i32) -> (i32, i32, i32) {
    %c0_i32 = arith.constant 0 : i32
    %c0_i32_0 = arith.constant 0 : i32
    %c0_i32_1 = arith.constant 0 : i32
    return %arg1, %c0_i32, %c0_i32_0 : i32, i32, i32
  }
  func.func @transform_3(%arg0: i32, %arg1: i32) -> (i32, i32, i32, i32) {
    %c0_i32 = arith.constant 0 : i32
    %c0_i32_0 = arith.constant 0 : i32
    %c0_i32_1 = arith.constant 0 : i32
    %c0_i32_2 = arith.constant 0 : i32
    return %arg1, %c0_i32, %c0_i32_0, %c0_i32_1 : i32, i32, i32, i32
  }
  func.func @transform_4(%arg0: i32, %arg1: i32) -> (i32, i32, i32, i32) {
    %c0_i32 = arith.constant 0 : i32
    %c0_i32_0 = arith.constant 0 : i32
    %c0_i32_1 = arith.constant 0 : i32
    %c0_i32_2 = arith.constant 0 : i32
    return %arg1, %c0_i32, %c0_i32_0, %c0_i32_1 : i32, i32, i32, i32
  }
  func.func @transform_5(%arg0: i32, %arg1: i32) -> (i32, i32, i32, i32) {
    %c0_i32 = arith.constant 0 : i32
    %c0_i32_0 = arith.constant 0 : i32
    %c0_i32_1 = arith.constant 0 : i32
    %c0_i32_2 = arith.constant 0 : i32
    return %arg1, %c0_i32, %c0_i32_0, %c0_i32_1 : i32, i32, i32, i32
  }
  func.func @transform_6(%arg0: i32, %arg1: i32) -> (i32, i32, i32) {
    %c0_i32 = arith.constant 0 : i32
    %c0_i32_0 = arith.constant 0 : i32
    %c0_i32_1 = arith.constant 0 : i32
    return %arg1, %c0_i32, %c0_i32_0 : i32, i32, i32
  }
  func.func @transform_7(%arg0: i32, %arg1: i32) -> (i32, i32, i32) {
    %c0_i32 = arith.constant 0 : i32
    %c0_i32_0 = arith.constant 0 : i32
    %c0_i32_1 = arith.constant 0 : i32
    return %arg1, %c0_i32, %c0_i32_0 : i32, i32, i32
  }
  func.func @transform_8(%arg0: i32, %arg1: i32) -> (i32, i32, i32) {
    %c0_i32 = arith.constant 0 : i32
    %c0_i32_0 = arith.constant 0 : i32
    %c0_i32_1 = arith.constant 0 : i32
    return %arg1, %c0_i32, %c0_i32_0 : i32, i32, i32
  }
  func.func @transform_9(%arg0: i32, %arg1: i32) -> (i32, i32, i32) {
    %c0_i32 = arith.constant 0 : i32
    %c0_i32_0 = arith.constant 0 : i32
    %c0_i32_1 = arith.constant 0 : i32
    return %arg1, %c0_i32, %c0_i32_0 : i32, i32, i32
  }
  func.func @transform_10(%arg0: i32, %arg1: i32) -> (i32, i32, i32) {
    %c0_i32 = arith.constant 0 : i32
    %c0_i32_0 = arith.constant 0 : i32
    %c0_i32_1 = arith.constant 0 : i32
    return %arg1, %c0_i32, %c0_i32_0 : i32, i32, i32
  }
  func.func @transform_11(%arg0: i32, %arg1: i32) -> (i32, i32, i32) {
    %c0_i32 = arith.constant 0 : i32
    %c0_i32_0 = arith.constant 0 : i32
    %c0_i32_1 = arith.constant 0 : i32
    return %arg1, %c0_i32, %c0_i32_0 : i32, i32, i32
  }
  func.func @transform_12(%arg0: i32, %arg1: i32) -> (i32, i32, i32) {
    %c0_i32 = arith.constant 0 : i32
    %c0_i32_0 = arith.constant 0 : i32
    %c0_i32_1 = arith.constant 0 : i32
    return %arg1, %c0_i32, %c0_i32_0 : i32, i32, i32
  }
  func.func @transform_13(%arg0: i32, %arg1: i32) -> (i32, i32, i32) {
    %c0_i32 = arith.constant 0 : i32
    %c0_i32_0 = arith.constant 0 : i32
    %c0_i32_1 = arith.constant 0 : i32
    return %arg0, %c0_i32, %c0_i32_0 : i32, i32, i32
  }
}

module attributes {stable_mosaic.version = 11 : i64} {
  func.func @_enc_head_kernel(%arg0: i32, %arg1: memref<1x1x32xf32, #tpu.memory_space<vmem>>, %arg2: memref<1x32xf32, #tpu.memory_space<vmem>>, %arg3: memref<1x32xf32, #tpu.memory_space<vmem>>, %arg4: memref<32x2048xf32, #tpu.memory_space<vmem>>, %arg5: memref<1x2048xf32, #tpu.memory_space<vmem>>, %arg6: memref<2048x32xf32, #tpu.memory_space<vmem>>, %arg7: memref<1x32xf32, #tpu.memory_space<vmem>>, %arg8: memref<1x1x32xf32, #tpu.memory_space<vmem>>, %arg9: memref<1x17x32xf32, #tpu.memory_space<vmem>>, %arg10: memref<1x17x32xf32, #tpu.memory_space<vmem>>) attributes {dimension_semantics = [#tpu.dimension_semantics<parallel>], iteration_bounds = array<i64: 2>, scalar_prefetch = 0 : i64, scratch_operands = 0 : i64, tpu.core_type = #tpu.core_type<tc>, window_params = [{transform_indices = @transform_0, window_bounds = array<i64: 1, 1, 32>}, {pipeline_mode = #tpu.pipeline_mode<synchronous>, transform_indices = @transform_1, window_bounds = array<i64: 1, 32>}, {pipeline_mode = #tpu.pipeline_mode<synchronous>, transform_indices = @transform_2, window_bounds = array<i64: 1, 32>}, {pipeline_mode = #tpu.pipeline_mode<synchronous>, transform_indices = @transform_3, window_bounds = array<i64: 32, 2048>}, {pipeline_mode = #tpu.pipeline_mode<synchronous>, transform_indices = @transform_4, window_bounds = array<i64: 1, 2048>}, {pipeline_mode = #tpu.pipeline_mode<synchronous>, transform_indices = @transform_5, window_bounds = array<i64: 2048, 32>}, {pipeline_mode = #tpu.pipeline_mode<synchronous>, transform_indices = @transform_6, window_bounds = array<i64: 1, 32>}, {pipeline_mode = #tpu.pipeline_mode<synchronous>, transform_indices = @transform_7, window_bounds = array<i64: 1, 1, 32>}, {pipeline_mode = #tpu.pipeline_mode<synchronous>, transform_indices = @transform_8, window_bounds = array<i64: 1, 17, 32>}, {transform_indices = @transform_9, window_bounds = array<i64: 1, 17, 32>}]} {
    %c0 = arith.constant 0 : index
    %c0_0 = arith.constant 0 : index
    %c0_1 = arith.constant 0 : index
    %0 = vector.load %arg1[%c0, %c0_0, %c0_1] : memref<1x1x32xf32, #tpu.memory_space<vmem>>, vector<1x1x32xf32>
    %1 = vector.shape_cast %0 : vector<1x1x32xf32> to vector<1x32xf32>
    %c0_2 = arith.constant 0 : index
    %c0_3 = arith.constant 0 : index
    %2 = vector.load %arg2[%c0_2, %c0_3] : memref<1x32xf32, #tpu.memory_space<vmem>>, vector<1x32xf32>
    %c0_4 = arith.constant 0 : index
    %c0_5 = arith.constant 0 : index
    %3 = vector.load %arg3[%c0_4, %c0_5] : memref<1x32xf32, #tpu.memory_space<vmem>>, vector<1x32xf32>
    %cst = arith.constant dense<0.000000e+00> : vector<1xf32>
    %4 = vector.multi_reduction <add>, %1, %cst [1] : vector<1x32xf32> to vector<1xf32>
    %5 = vector.shape_cast %4 : vector<1xf32> to vector<1x1xf32>
    %cst_6 = arith.constant 3.200000e+01 : f32
    %6 = vector.broadcast %cst_6 : f32 to vector<1x1xf32>
    %7 = arith.divf %5, %6 : vector<1x1xf32>
    %8 = vector.broadcast %7 : vector<1x1xf32> to vector<1x32xf32>
    %9 = arith.subf %1, %8 : vector<1x32xf32>
    %10 = arith.mulf %9, %9 : vector<1x32xf32>
    %cst_7 = arith.constant dense<0.000000e+00> : vector<1xf32>
    %11 = vector.multi_reduction <add>, %10, %cst_7 [1] : vector<1x32xf32> to vector<1xf32>
    %12 = vector.shape_cast %11 : vector<1xf32> to vector<1x1xf32>
    %cst_8 = arith.constant 3.200000e+01 : f32
    %13 = vector.broadcast %cst_8 : f32 to vector<1x1xf32>
    %14 = arith.divf %12, %13 : vector<1x1xf32>
    %cst_9 = arith.constant 9.99999974E-6 : f32
    %15 = vector.broadcast %cst_9 : f32 to vector<1x1xf32>
    %16 = arith.addf %14, %15 : vector<1x1xf32>
    %17 = math.rsqrt %16 : vector<1x1xf32>
    %18 = vector.broadcast %17 : vector<1x1xf32> to vector<1x32xf32>
    %19 = arith.mulf %9, %18 : vector<1x32xf32>
    %20 = arith.mulf %19, %2 : vector<1x32xf32>
    %21 = arith.addf %20, %3 : vector<1x32xf32>
    %c0_10 = arith.constant 0 : index
    %c0_11 = arith.constant 0 : index
    %22 = vector.load %arg4[%c0_10, %c0_11] : memref<32x2048xf32, #tpu.memory_space<vmem>>, vector<32x2048xf32>
    %cst_12 = arith.constant dense<0.000000e+00> : vector<1x2048xf32>
    %23 = tpu.matmul %21, %22, %cst_12 {dimension_numbers = #tpu.dot_dimension_numbers<[1], [0], [0], [1], [0, 0, 1, 1], [], []>} : vector<1x32xf32>, vector<32x2048xf32>, vector<1x2048xf32> -> vector<1x2048xf32>
    %c0_13 = arith.constant 0 : index
    %c0_14 = arith.constant 0 : index
    %24 = vector.load %arg5[%c0_13, %c0_14] : memref<1x2048xf32, #tpu.memory_space<vmem>>, vector<1x2048xf32>
    %25 = arith.addf %23, %24 : vector<1x2048xf32>
    %c0_15 = arith.constant 0 : index
    %c0_16 = arith.constant 0 : index
    %26 = vector.load %arg6[%c0_15, %c0_16] : memref<2048x32xf32, #tpu.memory_space<vmem>>, vector<2048x32xf32>
    %cst_17 = arith.constant dense<0.000000e+00> : vector<1x32xf32>
    %27 = tpu.matmul %25, %26, %cst_17 {dimension_numbers = #tpu.dot_dimension_numbers<[1], [0], [0], [1], [0, 0, 1, 1], [], []>} : vector<1x2048xf32>, vector<2048x32xf32>, vector<1x32xf32> -> vector<1x32xf32>
    %c0_18 = arith.constant 0 : index
    %c0_19 = arith.constant 0 : index
    %28 = vector.load %arg7[%c0_18, %c0_19] : memref<1x32xf32, #tpu.memory_space<vmem>>, vector<1x32xf32>
    %29 = arith.addf %27, %28 : vector<1x32xf32>
    %c0_20 = arith.constant 0 : index
    %c0_21 = arith.constant 0 : index
    %c0_22 = arith.constant 0 : index
    %30 = vector.load %arg9[%c0_20, %c0_21, %c0_22] : memref<1x17x32xf32, #tpu.memory_space<vmem>>, vector<1x1x32xf32>
    %31 = vector.shape_cast %30 : vector<1x1x32xf32> to vector<1x32xf32>
    %32 = arith.addf %29, %31 : vector<1x32xf32>
    %c0_23 = arith.constant 0 : index
    %c0_24 = arith.constant 0 : index
    %c0_25 = arith.constant 0 : index
    %33 = vector.load %arg10[%c0_23, %c0_24, %c0_25] : memref<1x17x32xf32, #tpu.memory_space<vmem>>, vector<1x1x32xf32>
    %34 = vector.shape_cast %33 : vector<1x1x32xf32> to vector<1x32xf32>
    %35 = vector.shape_cast %32 : vector<1x32xf32> to vector<1x1x32xf32>
    tpu.vector_store %arg10[%c0_23, %c0_24, %c0_25], %35 {strides = array<i32>} : memref<1x17x32xf32, #tpu.memory_space<vmem>>, vector<1x1x32xf32>,
    %c0_26 = arith.constant 0 : index
    %c0_27 = arith.constant 0 : index
    %c0_28 = arith.constant 0 : index
    %36 = vector.load %arg8[%c0_26, %c0_27, %c0_28] : memref<1x1x32xf32, #tpu.memory_space<vmem>>, vector<1x1x32xf32>
    %37 = vector.shape_cast %36 : vector<1x1x32xf32> to vector<1x32xf32>
    %c0_29 = arith.constant 0 : index
    %c1 = arith.constant 1 : index
    %c0_30 = arith.constant 0 : index
    %38 = vector.load %arg9[%c0_29, %c1, %c0_30] : memref<1x17x32xf32, #tpu.memory_space<vmem>>, vector<1x16x32xf32>
    %39 = vector.shape_cast %38 : vector<1x16x32xf32> to vector<16x32xf32>
    %40 = vector.broadcast %37 : vector<1x32xf32> to vector<16x32xf32>
    %41 = arith.addf %40, %39 : vector<16x32xf32>
    %c0_31 = arith.constant 0 : index
    %c1_32 = arith.constant 1 : index
    %c0_33 = arith.constant 0 : index
    %42 = vector.load %arg10[%c0_31, %c1_32, %c0_33] : memref<1x17x32xf32, #tpu.memory_space<vmem>>, vector<1x16x32xf32>
    %43 = vector.shape_cast %42 : vector<1x16x32xf32> to vector<16x32xf32>
    %44 = vector.shape_cast %41 : vector<16x32xf32> to vector<1x16x32xf32>
    tpu.vector_store %arg10[%c0_31, %c1_32, %c0_33], %44 {strides = array<i32>} : memref<1x17x32xf32, #tpu.memory_space<vmem>>, vector<1x16x32xf32>,
    return
  }
  func.func @transform_0(%arg0: i32) -> (i32, i32, i32) {
    %c0_i32 = arith.constant 0 : i32
    %c0_i32_0 = arith.constant 0 : i32
    %c0_i32_1 = arith.constant 0 : i32
    return %arg0, %c0_i32, %c0_i32_0 : i32, i32, i32
  }
  func.func @transform_1(%arg0: i32) -> (i32, i32) {
    %c0_i32 = arith.constant 0 : i32
    %c0_i32_0 = arith.constant 0 : i32
    %c0_i32_1 = arith.constant 0 : i32
    return %c0_i32, %c0_i32_0 : i32, i32
  }
  func.func @transform_2(%arg0: i32) -> (i32, i32) {
    %c0_i32 = arith.constant 0 : i32
    %c0_i32_0 = arith.constant 0 : i32
    %c0_i32_1 = arith.constant 0 : i32
    return %c0_i32, %c0_i32_0 : i32, i32
  }
  func.func @transform_3(%arg0: i32) -> (i32, i32) {
    %c0_i32 = arith.constant 0 : i32
    %c0_i32_0 = arith.constant 0 : i32
    %c0_i32_1 = arith.constant 0 : i32
    return %c0_i32, %c0_i32_0 : i32, i32
  }
  func.func @transform_4(%arg0: i32) -> (i32, i32) {
    %c0_i32 = arith.constant 0 : i32
    %c0_i32_0 = arith.constant 0 : i32
    %c0_i32_1 = arith.constant 0 : i32
    return %c0_i32, %c0_i32_0 : i32, i32
  }
  func.func @transform_5(%arg0: i32) -> (i32, i32) {
    %c0_i32 = arith.constant 0 : i32
    %c0_i32_0 = arith.constant 0 : i32
    %c0_i32_1 = arith.constant 0 : i32
    return %c0_i32, %c0_i32_0 : i32, i32
  }
  func.func @transform_6(%arg0: i32) -> (i32, i32) {
    %c0_i32 = arith.constant 0 : i32
    %c0_i32_0 = arith.constant 0 : i32
    %c0_i32_1 = arith.constant 0 : i32
    return %c0_i32, %c0_i32_0 : i32, i32
  }
  func.func @transform_7(%arg0: i32) -> (i32, i32, i32) {
    %c0_i32 = arith.constant 0 : i32
    %c0_i32_0 = arith.constant 0 : i32
    %c0_i32_1 = arith.constant 0 : i32
    %c0_i32_2 = arith.constant 0 : i32
    return %c0_i32, %c0_i32_0, %c0_i32_1 : i32, i32, i32
  }
  func.func @transform_8(%arg0: i32) -> (i32, i32, i32) {
    %c0_i32 = arith.constant 0 : i32
    %c0_i32_0 = arith.constant 0 : i32
    %c0_i32_1 = arith.constant 0 : i32
    %c0_i32_2 = arith.constant 0 : i32
    return %c0_i32, %c0_i32_0, %c0_i32_1 : i32, i32, i32
  }
  func.func @transform_9(%arg0: i32) -> (i32, i32, i32) {
    %c0_i32 = arith.constant 0 : i32
    %c0_i32_0 = arith.constant 0 : i32
    %c0_i32_1 = arith.constant 0 : i32
    return %arg0, %c0_i32, %c0_i32_0 : i32, i32, i32
  }
}

module attributes {stable_mosaic.version = 11 : i64} {
  func.func @_dec_head_kernel(%arg0: i32, %arg1: memref<1x17x32xf32, #tpu.memory_space<vmem>>, %arg2: memref<1x32xf32, #tpu.memory_space<vmem>>, %arg3: memref<1x32xf32, #tpu.memory_space<vmem>>, %arg4: memref<32x16xf32, #tpu.memory_space<vmem>>, %arg5: memref<1x16xf32, #tpu.memory_space<vmem>>, %arg6: memref<1x16x16xf32, #tpu.memory_space<vmem>>, %arg7: memref<1x16x16xf32, #tpu.memory_space<vmem>>, %arg8: memref<1x1x128xf32, #tpu.memory_space<vmem>>) attributes {dimension_semantics = [#tpu.dimension_semantics<parallel>], iteration_bounds = array<i64: 2>, scalar_prefetch = 0 : i64, scratch_operands = 0 : i64, tpu.core_type = #tpu.core_type<tc>, window_params = [{transform_indices = @transform_0, window_bounds = array<i64: 1, 17, 32>}, {pipeline_mode = #tpu.pipeline_mode<synchronous>, transform_indices = @transform_1, window_bounds = array<i64: 1, 32>}, {pipeline_mode = #tpu.pipeline_mode<synchronous>, transform_indices = @transform_2, window_bounds = array<i64: 1, 32>}, {pipeline_mode = #tpu.pipeline_mode<synchronous>, transform_indices = @transform_3, window_bounds = array<i64: 32, 16>}, {pipeline_mode = #tpu.pipeline_mode<synchronous>, transform_indices = @transform_4, window_bounds = array<i64: 1, 16>}, {transform_indices = @transform_5, window_bounds = array<i64: 1, 16, 16>}, {transform_indices = @transform_6, window_bounds = array<i64: 1, 16, 16>}, {transform_indices = @transform_7, window_bounds = array<i64: 1, 1, 128>}]} {
    %c0 = arith.constant 0 : index
    %c0_0 = arith.constant 0 : index
    %c0_1 = arith.constant 0 : index
    %0 = vector.load %arg1[%c0, %c0_0, %c0_1] : memref<1x17x32xf32, #tpu.memory_space<vmem>>, vector<1x17x32xf32>
    %1 = vector.shape_cast %0 : vector<1x17x32xf32> to vector<17x32xf32>
    %2 = vector.extract_strided_slice %1 {offsets = [1, 0], sizes = [16, 32], strides = [1, 1]} : vector<17x32xf32> to vector<16x32xf32>
    %c0_2 = arith.constant 0 : index
    %c0_3 = arith.constant 0 : index
    %3 = vector.load %arg2[%c0_2, %c0_3] : memref<1x32xf32, #tpu.memory_space<vmem>>, vector<1x32xf32>
    %c0_4 = arith.constant 0 : index
    %c0_5 = arith.constant 0 : index
    %4 = vector.load %arg3[%c0_4, %c0_5] : memref<1x32xf32, #tpu.memory_space<vmem>>, vector<1x32xf32>
    %cst = arith.constant dense<0.000000e+00> : vector<16xf32>
    %5 = vector.multi_reduction <add>, %2, %cst [1] : vector<16x32xf32> to vector<16xf32>
    %6 = vector.shape_cast %5 : vector<16xf32> to vector<16x1xf32>
    %cst_6 = arith.constant 3.200000e+01 : f32
    %7 = vector.broadcast %cst_6 : f32 to vector<16x1xf32>
    %8 = arith.divf %6, %7 : vector<16x1xf32>
    %9 = vector.broadcast %8 : vector<16x1xf32> to vector<16x32xf32>
    %10 = arith.subf %2, %9 : vector<16x32xf32>
    %11 = arith.mulf %10, %10 : vector<16x32xf32>
    %cst_7 = arith.constant dense<0.000000e+00> : vector<16xf32>
    %12 = vector.multi_reduction <add>, %11, %cst_7 [1] : vector<16x32xf32> to vector<16xf32>
    %13 = vector.shape_cast %12 : vector<16xf32> to vector<16x1xf32>
    %cst_8 = arith.constant 3.200000e+01 : f32
    %14 = vector.broadcast %cst_8 : f32 to vector<16x1xf32>
    %15 = arith.divf %13, %14 : vector<16x1xf32>
    %cst_9 = arith.constant 9.99999974E-6 : f32
    %16 = vector.broadcast %cst_9 : f32 to vector<16x1xf32>
    %17 = arith.addf %15, %16 : vector<16x1xf32>
    %18 = math.rsqrt %17 : vector<16x1xf32>
    %19 = vector.broadcast %18 : vector<16x1xf32> to vector<16x32xf32>
    %20 = arith.mulf %10, %19 : vector<16x32xf32>
    %21 = vector.broadcast %3 : vector<1x32xf32> to vector<16x32xf32>
    %22 = arith.mulf %20, %21 : vector<16x32xf32>
    %23 = vector.broadcast %4 : vector<1x32xf32> to vector<16x32xf32>
    %24 = arith.addf %22, %23 : vector<16x32xf32>
    %c0_10 = arith.constant 0 : index
    %c0_11 = arith.constant 0 : index
    %25 = vector.load %arg4[%c0_10, %c0_11] : memref<32x16xf32, #tpu.memory_space<vmem>>, vector<32x16xf32>
    %cst_12 = arith.constant dense<0.000000e+00> : vector<16x16xf32>
    %26 = tpu.matmul %24, %25, %cst_12 {dimension_numbers = #tpu.dot_dimension_numbers<[1], [0], [0], [1], [0, 0, 1, 1], [], []>} : vector<16x32xf32>, vector<32x16xf32>, vector<16x16xf32> -> vector<16x16xf32>
    %c0_13 = arith.constant 0 : index
    %c0_14 = arith.constant 0 : index
    %27 = vector.load %arg5[%c0_13, %c0_14] : memref<1x16xf32, #tpu.memory_space<vmem>>, vector<1x16xf32>
    %28 = vector.broadcast %27 : vector<1x16xf32> to vector<16x16xf32>
    %29 = arith.addf %26, %28 : vector<16x16xf32>
    %c0_15 = arith.constant 0 : index
    %c0_16 = arith.constant 0 : index
    %c0_17 = arith.constant 0 : index
    %30 = vector.load %arg7[%c0_15, %c0_16, %c0_17] : memref<1x16x16xf32, #tpu.memory_space<vmem>>, vector<1x16x16xf32>
    %31 = vector.shape_cast %30 : vector<1x16x16xf32> to vector<16x16xf32>
    %32 = vector.shape_cast %29 : vector<16x16xf32> to vector<1x16x16xf32>
    tpu.vector_store %arg7[%c0_15, %c0_16, %c0_17], %32 {strides = array<i32>} : memref<1x16x16xf32, #tpu.memory_space<vmem>>, vector<1x16x16xf32>,
    %c0_18 = arith.constant 0 : index
    %c0_19 = arith.constant 0 : index
    %c0_20 = arith.constant 0 : index
    %33 = vector.load %arg6[%c0_18, %c0_19, %c0_20] : memref<1x16x16xf32, #tpu.memory_space<vmem>>, vector<1x16x16xf32>
    %34 = vector.shape_cast %33 : vector<1x16x16xf32> to vector<16x16xf32>
    %35 = arith.subf %29, %34 : vector<16x16xf32>
    %36 = arith.mulf %35, %35 : vector<16x16xf32>
    %cst_21 = arith.constant dense<0.000000e+00> : vector<16xf32>
    %37 = vector.multi_reduction <add>, %36, %cst_21 [1] : vector<16x16xf32> to vector<16xf32>
    %38 = vector.shape_cast %37 : vector<16xf32> to vector<16x1xf32>
    %cst_22 = arith.constant dense<0.000000e+00> : vector<1xf32>
    %39 = vector.multi_reduction <add>, %38, %cst_22 [0] : vector<16x1xf32> to vector<1xf32>
    %40 = vector.shape_cast %39 : vector<1xf32> to vector<1x1xf32>
    %cst_23 = arith.constant 3.906250e-03 : f32
    %41 = vector.broadcast %cst_23 : f32 to vector<1x1xf32>
    %42 = arith.mulf %40, %41 : vector<1x1xf32>
    %43 = vector.shape_cast %42 : vector<1x1xf32> to vector<1x1xf32>
    %44 = vector.broadcast %43 : vector<1x1xf32> to vector<1x128xf32>
    %c0_24 = arith.constant 0 : index
    %c0_25 = arith.constant 0 : index
    %c0_26 = arith.constant 0 : index
    %45 = vector.load %arg8[%c0_24, %c0_25, %c0_26] : memref<1x1x128xf32, #tpu.memory_space<vmem>>, vector<1x1x128xf32>
    %46 = vector.shape_cast %45 : vector<1x1x128xf32> to vector<1x128xf32>
    %47 = vector.shape_cast %44 : vector<1x128xf32> to vector<1x1x128xf32>
    tpu.vector_store %arg8[%c0_24, %c0_25, %c0_26], %47 {strides = array<i32>} : memref<1x1x128xf32, #tpu.memory_space<vmem>>, vector<1x1x128xf32>,
    return
  }
  func.func @transform_0(%arg0: i32) -> (i32, i32, i32) {
    %c0_i32 = arith.constant 0 : i32
    %c0_i32_0 = arith.constant 0 : i32
    %c0_i32_1 = arith.constant 0 : i32
    return %arg0, %c0_i32, %c0_i32_0 : i32, i32, i32
  }
  func.func @transform_1(%arg0: i32) -> (i32, i32) {
    %c0_i32 = arith.constant 0 : i32
    %c0_i32_0 = arith.constant 0 : i32
    %c0_i32_1 = arith.constant 0 : i32
    return %c0_i32, %c0_i32_0 : i32, i32
  }
  func.func @transform_2(%arg0: i32) -> (i32, i32) {
    %c0_i32 = arith.constant 0 : i32
    %c0_i32_0 = arith.constant 0 : i32
    %c0_i32_1 = arith.constant 0 : i32
    return %c0_i32, %c0_i32_0 : i32, i32
  }
  func.func @transform_3(%arg0: i32) -> (i32, i32) {
    %c0_i32 = arith.constant 0 : i32
    %c0_i32_0 = arith.constant 0 : i32
    %c0_i32_1 = arith.constant 0 : i32
    return %c0_i32, %c0_i32_0 : i32, i32
  }
  func.func @transform_4(%arg0: i32) -> (i32, i32) {
    %c0_i32 = arith.constant 0 : i32
    %c0_i32_0 = arith.constant 0 : i32
    %c0_i32_1 = arith.constant 0 : i32
    return %c0_i32, %c0_i32_0 : i32, i32
  }
  func.func @transform_5(%arg0: i32) -> (i32, i32, i32) {
    %c0_i32 = arith.constant 0 : i32
    %c0_i32_0 = arith.constant 0 : i32
    %c0_i32_1 = arith.constant 0 : i32
    return %arg0, %c0_i32, %c0_i32_0 : i32, i32, i32
  }
  func.func @transform_6(%arg0: i32) -> (i32, i32, i32) {
    %c0_i32 = arith.constant 0 : i32
    %c0_i32_0 = arith.constant 0 : i32
    %c0_i32_1 = arith.constant 0 : i32
    return %arg0, %c0_i32, %c0_i32_0 : i32, i32, i32
  }
  func.func @transform_7(%arg0: i32) -> (i32, i32, i32) {
    %c0_i32 = arith.constant 0 : i32
    %c0_i32_0 = arith.constant 0 : i32
    %c0_i32_1 = arith.constant 0 : i32
    return %arg0, %c0_i32, %c0_i32_0 : i32, i32, i32
  }
}

</mosaic_0001>

<bundles_post_ra>
// kernel: forward.5
= control target key start
LH: loop header
LB: loop body
LE: loop exit
PB: predicated region body
PF: predicated region fallthrough
CT: control target
= control target key end

     0   :  { %s461_s18 = smov 0   ;;  %s499_s0 = inlined_call_operand.vmem [shape: f32[2,16,16], index: 0, kind: input, shape index: {}]   ;;  %s500_s1 = inlined_call_operand.vmem [shape: f32[16,32], index: 1, kind: input, shape index: {}]   ;;  %s501_s2 = inlined_call_operand.vmem [shape: f32[1,32], index: 2, kind: input, shape index: {}]   ;;  %s502_s3 = inlined_call_operand.vmem [shape: f32[1,17,32], index: 3, kind: input, shape index: {}]   ;;  %s503_s4 = inlined_call_operand.vmem [shape: f32[1,1,32], index: 4, kind: input, shape index: {}]   ;;  %s504_s5 = inlined_call_operand.vmem [shape: f32[2,17,32], index: 5, kind: output, shape index: {}]  }
   0x1 LB: > { %s385_s19 = sadd.s32 4294967295, %s429_s18   ;;  %p389_p0 = scmp.ge.s32.totalorder %s429_s18, 1  ;;  %s429_s18 = sphi %s461_s18, %s15_s18  }
   0x2   : > { %p187_p1 = scmp.lt.s32.totalorder %s429_s18, 3 }
   0x4   : > { %p188_p2 = pnand %p389_p0, %p187_p1 }
   0x5   : > { %v227_v0 = vld [vmem:[%s500_s1] sm:$0xff] (!%p188_p2)  ;;  %v228_v1 = vld [vmem:[%s500_s1 + $0x8] sm:$0xff] (!%p188_p2)  ;;  %p215_p3 = scmp.lt.s32.totalorder (!%p188_p2), %s385_s19, 1  ;;  %vm236_vm0 = vcmask (!%p188_p2), 130048   ;;  %vm321_vm1 = vcmask (!%p188_p2), 253952   ;;  %vm327_vm2 = vcmask (!%p188_p2), 261120  }
   0x6   : > { %191 = sbr.rel (%p188_p2) target bundleno = 236 (0xec), region = 40  ;;  %v318_v2 = vld [vmem:[%s503_s4] sm:$0x1] (!%p188_p2)  ;;  %v410_v3 = vpack.c.bf16 (!%p188_p2), %v228_v1, %v227_v0  ;;  %v324_v10 = vld [vmem:[%s502_s3 + $0x9] sm:$0xff] (!%p188_p2)  ;;  %v323_v13 = vld [vmem:[%s502_s3 + $0x1] sm:$0xff] (!%p188_p2) }
   0x7   : > { %v319_v4 = vld [vmem:[%s502_s3] sm:$0x1] (!%p188_p2) }
   0x8   : > { %411 = vmatprep.subr.bf16.mxu0 (!%p188_p2), %v410_v3  ;;  %v320_v5 = vadd.f32 (!%p188_p2), %v319_v4, %v318_v2  ;;  %v393_v8 = vld [vmem:[%s501_s2] ss:$0 sm:$0xff] (!%p188_p2) }
   0x9   : > { %413 = vmatpush3.bf16.msra.mxu0 (!%p188_p2), %v410_v3 }
   0xd   : > { %s506_s19 = smov (!%p215_p3, %s385_s19), 1 }
   0xe   : > { %s398_s28 = sshll.u32 %s506_s19, 4  ;;  %s414_s29 = smul.u32 24, %s506_s19 }
   0xf   : > { %s219_s7 = scalar_lea.vmem %s499_s0, %s398_s28 }
  0x10   : > { %s224_s10 = scalar_lea.vmem %s504_s5, %s414_s29  ;;  %v225_v6 = vld [vmem:[%s219_s7] sm:$0xff]  ;;  %v226_v7 = vld [vmem:[%s219_s7 + $0x8] sm:$0xff] }
  0x11   : > { %407 = vmatprep.mubr.msk.f32.mxu0 %vm236_vm0, %v225_v6  ;;  %322 = vst.msk [vmem:[%s224_s10] sm:$0x1] %vm321_vm1, %v320_v5 }
  0x12   : > { %408 = vmatmul.mubr.msk.f32.vlgmr.msra.gmra.mrb[0].mxu0 %vm236_vm0, %v226_v7 }
  0xe5   : > { %v409_v9 = vpop.f32.mrb[0].mxu0 }
  0xe6   : > { %v315_v11 = vadd.f32 %v409_v9, %v393_v8  ;;  %v309_v12 = vpop.f32.mrb[1].mxu0 }
  0xe7   : > { %v310_v14 = vadd.f32 %v393_v8, %v309_v12 }
  0xe8   : > { %v326_v15 = vadd.f32 %v324_v10, %v315_v11 }
  0xe9   : > { %v325_v16 = vadd.f32 %v323_v13, %v310_v14 }
  0xea   : > { %329 = vst.msk [vmem:[%s224_s10 + $0x9] sm:$0xff] %vm327_vm2, %v326_v15 }
  0xeb   : > { %328 = vst.msk [vmem:[%s224_s10 + $0x1] sm:$0xff] %vm327_vm2, %v325_v16 }
  0xec PF: > { %s15_s18 = sadd.s32 1, %s429_s18  }
  0xed   : > { %p12_p4 = scmp.ge.s32.totalorder %s15_s18, 4  }
  0xef   :  { %14 = sbr.rel (!%p12_p4) target bundleno = 1 (0x1), region = 70 }

// kernel: forward.9
= control target key start
LH: loop header
LB: loop body
LE: loop exit
PB: predicated region body
PF: predicated region fallthrough
CT: control target
= control target key end

     0   :  { %13 = vsyncpa [#allocation3], 0  ;;  %s951_s0 = inlined_call_operand.vmem [shape: f32[2,17,32], index: 0, kind: input, shape index: {}]   ;;  %s952_s1 = inlined_call_operand.vmem [shape: f32[1,32], index: 1, kind: input, shape index: {}]   ;;  %s953_s2 = inlined_call_operand.vmem [shape: f32[1,32], index: 2, kind: input, shape index: {}]   ;;  %s954_s3 = inlined_call_operand.vmem [shape: f32[32,16], index: 3, kind: input, shape index: {}]   ;;  %s955_s4 = inlined_call_operand.vmem [shape: f32[1,16], index: 4, kind: input, shape index: {}]   ;;  %s956_s5 = inlined_call_operand.vmem [shape: f32[2,16,16], index: 5, kind: input, shape index: {}]   ;;  %s957_s6 = inlined_call_operand.hbm [shape: f32[2,16,16], index: 6, kind: output, shape index: {0}]   ;;  %s958_s7 = inlined_call_operand.vmem [shape: f32[2,1,128], index: 7, kind: output, shape index: {1}]  }
   0x1   :  { %15 = vsyncpa [#allocation3 + $0x1], 0  ;;  %s808_s24 = smov 0   ;;  %s810_s25 = smov 0  }
   0x2   :  { %s812_s26 = smov 0   ;;  %s814_s27 = smov 0  }
   0x3 LB: > { %s829_s28 = sadd.s32 4294967295, %s763_s27   ;;  %s608_s29 = sadd.s32 4294967294, %s763_s27   ;;  %s763_s27 = sphi %s814_s27, %s964_s27   ;;  %s759_s26 = sphi %s812_s26, %s963_s26   ;;  %s755_s25 = sphi %s810_s25, %s962_s25   ;;  %s751_s24 = sphi %s808_s24, %s961_s24  }
   0x4   : > { %s833_s30 = sadd.s32 1, %s763_s27   ;;  %s164_s8 = sadd.s32 1, %s759_s26 }
   0x5   : > { %s161_s9 = ssub.s32 %s763_s27, %s833_s30  ;;  %p174_p0 = scmp.ne.s32.totalorder %s759_s26, %s755_s25 }
   0x6   : > { %p162_p1 = scmp.eq.s32.totalorder %s161_s9, 0  ;;  %p175_p2 = scmp.eq.s32.totalorder %s829_s28, 1 }
   0x7   : > { %p180_p3 = scmp.ne.s32.totalorder %s755_s25, %s751_s24  ;;  %p181_p4 = scmp.eq.s32.totalorder %s608_s29, 1 }
   0x8   : > { %s844_s10 = scalar_select %p162_p1, %s759_s26, %s164_s8  }
   0x9   : > { %p846_p5 = por %p175_p2, %p174_p0  ;;  %p850_p6 = por %p181_p4, %p180_p3 }
   0xa   : > { %p611_p7 = scmp.ge.s32.totalorder %s763_s27, 1  ;;  %p253_p8 = scmp.lt.s32.totalorder %s763_s27, 3 }
   0xc   : > { %p254_p9 = pnand %p611_p7, %p253_p8 }
   0xd   : > { %p293_p10 = scmp.lt.s32.totalorder (!%p254_p9), %s829_s28, 1  ;;  %vm311_vm0 = vcmask (!%p254_p9), 261121   ;;  %vm319_vm1 = vcmask (!%p254_p9), 253952   ;;  %vm315_vm2 = vcmask (!%p254_p9), 261120   ;;  %v372_v21 = vld [vmem:[%s954_s3] sm:$0xff] (!%p254_p9)  ;;  %v373_v22 = vld [vmem:[%s954_s3 + $0x8] sm:$0xff] (!%p254_p9) }
   0xe   : > { %257 = sbr.rel (%p254_p9) target bundleno = 728 (0x2d8), region = 44  ;;  %v374_v23 = vld [vmem:[%s954_s3 + $0x10] sm:$0xff] (!%p254_p9)  ;;  %v645_v24 = vpack.c.bf16 (!%p254_p9), %v373_v22, %v372_v21  ;;  %v375_v25 = vld [vmem:[%s954_s3 + $0x18] sm:$0xff] (!%p254_p9)  ;;  %v616_v37 = vld [vmem:[%s952_s1] ss:$0 sm:$0xff] (!%p254_p9)  ;;  %vm386_vm3 = vcmask (!%p254_p9), 1046528  }
   0xf   : > { %v649_v26 = vpack.c.bf16 (!%p254_p9), %v375_v25, %v374_v23  ;;  %v617_v42 = vld [vmem:[%s953_s2] ss:$0 sm:$0xff] (!%p254_p9)  ;;  %s285_s18 = sand.u32 (!%p254_p9), 1, %s755_s25   ;;  %vm471_vm4 = vcmask (!%p254_p9), 130048   ;;  %s627_s9 = sshll.u32 (!%p254_p9), %s829_s28, 8 }
  0x10   : > { %646 = vmatprep.subr.bf16.mxu0 (!%p254_p9), %v645_v24  ;;  %s612_s22 = sshll.u32 (!%p254_p9), %s285_s18, 4  ;;  %v618_v55 = vld [vmem:[%s955_s4] ss:$0 sm:$0xff] (!%p254_p9)  ;;  %s906_s19 = scalar_lea.sflag (!%p254_p9), [#allocation3], %s285_s18 }
  0x11   : > { %648 = vmatpush3.bf16.msra.mxu0 (!%p254_p9), %v645_v24  ;;  %s287_s8 = scalar_lea.vmem (!%p254_p9), [#allocation2], %s612_s22 }
  0x12   : > { %650 = vmatprep.subr.bf16.mxu0 (!%p254_p9), %v649_v26 }
  0x15   : > { %s858_s13 = scalar_select %p293_p10, %s829_s28, 1  ;;  %652 = vmatpush3.bf16.msra.mxu0 %v649_v26 }
  0x17   : > { %s653_s14 = smul.u32 24, %s858_s13 }
  0x19   : > { %s297_s17 = scalar_lea.vmem %s951_s0, %s653_s14  ;;  %s512_s14 = sshll.u32 %s287_s8, 4  ;;  %s904_s14 = int_to_ptr.vmem [resolvable:$true] %s512_s14 }
  0x1a   : > { %v306_v0 = vld [vmem:[%s297_s17] sm:$0xff]  ;;  %v308_v1 = vld [vmem:[%s297_s17 + $0x10] sm:$0x1]  ;;  %v307_v2 = vld [vmem:[%s297_s17 + $0x8] sm:$0xff]  ;;  %s626_s17 = sshll.u32 %s858_s13, 4  ;;  %s701_s20 = scalar_lea.vmem %s904_s14, 256 }
  0x1b   : > { %v312_v3 = vsel %vm311_vm0, %v306_v0, 0.0  ;;  %v320_v4 = vsel %vm319_vm1, %v308_v1, 0.0  ;;  %v316_v5 = vsel %vm315_vm2, %v307_v2, 0.0  ;;  %s302_s21 = scalar_lea.vmem %s956_s5, %s626_s17  ;;  %s902_s17 = scalar_lea.hbm %s957_s6, %s627_s9 }
  0x1c   : > { %313 = vadd.xlane.f32.xlu0 %v312_v3  ;;  %321 = vadd.xlane.f32.xlu1 %v320_v4  ;;  %v475_v57 = vld [vmem:[%s302_s21 + $0x8] sm:$0xff]  ;;  %v474_v60 = vld [vmem:[%s302_s21] sm:$0xff]  ;;  %p702_p11 = scmp.ne.s32.totalorder %s904_s14, %s701_s20  ;;  %s765_s21 = smov [#allocation2]  }
  0x1d   : > { %s705_s28 = sshll.u32 %s765_s21, 4  ;;  %s706_s28 = int_to_ptr.vmem [resolvable:$false] %s705_s28 }
  0x1e   : > { %p703_p12 = pnand %p702_p11, %p846_p5  ;;  %s707_s22 = scalar_lea.vmem %s706_s28, 512 }
  0x1f   : > { %p708_p0 = scmp.lt.s32.totalorder %s904_s14, %s706_s28  ;;  %p709_p1 = scmp.lt.s32.totalorder %s707_s22, %s701_s20 }
  0x20   : > { %317 = vadd.xlane.f32.xlu0 %v316_v5  ;;  %p704_p13 = pneg %p703_p12 }
  0x21   : > { %p710_p2 = por %p709_p1, %p708_p0 }
  0x23   : > { %p711_p3 = pnand %p710_p2, %p704_p13 }
  0xa9   : > { %v314_v6 = vpop.xlane.xlu0 %313  ;;  %v322_v7 = vpop.xlane.xlu1 %321 }
  0xaa   : > { %v324_v8 = vmul.f32 0.03125, %v314_v6  ;;  %v326_v9 = vmul.f32 0.03125, %v322_v7 }
  0xac   : > { %v327_v10 = vsub.f32 %v306_v0, %v324_v8  ;;  %v329_v11 = vsub.f32 %v308_v1, %v326_v9 }
  0xad   : > { %v318_v12 = vpop.xlane.xlu0 %317 }
  0xae   : > { %v325_v13 = vmul.f32 0.03125, %v318_v12  ;;  %v330_v14 = vmul.f32 %v327_v10, %v327_v10  ;;  %v332_v15 = vmul.f32 %v329_v11, %v329_v11 }
  0xb0   : > { %v328_v16 = vsub.f32 %v307_v2, %v325_v13  ;;  %v333_v17 = vsel %vm311_vm0, %v330_v14, 0.0  ;;  %v339_v18 = vsel %vm319_vm1, %v332_v15, 0.0 }
  0xb1   : > { %334 = vadd.xlane.f32.xlu1 %v333_v17 }
  0xb2   : > { %v331_v19 = vmul.f32 %v328_v16, %v328_v16 }
  0xb4   : > { %v336_v20 = vsel %vm315_vm2, %v331_v19, 0.0 }
  0xb5   : > { %340 = vadd.xlane.f32.xlu1 %v339_v18  ;;  %337 = vadd.xlane.f32.xlu0 %v336_v20 }
 0x13e   : > { %v335_v27 = vpop.xlane.xlu1 %334 }
 0x13f   : > { %v342_v28 = vmul.f32 0.03125, %v335_v27 }
 0x141   : > { %v345_v29 = vadd.f32 1e-05, %v342_v28 }
 0x142   : > { %v341_v30 = vpop.xlane.xlu1 %340  ;;  %v338_v31 = vpop.xlane.xlu0 %337 }
 0x143   : > { %695 = vrsqrt.f32 %v345_v29  ;;  %v344_v32 = vmul.f32 0.03125, %v341_v30  ;;  %v343_v33 = vmul.f32 0.03125, %v338_v31 }
 0x145   : > { %v347_v34 = vadd.f32 1e-05, %v344_v32  ;;  %v346_v35 = vadd.f32 1e-05, %v343_v33 }
 0x147   : > { %697 = vrsqrt.f32 %v347_v34 }
 0x148   : > { %699 = vrsqrt.f32 %v346_v35 }
 0x14d   : > { %v696_v36 = vpop.eup %695 }
 0x14e   : > { %v351_v38 = vmul.f32 %v696_v36, %v327_v10 }
 0x150   : > { %v360_v40 = vmul.f32 %v616_v37, %v351_v38 }
 0x151   : > { %v698_v39 = vpop.eup %697 }
 0x152   : > { %v700_v41 = vpop.eup %699  ;;  %v353_v43 = vmul.f32 %v698_v39, %v329_v11  ;;  %v369_v47 = vadd.f32 %v617_v42, %v360_v40 }
 0x153   : > { %v352_v44 = vmul.f32 %v700_v41, %v328_v16 }
 0x154   : > { %v362_v45 = vmul.f32 %v616_v37, %v353_v43  ;;  %v387_v51 = vrot.slane %v369_v47, 1 }
 0x155   : > { %v361_v46 = vmul.f32 %v616_v37, %v352_v44 }
 0x156   : > { %v371_v48 = vadd.f32 %v617_v42, %v362_v45 }
 0x157   : > { %v370_v49 = vadd.f32 %v617_v42, %v361_v46 }
 0x158   : > { %v390_v50 = vrot.slane %v371_v48, 1 }
 0x159   : > { %v388_v52 = vrot.slane %v370_v49, 1 }
 0x15b   : > { %v389_v53 = vsel %vm386_vm3, %v387_v51, %v388_v52  ;;  %v391_v54 = vsel %vm386_vm3, %v388_v52, %v390_v50 }
 0x15c   : > { %642 = vmatprep.mubr.msk.f32.mxu0 %vm315_vm2, %v389_v53 }
 0x15d   : > { %643 = vmatmul.mubr.msk.f32.vlgmr.msra.gmra.mrb[0].mxu0 %vm315_vm2, %v391_v54 }
 0x230   : > { %v644_v56 = vpop.f32.mrb[0].mxu0 }
 0x231   : > { %v468_v58 = vadd.f32 %v644_v56, %v618_v55  ;;  %v462_v59 = vpop.f32.mrb[1].mxu0 }
 0x232   : > { %v463_v61 = vadd.f32 %v618_v55, %v462_v59 }
 0x233   : > { %v477_v62 = vsub.f32 %v468_v58, %v475_v57  ;;  %473 = vst.msk [vmem:[%s287_s8 + $0x8] sm:$0xff] %vm471_vm4, %v468_v58 }
 0x234   : > { %v476_v63 = vsub.f32 %v463_v61, %v474_v60  ;;  %472 = vst.msk [vmem:[%s287_s8] sm:$0xff] %vm471_vm4, %v463_v61 }
 0x235   : > { %v479_v0 = vmul.f32 %v477_v62, %v477_v62 }
 0x236   : > { %v478_v1 = vmul.f32 %v476_v63, %v476_v63 }
 0x237   : > { %v483_v2 = vsel %vm471_vm4, %v479_v0, 0.0 }
 0x238   : > { %484 = vadd.xlane.f32.xlu1 %v483_v2  ;;  %v480_v3 = vsel %vm471_vm4, %v478_v1, 0.0 }
 0x239   : > { %481 = vadd.xlane.f32.xlu0 %v480_v3 }
 0x23a   : > { %714 = shalt.err (!%p711_p3)
}
 0x23b   : > { %s715_s18 = scalar_lea.hbm %s902_s17, 256  ;;  %s719_s8 = scalar_lea.hbm %s957_s6, 512 }
 0x23c   : > { %p716_p4 = scmp.ne.s32.totalorder %s902_s17, %s715_s18  ;;  %p720_p9 = scmp.lt.u32.totalorder %s902_s17, %s957_s6 }
 0x23d   : > { %p721_p10 = scmp.lt.u32.totalorder %s719_s8, %s715_s18  ;;  %p723_p12 = scmp.lt.u32.totalorder %s715_s18, %s902_s17 }
 0x23e   : > { %p717_p7 = pnand %p716_p4, %p846_p5 }
 0x23f   : > { %p722_p11 = por %p721_p10, %p720_p9 }
 0x240   : > { %p718_p8 = pneg %p717_p7 }
 0x241   : > { %p724_p13 = por %p723_p12, %p722_p11 }
 0x243   : > { %p725_p0 = pnand %p724_p13, %p718_p8 }
 0x245   : > { %728 = shalt.err (!%p725_p0)
}
 0x246   : > { %s766_s16 = smov 128   ;;  %s767_s20 = smov 8  }
 0x247   : > { %654 = dma.vmem_to_hbm [thread:$0]  (%p846_p5), %s904_s14, 256, %s902_s17, %s906_s19, %s766_s16, %s766_s16, %s767_s20  }
 0x248   : > { %s305_s22 = scalar_lea.vmem %s958_s7, %s858_s13 }
 0x2c5   : > { %v485_v4 = vpop.xlane.xlu1 %484 }
 0x2c6   : > { %v482_v5 = vpop.xlane.xlu0 %481 }
 0x2c7   : > { %v486_v6 = vadd.f32 %v485_v4, %v482_v5 }
 0x2c9   : > { %v487_v7 = vrot.slane %v486_v6, 4 }
 0x2cb   : > { %v488_v8 = vadd.f32 %v487_v7, %v486_v6 }
 0x2cd   : > { %v489_v9 = vrot.slane %v488_v8, 2 }
 0x2cf   : > { %v490_v10 = vadd.f32 %v489_v9, %v488_v8 }
 0x2d1   : > { %v491_v11 = vrot.slane %v490_v10, 1 }
 0x2d3   : > { %v492_v12 = vadd.f32 %v491_v11, %v490_v10 }
 0x2d5   : > { %v493_v13 = vmul.f32 0.00390625, %v492_v12 }
 0x2d7   : > { %494 = vst [vmem:[%s305_s22] sm:$0x1] %v493_v13 }
 0x2d8 PF: > { %p660_p5 = scmp.ge.s32.totalorder %s763_s27, 2  ;;  %s530_s11 = sand.u32 1, %s751_s24  }
 0x2d9   : > { %s531_s14 = scalar_lea.sflag [#allocation3], %s530_s11 }
 0x2da   : > { %p657_p1 = pnand %p660_p5, %p850_p6 }
 0x2dc   : > { %746 = dma.done.wait (!%p657_p1), %s531_s14, 256  }
 0x2dd   : > { %748 = vsyncadd (!%p657_p1), %s531_s14, 4294967040  ;;  %p18_p2 = scmp.ge.s32.totalorder %s833_s30, 4   ;;  %s961_s24 = smov %s755_s25 }
 0x2de   : > { %s962_s25 = smov %s759_s26  ;;  %s963_s26 = smov %s844_s10 }
 0x2df   : > { %s964_s27 = smov %s833_s30  ;;  %20 = sbr.rel (!%p18_p2) target bundleno = 3 (0x3), region = 94 }
 0x2e6   :  { %542 = vsyncpa [#allocation3], 1 }
 0x2e7   :  { %544 = vsyncpa [#allocation3 + $0x1], 1 }

// kernel: forward.7
= control target key start
LH: loop header
LB: loop body
LE: loop exit
PB: predicated region body
PF: predicated region fallthrough
CT: control target
= control target key end

     0   :  { %s2640_s30 = smov 0   ;;  %s3771_s0 = inlined_call_operand.vmem [shape: f32[2,1,32], index: 0, kind: input, shape index: {}]   ;;  %s3772_s1 = inlined_call_operand.vmem [shape: f32[1,32], index: 1, kind: input, shape index: {}]   ;;  %s3773_s2 = inlined_call_operand.vmem [shape: f32[1,32], index: 2, kind: input, shape index: {}]   ;;  %s3774_s3 = inlined_call_operand.vmem [shape: f32[32,2048], index: 3, kind: input, shape index: {}]   ;;  %s3775_s4 = inlined_call_operand.vmem [shape: f32[1,2048], index: 4, kind: input, shape index: {}]   ;;  %s3776_s5 = inlined_call_operand.vmem [shape: f32[2048,32], index: 5, kind: input, shape index: {}]   ;;  %s3777_s6 = inlined_call_operand.vmem [shape: f32[1,32], index: 6, kind: input, shape index: {}]   ;;  %s3778_s7 = inlined_call_operand.vmem [shape: f32[1,1,32], index: 7, kind: input, shape index: {}]   ;;  %s3779_s8 = inlined_call_operand.vmem [shape: f32[1,17,32], index: 8, kind: input, shape index: {}]   ;;  %s3780_s9 = inlined_call_operand.vmem [shape: f32[2,17,32], index: 9, kind: output, shape index: {}]  }
   0x1 LB: > { %s1952_s10 = sadd.s32 4294967295, %s2587_s30   ;;  %p1956_p0 = scmp.ge.s32.totalorder %s2587_s30, 1  ;;  %s2587_s30 = sphi %s2640_s30, %s19_s30  }
   0x2   : > { %p285_p1 = scmp.lt.s32.totalorder %s2587_s30, 3 }
   0x4   : > { %p286_p2 = pnand %p1956_p0, %p285_p1 }
   0x5   : > { %p319_p3 = scmp.lt.s32.totalorder (!%p286_p2), %s1952_s10, 1  ;;  %v1966_v0 = vld [vmem:[%s3778_s7] ss:$0 sm:$0xff] (!%p286_p2)  ;;  %v1888_v1 = vld [vmem:[%s3779_s8 + $0x1] sm:$0xff] (!%p286_p2)  ;;  %v1889_v2 = vld [vmem:[%s3779_s8 + $0x9] sm:$0xff] (!%p286_p2)  ;;  %vm330_vm0 = vcmask (!%p286_p2), 253952  }
   0x6   : > { %289 = sbr.rel (%p286_p2) target bundleno = 863 (0x35f), region = 56  ;;  %v1896_v3 = vadd.f32 (!%p286_p2), %v1966_v0, %v1888_v1  ;;  %v1897_v4 = vadd.f32 (!%p286_p2), %v1966_v0, %v1889_v2  ;;  %vm495_vm1 = vcmask (!%p286_p2), 261120   ;;  %v348_v12 = vld [vmem:[%s3774_s3 + $0x8] sm:$0xff] (!%p286_p2)  ;;  %v350_v14 = vld [vmem:[%s3774_s3 + $0x18] sm:$0xff] (!%p286_p2)  ;;  %v347_v17 = vld [vmem:[%s3774_s3] sm:$0xff] (!%p286_p2)  ;;  %v2589_v42 = vmov (!%p286_p2), 0.0  }
   0x7   : > { %v364_v13 = vld [vmem:[%s3774_s3 + $0x88] sm:$0xff] (!%p286_p2)  ;;  %v366_v16 = vld [vmem:[%s3774_s3 + $0x98] sm:$0xff] (!%p286_p2)  ;;  %v363_v18 = vld [vmem:[%s3774_s3 + $0x80] sm:$0xff] (!%p286_p2)  ;;  %563 = vmatprep.mubr.f32.mxu0 (!%p286_p2), %v2589_v42  ;;  %634 = vmatprep.mubr.f32.mxu1 (!%p286_p2), %v2589_v42 }
   0x8   : > { %v2249_v15 = vpack.c.bf16 (!%p286_p2), %v364_v13, %v348_v12  ;;  %v2257_v19 = vpack.c.bf16 (!%p286_p2), %v366_v16, %v350_v14  ;;  %v2251_v20 = vpack.c.bf16 (!%p286_p2), %v363_v18, %v347_v17  ;;  %v349_v21 = vld [vmem:[%s3774_s3 + $0x10] sm:$0xff] (!%p286_p2)  ;;  %v380_v24 = vld [vmem:[%s3774_s3 + $0x108] sm:$0xff] (!%p286_p2)  ;;  %v382_v26 = vld [vmem:[%s3774_s3 + $0x118] sm:$0xff] (!%p286_p2) }
   0x9   : > { %v365_v22 = vld [vmem:[%s3774_s3 + $0x90] sm:$0xff] (!%p286_p2)  ;;  %v396_v25 = vld [vmem:[%s3774_s3 + $0x188] sm:$0xff] (!%p286_p2)  ;;  %v398_v28 = vld [vmem:[%s3774_s3 + $0x198] sm:$0xff] (!%p286_p2) }
   0xa   : > { %2250 = vmatprep.subr.bf16.mxu0 (!%p286_p2), %v2249_v15  ;;  %v2259_v23 = vpack.c.bf16 (!%p286_p2), %v365_v22, %v349_v21  ;;  %2258 = vmatprep.subr.bf16.mxu1 (!%p286_p2), %v2257_v19  ;;  %v2253_v27 = vpack.c.bf16 (!%p286_p2), %v396_v25, %v380_v24  ;;  %v379_v29 = vld [vmem:[%s3774_s3 + $0x100] sm:$0xff] (!%p286_p2)  ;;  %v2261_v31 = vpack.c.bf16 (!%p286_p2), %v398_v28, %v382_v26  ;;  %v381_v33 = vld [vmem:[%s3774_s3 + $0x110] sm:$0xff] (!%p286_p2)  ;;  %v352_v36 = vld [vmem:[%s3774_s3 + $0x28] sm:$0xff] (!%p286_p2) }
   0xb   : > { %2252 = vmatpush1.bf16.msra.mxu0 (!%p286_p2), %v2251_v20  ;;  %v395_v30 = vld [vmem:[%s3774_s3 + $0x180] sm:$0xff] (!%p286_p2)  ;;  %v397_v34 = vld [vmem:[%s3774_s3 + $0x190] sm:$0xff] (!%p286_p2)  ;;  %v368_v37 = vld [vmem:[%s3774_s3 + $0xa8] sm:$0xff] (!%p286_p2) }
   0xc   : > { %2260 = vmatpush1.bf16.msra.mxu1 (!%p286_p2), %v2259_v23  ;;  %v2255_v32 = vpack.c.bf16 (!%p286_p2), %v395_v30, %v379_v29  ;;  %2254 = vmatprep.subr.bf16.mxu0 (!%p286_p2), %v2253_v27  ;;  %v2263_v35 = vpack.c.bf16 (!%p286_p2), %v397_v34, %v381_v33  ;;  %v354_v38 = vld [vmem:[%s3774_s3 + $0x38] sm:$0xff] (!%p286_p2)  ;;  %v2265_v39 = vpack.c.bf16 (!%p286_p2), %v368_v37, %v352_v36  ;;  %v328_v46 = vld [vmem:[%s3772_s1] sm:$0x1] (!%p286_p2)  ;;  %v353_v52 = vld [vmem:[%s3774_s3 + $0x30] sm:$0xff] (!%p286_p2) }
   0xd   : > { %s3782_s10 = smov (!%p319_p3, %s1952_s10), 1  ;;  %2262 = vmatprep.subr.bf16.mxu1 %v2261_v31  ;;  %v370_v40 = vld [vmem:[%s3774_s3 + $0xb8] sm:$0xff]  ;;  %v329_v48 = vld [vmem:[%s3773_s2] sm:$0x1]  ;;  %v369_v53 = vld [vmem:[%s3774_s3 + $0xb0] sm:$0xff] }
   0xe   : > { %s321_s19 = scalar_lea.vmem %s3771_s0, %s3782_s10  ;;  %s2569_s20 = smul.u32 24, %s3782_s10  ;;  %v2273_v41 = vpack.c.bf16 %v370_v40, %v354_v38  ;;  %v351_v49 = vld [vmem:[%s3774_s3 + $0x20] sm:$0xff]  ;;  %v384_v54 = vld [vmem:[%s3774_s3 + $0x128] sm:$0xff]  ;;  %v386_v56 = vld [vmem:[%s3774_s3 + $0x138] sm:$0xff]  ;;  %v2275_v60 = vpack.c.bf16 %v369_v53, %v353_v52 }
   0xf   : > { %v327_v5 = vld [vmem:[%s321_s19] sm:$0x1]  ;;  %2256 = vmatpush1.bf16.msra.mxu0 %v2255_v32  ;;  %v400_v55 = vld [vmem:[%s3774_s3 + $0x1a8] sm:$0xff]  ;;  %v402_v57 = vld [vmem:[%s3774_s3 + $0x1b8] sm:$0xff] }
  0x10   : > { %s2663_s23 = scalar_lea.vmem %s3780_s9, %s2569_s20  ;;  %v331_v6 = vsel %vm330_vm0, %v327_v5, 0.0  ;;  %2264 = vmatpush1.bf16.msra.mxu1 %v2263_v35  ;;  %2266 = vmatprep.subr.bf16.mxu0 %v2265_v39  ;;  %v367_v50 = vld [vmem:[%s3774_s3 + $0xa0] sm:$0xff]  ;;  %v2269_v0 = vpack.c.bf16 %v400_v55, %v384_v54  ;;  %v2277_v1 = vpack.c.bf16 %v402_v57, %v386_v56  ;;  %v385_v2 = vld [vmem:[%s3774_s3 + $0x130] sm:$0xff]  ;;  %v388_v16 = vld [vmem:[%s3774_s3 + $0x148] sm:$0xff] }
  0x11   : > { %1898 = vst.msk [vmem:[%s2663_s23 + $0x1] sm:$0xff] %vm495_vm1, %v1896_v3  ;;  %1899 = vst.msk [vmem:[%s2663_s23 + $0x9] sm:$0xff] %vm495_vm1, %v1897_v4  ;;  %332 = vadd.xlane.f32.xlu0 %v331_v6  ;;  %2274 = vmatprep.subr.bf16.mxu1 %v2273_v41  ;;  %v2267_v59 = vpack.c.bf16 %v367_v50, %v351_v49  ;;  %v383_v61 = vld [vmem:[%s3774_s3 + $0x120] sm:$0xff]  ;;  %v401_v3 = vld [vmem:[%s3774_s3 + $0x1b0] sm:$0xff] }
  0x12   : > { %v399_v62 = vld [vmem:[%s3774_s3 + $0x1a0] sm:$0xff]  ;;  %v356_v4 = vld [vmem:[%s3774_s3 + $0x48] sm:$0xff]  ;;  %v358_v6 = vld [vmem:[%s3774_s3 + $0x58] sm:$0xff] }
  0x13   : > { %v357_v14 = vld [vmem:[%s3774_s3 + $0x50] sm:$0xff]  ;;  %v404_v17 = vld [vmem:[%s3774_s3 + $0x1c8] sm:$0xff]  ;;  %v390_v18 = vld [vmem:[%s3774_s3 + $0x158] sm:$0xff] }
  0x14   : > { %v373_v15 = vld [vmem:[%s3774_s3 + $0xd0] sm:$0xff]  ;;  %v406_v19 = vld [vmem:[%s3774_s3 + $0x1d8] sm:$0xff]  ;;  %v387_v22 = vld [vmem:[%s3774_s3 + $0x140] sm:$0xff]  ;;  %v2285_v24 = vpack.c.bf16 %v404_v17, %v388_v16 }
  0x15   : > { %v2291_v21 = vpack.c.bf16 %v373_v15, %v357_v14  ;;  %v403_v23 = vld [vmem:[%s3774_s3 + $0x1c0] sm:$0xff]  ;;  %v2293_v25 = vpack.c.bf16 %v406_v19, %v390_v18  ;;  %v389_v26 = vld [vmem:[%s3774_s3 + $0x150] sm:$0xff]  ;;  %v360_v28 = vld [vmem:[%s3774_s3 + $0x68] sm:$0xff] }
  0x16   : > { %v405_v27 = vld [vmem:[%s3774_s3 + $0x1d0] sm:$0xff]  ;;  %v376_v29 = vld [vmem:[%s3774_s3 + $0xe8] sm:$0xff]  ;;  %v362_v30 = vld [vmem:[%s3774_s3 + $0x78] sm:$0xff]  ;;  %v2287_v32 = vpack.c.bf16 %v403_v23, %v387_v22 }
  0x17   : > { %v378_v31 = vld [vmem:[%s3774_s3 + $0xf8] sm:$0xff]  ;;  %v2295_v33 = vpack.c.bf16 %v405_v27, %v389_v26  ;;  %v359_v34 = vld [vmem:[%s3774_s3 + $0x60] sm:$0xff]  ;;  %v2297_v36 = vpack.c.bf16 %v376_v29, %v360_v28  ;;  %v361_v38 = vld [vmem:[%s3774_s3 + $0x70] sm:$0xff] }
  0x18   : > { %v375_v35 = vld [vmem:[%s3774_s3 + $0xe0] sm:$0xff]  ;;  %v2305_v37 = vpack.c.bf16 %v378_v31, %v362_v30  ;;  %v377_v39 = vld [vmem:[%s3774_s3 + $0xf0] sm:$0xff]  ;;  %v392_v40 = vld [vmem:[%s3774_s3 + $0x168] sm:$0xff] }
  0x19   : > { %v408_v41 = vld [vmem:[%s3774_s3 + $0x1e8] sm:$0xff]  ;;  %v409_v52 = vld [vmem:[%s3774_s3 + $0x1f0] sm:$0xff]  ;;  %v1083_v53 = vld [vmem:[%s3776_s5 + $0x80] sm:$0xff] }
  0x1a   : > { %v2301_v49 = vpack.c.bf16 %v408_v41, %v392_v40  ;;  %v1084_v54 = vld [vmem:[%s3776_s5 + $0x88] sm:$0xff]  ;;  %v1115_v55 = vld [vmem:[%s3776_s5 + $0x180] sm:$0xff]  ;;  %v1121_v26 = vld [vmem:[%s3776_s5 + $0x1b0] sm:$0xff] }
  0x1b   : > { %v1116_v56 = vld [vmem:[%s3776_s5 + $0x188] sm:$0xff]  ;;  %v1119_v15 = vld [vmem:[%s3776_s5 + $0x1a0] sm:$0xff]  ;;  %v1122_v27 = vld [vmem:[%s3776_s5 + $0x1b8] sm:$0xff] }
  0x1c   : > { %v1088_v14 = vld [vmem:[%s3776_s5 + $0xa8] sm:$0xff]  ;;  %v1071_v19 = vld [vmem:[%s3776_s5 + $0x20] sm:$0xff]  ;;  %v1073_v30 = vld [vmem:[%s3776_s5 + $0x30] sm:$0xff] }
  0x1d   : > { %v1120_v16 = vld [vmem:[%s3776_s5 + $0x1a8] sm:$0xff]  ;;  %v1074_v31 = vld [vmem:[%s3776_s5 + $0x38] sm:$0xff] }
  0x1e   : > { %v2353_v22 = vpack.c.bf16 %v1120_v16, %v1119_v15  ;;  %v1104_v23 = vld [vmem:[%s3776_s5 + $0x128] sm:$0xff]  ;;  %v2327_v40 = vpack.c.bf16 %v1074_v31, %v1073_v30  ;;  %v1130_v15 = vld [vmem:[%s3776_s5 + $0x1f8] sm:$0xff]  ;;  %v1081_v16 = vld [vmem:[%s3776_s5 + $0x70] sm:$0xff] }
  0x1f   : > { %v3105_v31 = vld [vmem:[%s3775_s4 + $0x8] sm:$0xff] }
  0x9e   : > { %v333_v7 = vpop.xlane.xlu0 %332 }
  0x9f   : > { %v335_v8 = vmul.f32 0.03125, %v333_v7  ;;  %v374_v7 = vld [vmem:[%s3774_s3 + $0xd8] sm:$0xff] }
  0xa0   : > { %v2289_v13 = vpack.c.bf16 %v374_v7, %v358_v6 }
  0xa1   : > { %v336_v9 = vsub.f32 %v327_v5, %v335_v8  ;;  %v372_v5 = vld [vmem:[%s3774_s3 + $0xc8] sm:$0xff]  ;;  %v2271_v8 = vpack.c.bf16 %v399_v62, %v383_v61  ;;  %v2313_v61 = vpack.c.bf16 %v1084_v54, %v1083_v53  ;;  %v2345_v62 = vpack.c.bf16 %v1116_v56, %v1115_v55  ;;  %v1077_v55 = vld [vmem:[%s3776_s5 + $0x50] sm:$0xff]  ;;  %v1078_v56 = vld [vmem:[%s3776_s5 + $0x58] sm:$0xff] }
  0xa2   : > { %v2281_v12 = vpack.c.bf16 %v372_v5, %v356_v4  ;;  %v1117_v4 = vld [vmem:[%s3776_s5 + $0x190] sm:$0xff]  ;;  %v1118_v5 = vld [vmem:[%s3776_s5 + $0x198] sm:$0xff] }
  0xa3   : > { %v337_v10 = vmul.f32 %v336_v9, %v336_v9 }
  0xa5   : > { %v338_v11 = vsel %vm330_vm0, %v337_v10, 0.0  ;;  %v355_v10 = vld [vmem:[%s3774_s3 + $0x40] sm:$0xff] }
  0xa6   : > { %339 = vadd.xlane.f32.xlu0 %v338_v11  ;;  %v371_v11 = vld [vmem:[%s3774_s3 + $0xc0] sm:$0xff] }
  0xa7   : > { %v2283_v20 = vpack.c.bf16 %v371_v11, %v355_v10  ;;  %v2349_v10 = vpack.c.bf16 %v1118_v5, %v1117_v4  ;;  %v1101_v11 = vld [vmem:[%s3776_s5 + $0x110] sm:$0xff]  ;;  %v1079_v4 = vld [vmem:[%s3776_s5 + $0x60] sm:$0xff] }
 0x133   : > { %v340_v43 = vpop.xlane.xlu0 %339 }
 0x134   : > { %v341_v44 = vmul.f32 0.03125, %v340_v43  ;;  %v394_v43 = vld [vmem:[%s3774_s3 + $0x178] sm:$0xff] }
 0x136   : > { %v342_v45 = vadd.f32 1e-05, %v341_v44  ;;  %v410_v44 = vld [vmem:[%s3774_s3 + $0x1f8] sm:$0xff] }
 0x137   : > { %v2309_v50 = vpack.c.bf16 %v410_v44, %v394_v43  ;;  %v1075_v43 = vld [vmem:[%s3776_s5 + $0x40] sm:$0xff]  ;;  %v1076_v44 = vld [vmem:[%s3776_s5 + $0x48] sm:$0xff] }
 0x138   : > { %2579 = vrsqrt.f32 %v342_v45  ;;  %v2299_v45 = vpack.c.bf16 %v375_v35, %v359_v34  ;;  %v1105_v34 = vld [vmem:[%s3776_s5 + $0x130] sm:$0xff]  ;;  %v1106_v35 = vld [vmem:[%s3776_s5 + $0x138] sm:$0xff]  ;;  %v2331_v53 = vpack.c.bf16 %v1076_v44, %v1075_v43 }
 0x139   : > { %v2359_v41 = vpack.c.bf16 %v1106_v35, %v1105_v34  ;;  %v3117_v35 = vld [vmem:[%s3775_s4] sm:$0xff] }
 0x142   : > { %v2580_v47 = vpop.eup %2579 }
 0x143   : > { %v344_v51 = vmul.f32 %v2580_v47, %v336_v9  ;;  %v2279_v9 = vpack.c.bf16 %v401_v3, %v385_v2  ;;  %v391_v47 = vld [vmem:[%s3774_s3 + $0x160] sm:$0xff]  ;;  %v1085_v2 = vld [vmem:[%s3776_s5 + $0x90] sm:$0xff]  ;;  %v1086_v3 = vld [vmem:[%s3776_s5 + $0x98] sm:$0xff] }
 0x145   : > { %v345_v58 = vmul.f32 %v344_v51, %v328_v46  ;;  %v2307_v46 = vpack.c.bf16 %v377_v39, %v361_v38  ;;  %v393_v51 = vld [vmem:[%s3774_s3 + $0x170] sm:$0xff]  ;;  %v1123_v38 = vld [vmem:[%s3776_s5 + $0x1c0] sm:$0xff]  ;;  %v1124_v39 = vld [vmem:[%s3776_s5 + $0x1c8] sm:$0xff] }
 0x147   : > { %v2769_v63 = vadd.f32 %v345_v58, %v329_v48  ;;  %v407_v48 = vld [vmem:[%s3774_s3 + $0x1e0] sm:$0xff]  ;;  %v2311_v58 = vpack.c.bf16 %v409_v52, %v393_v51  ;;  %v1125_v51 = vld [vmem:[%s3776_s5 + $0x1d0] sm:$0xff]  ;;  %v1126_v52 = vld [vmem:[%s3776_s5 + $0x1d8] sm:$0xff] }
 0x148   : > { %v2303_v57 = vpack.c.bf16 %v407_v48, %v391_v47  ;;  %v1107_v47 = vld [vmem:[%s3776_s5 + $0x140] sm:$0xff]  ;;  %v1108_v48 = vld [vmem:[%s3776_s5 + $0x148] sm:$0xff] }
 0x149   : > { %1958 = vmatmul.mubr.msk.f32.vlgmr.msra.gmra.mrb[0].mxu0 %vm495_vm1, %v2769_v63  ;;  %1959 = vmatmul.mubr.msk.f32.vlgmr.msra.gmra.mrb[0].mxu1 %vm495_vm1, %v2769_v63  ;;  %v2363_v54 = vpack.c.bf16 %v1108_v48, %v1107_v47  ;;  %v1149_v47 = vld [vmem:[%s3776_s5 + $0x290] sm:$0xff] }
 0x14a   : > { %2268 = vmatpush1.bf16.msra.mxu0 %v2267_v59  ;;  %2276 = vmatpush1.bf16.msra.mxu1 %v2275_v60  ;;  %v1067_v59 = vld [vmem:[%s3776_s5] sm:$0xff]  ;;  %v1068_v60 = vld [vmem:[%s3776_s5 + $0x8] sm:$0xff] }
 0x14b   : > { %2270 = vmatprep.subr.bf16.mxu0 %v2269_v0  ;;  %2278 = vmatprep.subr.bf16.mxu1 %v2277_v1  ;;  %v1099_v0 = vld [vmem:[%s3776_s5 + $0x100] sm:$0xff]  ;;  %v1100_v1 = vld [vmem:[%s3776_s5 + $0x108] sm:$0xff]  ;;  %v2315_v6 = vpack.c.bf16 %v1068_v60, %v1067_v59  ;;  %v1109_v59 = vld [vmem:[%s3776_s5 + $0x150] sm:$0xff] }
 0x14c   : > { %705 = vmatprep.mubr.f32.mxu0 %v2589_v42  ;;  %776 = vmatprep.mubr.f32.mxu1 %v2589_v42  ;;  %v2347_v7 = vpack.c.bf16 %v1100_v1, %v1099_v0  ;;  %v1110_v60 = vld [vmem:[%s3776_s5 + $0x158] sm:$0xff]  ;;  %v1127_v0 = vld [vmem:[%s3776_s5 + $0x1e0] sm:$0xff]  ;;  %v1128_v1 = vld [vmem:[%s3776_s5 + $0x1e8] sm:$0xff] }
 0x14e   : > { %2272 = vmatpush1.bf16.msra.mxu0 %v2271_v8  ;;  %2280 = vmatpush1.bf16.msra.mxu1 %v2279_v9  ;;  %v1070_v8 = vld [vmem:[%s3776_s5 + $0x18] sm:$0xff]  ;;  %v2317_v9 = vpack.c.bf16 %v1086_v3, %v1085_v2  ;;  %v2335_v2 = vpack.c.bf16 %v1078_v56, %v1077_v55  ;;  %v2367_v3 = vpack.c.bf16 %v1110_v60, %v1109_v59 }
 0x14f   : > { %2282 = vmatprep.subr.bf16.mxu0 %v2281_v12  ;;  %2290 = vmatprep.subr.bf16.mxu1 %v2289_v13  ;;  %v1102_v12 = vld [vmem:[%s3776_s5 + $0x118] sm:$0xff]  ;;  %v1087_v13 = vld [vmem:[%s3776_s5 + $0xa0] sm:$0xff] }
 0x150   : > { %v2351_v18 = vpack.c.bf16 %v1102_v12, %v1101_v11  ;;  %v1097_v11 = vld [vmem:[%s3776_s5 + $0xf0] sm:$0xff]  ;;  %v1098_v12 = vld [vmem:[%s3776_s5 + $0xf8] sm:$0xff] }
 0x151   : > { %1960 = vmatmul.mubr.msk.f32.vlgmr.msra.gmra.mrb[2].mxu0 %vm495_vm1, %v2769_v63  ;;  %1961 = vmatmul.mubr.msk.f32.vlgmr.msra.gmra.mrb[2].mxu1 %vm495_vm1, %v2769_v63 }
 0x152   : > { %2284 = vmatpush1.bf16.msra.mxu0 %v2283_v20  ;;  %2292 = vmatpush1.bf16.msra.mxu1 %v2291_v21  ;;  %v1072_v20 = vld [vmem:[%s3776_s5 + $0x28] sm:$0xff]  ;;  %v2321_v21 = vpack.c.bf16 %v1088_v14, %v1087_v13  ;;  %v1129_v13 = vld [vmem:[%s3776_s5 + $0x1f0] sm:$0xff]  ;;  %v2341_v14 = vpack.c.bf16 %v1098_v12, %v1097_v11 }
 0x153   : > { %2286 = vmatprep.subr.bf16.mxu0 %v2285_v24  ;;  %2294 = vmatprep.subr.bf16.mxu1 %v2293_v25  ;;  %v1089_v24 = vld [vmem:[%s3776_s5 + $0xb0] sm:$0xff]  ;;  %v1090_v25 = vld [vmem:[%s3776_s5 + $0xb8] sm:$0xff]  ;;  %v2323_v28 = vpack.c.bf16 %v1072_v20, %v1071_v19 }
 0x154   : > { %847 = vmatprep.mubr.f32.mxu0 %v2589_v42  ;;  %918 = vmatprep.mubr.f32.mxu1 %v2589_v42  ;;  %v1113_v20 = vld [vmem:[%s3776_s5 + $0x170] sm:$0xff] }
 0x156   : > { %2288 = vmatpush1.bf16.msra.mxu0 %v2287_v32  ;;  %2296 = vmatpush1.bf16.msra.mxu1 %v2295_v33  ;;  %v2325_v32 = vpack.c.bf16 %v1090_v25, %v1089_v24  ;;  %v2357_v33 = vpack.c.bf16 %v1122_v27, %v1121_v26  ;;  %v1179_v24 = vld [vmem:[%s3776_s5 + $0x380] sm:$0xff]  ;;  %v1180_v26 = vld [vmem:[%s3776_s5 + $0x388] sm:$0xff] }
 0x157   : > { %2298 = vmatprep.subr.bf16.mxu0 %v2297_v36  ;;  %2306 = vmatprep.subr.bf16.mxu1 %v2305_v37  ;;  %v1091_v36 = vld [vmem:[%s3776_s5 + $0xc0] sm:$0xff]  ;;  %v1092_v37 = vld [vmem:[%s3776_s5 + $0xc8] sm:$0xff]  ;;  %v2409_v27 = vpack.c.bf16 %v1180_v26, %v1179_v24 }
 0x159   : > { %1962 = vmatmul.mubr.msk.f32.vlgmr.msra.gmra.mrb[4].mxu0 %vm495_vm1, %v2769_v63  ;;  %1963 = vmatmul.mubr.msk.f32.vlgmr.msra.gmra.mrb[4].mxu1 %vm495_vm1, %v2769_v63 }
 0x15a   : > { %2300 = vmatpush1.bf16.msra.mxu0 %v2299_v45  ;;  %2308 = vmatpush1.bf16.msra.mxu1 %v2307_v46  ;;  %v2329_v45 = vpack.c.bf16 %v1092_v37, %v1091_v36  ;;  %v2361_v46 = vpack.c.bf16 %v1124_v39, %v1123_v38 }
 0x15b   : > { %2302 = vmatprep.subr.bf16.mxu0 %v2301_v49  ;;  %2310 = vmatprep.subr.bf16.mxu1 %v2309_v50  ;;  %v1093_v49 = vld [vmem:[%s3776_s5 + $0xd0] sm:$0xff]  ;;  %v1094_v50 = vld [vmem:[%s3776_s5 + $0xd8] sm:$0xff] }
 0x15c   : > { %989 = vmatprep.mubr.f32.mxu0 %v2589_v42  ;;  %1060 = vmatprep.mubr.f32.mxu1 %v2589_v42  ;;  %v1069_v42 = vld [vmem:[%s3776_s5 + $0x10] sm:$0xff] }
 0x15d   : > { %v2319_v17 = vpack.c.bf16 %v1070_v8, %v1069_v42  ;;  %v1111_v42 = vld [vmem:[%s3776_s5 + $0x160] sm:$0xff]  ;;  %v1112_v8 = vld [vmem:[%s3776_s5 + $0x168] sm:$0xff] }
 0x15e   : > { %2304 = vmatpush1.bf16.msra.mxu0 %v2303_v57  ;;  %2312 = vmatpush1.bf16.msra.mxu1 %v2311_v58  ;;  %v2333_v57 = vpack.c.bf16 %v1094_v50, %v1093_v49  ;;  %v2365_v58 = vpack.c.bf16 %v1126_v52, %v1125_v51  ;;  %v1150_v50 = vld [vmem:[%s3776_s5 + $0x298] sm:$0xff]  ;;  %v1181_v51 = vld [vmem:[%s3776_s5 + $0x390] sm:$0xff] }
 0x15f   : > { %2314 = vmatprep.subr.bf16.mxu0 %v2313_v61  ;;  %2346 = vmatprep.subr.bf16.mxu1 %v2345_v62  ;;  %v1095_v61 = vld [vmem:[%s3776_s5 + $0xe0] sm:$0xff]  ;;  %v1096_v62 = vld [vmem:[%s3776_s5 + $0xe8] sm:$0xff]  ;;  %v1182_v52 = vld [vmem:[%s3776_s5 + $0x398] sm:$0xff] }
 0x160   : > { %v2337_v5 = vpack.c.bf16 %v1096_v62, %v1095_v61  ;;  %v1133_v61 = vld [vmem:[%s3776_s5 + $0x210] sm:$0xff]  ;;  %v1134_v62 = vld [vmem:[%s3776_s5 + $0x218] sm:$0xff] }
 0x161   : > { %1964 = vmatmul.mubr.msk.f32.vlgmr.msra.gmra.mrb[6].mxu0 %vm495_vm1, %v2769_v63  ;;  %1965 = vmatmul.mubr.msk.f32.vlgmr.msra.gmra.mrb[6].mxu1 %vm495_vm1, %v2769_v63  ;;  %v1103_v63 = vld [vmem:[%s3776_s5 + $0x120] sm:$0xff]  ;;  %v2383_v11 = vpack.c.bf16 %v1134_v62, %v1133_v61 }
 0x162   : > { %2316 = vmatpush3.bf16.msra.mxu0 %v2315_v6  ;;  %2348 = vmatpush3.bf16.msra.mxu1 %v2347_v7  ;;  %v2355_v29 = vpack.c.bf16 %v1104_v23, %v1103_v63  ;;  %v2369_v6 = vpack.c.bf16 %v1128_v1, %v1127_v0  ;;  %v1080_v7 = vld [vmem:[%s3776_s5 + $0x68] sm:$0xff]  ;;  %v1147_v63 = vld [vmem:[%s3776_s5 + $0x280] sm:$0xff] }
 0x163   : > { %2318 = vmatprep.subr.bf16.mxu0 %v2317_v9  ;;  %2350 = vmatprep.subr.bf16.mxu1 %v2349_v10  ;;  %v2339_v9 = vpack.c.bf16 %v1080_v7, %v1079_v4  ;;  %v2371_v10 = vpack.c.bf16 %v1112_v8, %v1111_v42  ;;  %v1148_v23 = vld [vmem:[%s3776_s5 + $0x288] sm:$0xff]  ;;  %v1165_v4 = vld [vmem:[%s3776_s5 + $0x310] sm:$0xff]  ;;  %v1183_v42 = vld [vmem:[%s3776_s5 + $0x3a0] sm:$0xff] }
 0x164   : > { %v2377_v25 = vpack.c.bf16 %v1148_v23, %v1147_v63  ;;  %v1152_v7 = vld [vmem:[%s3776_s5 + $0x2a8] sm:$0xff]  ;;  %v1185_v63 = vld [vmem:[%s3776_s5 + $0x3b0] sm:$0xff]  ;;  %v1186_v23 = vld [vmem:[%s3776_s5 + $0x3b8] sm:$0xff] }
 0x165   : > { %v1184_v8 = vld [vmem:[%s3776_s5 + $0x3a8] sm:$0xff] }
 0x166   : > { %2320 = vmatpush3.bf16.msra.mxu0 %v2319_v17  ;;  %2352 = vmatpush3.bf16.msra.mxu1 %v2351_v18  ;;  %v1082_v17 = vld [vmem:[%s3776_s5 + $0x78] sm:$0xff]  ;;  %v2373_v18 = vpack.c.bf16 %v1130_v15, %v1129_v13  ;;  %v1135_v13 = vld [vmem:[%s3776_s5 + $0x220] sm:$0xff] }
 0x167   : > { %2322 = vmatprep.subr.bf16.mxu0 %v2321_v21  ;;  %2354 = vmatprep.subr.bf16.mxu1 %v2353_v22  ;;  %v2343_v19 = vpack.c.bf16 %v1082_v17, %v1081_v16  ;;  %v1114_v21 = vld [vmem:[%s3776_s5 + $0x178] sm:$0xff]  ;;  %v2417_v16 = vpack.c.bf16 %v1184_v8, %v1183_v42  ;;  %v1167_v17 = vld [vmem:[%s3776_s5 + $0x320] sm:$0xff]  ;;  %v1141_v8 = vld [vmem:[%s3776_s5 + $0x250] sm:$0xff] }
 0x168   : > { %v2375_v22 = vpack.c.bf16 %v1114_v21, %v1113_v20 }
 0x16a   : > { %2324 = vmatpush3.bf16.msra.mxu0 %v2323_v28  ;;  %2356 = vmatpush3.bf16.msra.mxu1 %v2355_v29  ;;  %v415_v28 = vlaneseq }
 0x16b   : > { %2326 = vmatprep.subr.bf16.mxu0 %v2325_v32  ;;  %2358 = vmatprep.subr.bf16.mxu1 %v2357_v33 }
 0x16c   : > { %v3099_v29 = vshrl.u32 %v415_v28, 7 }
 0x16e   : > { %2328 = vmatpush3.bf16.msra.mxu0 %v2327_v40  ;;  %2360 = vmatpush3.bf16.msra.mxu1 %v2359_v41  ;;  %v441_v30 = vsub.s32 6, %v3099_v29  ;;  %v421_v33 = vsub.s32 1, %v3099_v29  ;;  %v429_v34 = vsub.s32 3, %v3099_v29  ;;  %v417_v36 = vsub.s32 0, %v3099_v29  ;;  %v1131_v40 = vld [vmem:[%s3776_s5 + $0x200] sm:$0xff]  ;;  %v1132_v41 = vld [vmem:[%s3776_s5 + $0x208] sm:$0xff] }
 0x16f   : > { %2330 = vmatprep.subr.bf16.mxu0 %v2329_v45  ;;  %2362 = vmatprep.subr.bf16.mxu1 %v2361_v46  ;;  %v425_v37 = vsub.s32 2, %v3099_v29  ;;  %v1163_v45 = vld [vmem:[%s3776_s5 + $0x300] sm:$0xff]  ;;  %v1164_v46 = vld [vmem:[%s3776_s5 + $0x308] sm:$0xff]  ;;  %v2379_v55 = vpack.c.bf16 %v1132_v41, %v1131_v40  ;;  %v437_v56 = vsub.s32 5, %v3099_v29  ;;  %v445_v60 = vsub.s32 7, %v3099_v29  ;;  %v1138_v40 = vld [vmem:[%s3776_s5 + $0x238] sm:$0xff] }
 0x170   : > { %v3110_v32 = vrot.slane %v3105_v31, %v441_v30  ;;  %v422_v38 = vrot.slane %v3117_v35, %v421_v33  ;;  %v430_v39 = vrot.slane %v3117_v35, %v429_v34  ;;  %v418_v43 = vrot.slane %v3117_v35, %v417_v36 }
 0x171   : > { %v426_v44 = vrot.slane %v3117_v35, %v425_v37  ;;  %v2411_v59 = vpack.c.bf16 %v1164_v46, %v1163_v45  ;;  %v1170_v45 = vld [vmem:[%s3776_s5 + $0x338] sm:$0xff]  ;;  %v1155_v46 = vld [vmem:[%s3776_s5 + $0x2c0] sm:$0xff] }
 0x172   : > { %2332 = vmatpush3.bf16.msra.mxu0 %v2331_v53  ;;  %2364 = vmatpush3.bf16.msra.mxu1 %v2363_v54 }
 0x173   : > { %2334 = vmatprep.subr.bf16.mxu0 %v2333_v57  ;;  %2366 = vmatprep.subr.bf16.mxu1 %v2365_v58 }
 0x176   : > { %2336 = vmatpush3.bf16.msra.mxu0 %v2335_v2  ;;  %2368 = vmatpush3.bf16.msra.mxu1 %v2367_v3  ;;  %v2381_v2 = vpack.c.bf16 %v1150_v50, %v1149_v47  ;;  %v2413_v3 = vpack.c.bf16 %v1182_v52, %v1181_v51  ;;  %v1156_v47 = vld [vmem:[%s3776_s5 + $0x2c8] sm:$0xff]  ;;  %v450_v50 = vrot.slane %v3105_v31, %v417_v36 }
 0x177   : > { %2338 = vmatprep.subr.bf16.mxu0 %v2337_v5  ;;  %2370 = vmatprep.subr.bf16.mxu1 %v2369_v6  ;;  %v1166_v5 = vld [vmem:[%s3776_s5 + $0x318] sm:$0xff]  ;;  %v1151_v6 = vld [vmem:[%s3776_s5 + $0x2a0] sm:$0xff]  ;;  %v458_v51 = vrot.slane %v3105_v31, %v425_v37 }
 0x178   : > { %v2415_v12 = vpack.c.bf16 %v1166_v5, %v1165_v4  ;;  %v2385_v15 = vpack.c.bf16 %v1152_v7, %v1151_v6  ;;  %v1171_v37 = vld [vmem:[%s3776_s5 + $0x340] sm:$0xff] }
 0x17a   : > { %2340 = vmatpush3.bf16.msra.mxu0 %v2339_v9  ;;  %2372 = vmatpush3.bf16.msra.mxu1 %v2371_v10  ;;  %v438_v9 = vrot.slane %v3117_v35, %v437_v56  ;;  %v446_v10 = vrot.slane %v3117_v35, %v445_v60 }
 0x17b   : > { %2342 = vmatprep.subr.bf16.mxu0 %v2341_v14  ;;  %2374 = vmatprep.subr.bf16.mxu1 %v2373_v18  ;;  %v1136_v14 = vld [vmem:[%s3776_s5 + $0x228] sm:$0xff] }
 0x17c   : > { %v1168_v18 = vld [vmem:[%s3776_s5 + $0x328] sm:$0xff]  ;;  %v2387_v26 = vpack.c.bf16 %v1136_v14, %v1135_v13  ;;  %v1173_v13 = vld [vmem:[%s3776_s5 + $0x350] sm:$0xff]  ;;  %v1174_v14 = vld [vmem:[%s3776_s5 + $0x358] sm:$0xff] }
 0x17e   : > { %2344 = vmatpush3.bf16.msra.mxu0 %v2343_v19  ;;  %2376 = vmatpush3.bf16.msra.mxu1 %v2375_v22  ;;  %v1153_v19 = vld [vmem:[%s3776_s5 + $0x2b0] sm:$0xff]  ;;  %v1154_v22 = vld [vmem:[%s3776_s5 + $0x2b8] sm:$0xff] }
 0x17f   : > { %2378 = vmatprep.subr.bf16.mxu0 %v2377_v25  ;;  %2410 = vmatprep.subr.bf16.mxu1 %v2409_v27  ;;  %v2389_v41 = vpack.c.bf16 %v1154_v22, %v1153_v19 }
 0x21c   : > { %v565_v48 = vpop.f32.mrb[0].mxu0  ;;  %v636_v49 = vpop.f32.mrb[0].mxu1 }
 0x21d   : > { %v567_v53 = vpop.f32.mrb[1].mxu0  ;;  %v638_v54 = vpop.f32.mrb[1].mxu1  ;;  %v566_v0 = vadd.f32 %v565_v48, %v418_v43  ;;  %v637_v1 = vadd.f32 %v636_v49, %v426_v44  ;;  %v2421_v43 = vpack.c.bf16 %v1186_v23, %v1185_v63  ;;  %v1169_v44 = vld [vmem:[%s3776_s5 + $0x330] sm:$0xff]  ;;  %v1187_v48 = vld [vmem:[%s3776_s5 + $0x3c0] sm:$0xff]  ;;  %v1188_v49 = vld [vmem:[%s3776_s5 + $0x3c8] sm:$0xff]  ;;  %v2431_v63 = vpack.c.bf16 %v1174_v14, %v1173_v13 }
 0x21e   : > { %v568_v57 = vadd.f32 %v567_v53, %v422_v38  ;;  %v639_v58 = vadd.f32 %v638_v54, %v430_v39  ;;  %v2419_v38 = vpack.c.bf16 %v1168_v18, %v1167_v17  ;;  %v1137_v39 = vld [vmem:[%s3776_s5 + $0x230] sm:$0xff]  ;;  %v2423_v53 = vpack.c.bf16 %v1170_v45, %v1169_v44  ;;  %v1139_v54 = vld [vmem:[%s3776_s5 + $0x240] sm:$0xff]  ;;  %v1192_v18 = vld [vmem:[%s3776_s5 + $0x3e8] sm:$0xff] }
 0x21f   : > { %v2391_v52 = vpack.c.bf16 %v1138_v40, %v1137_v39  ;;  %v2425_v36 = vpack.c.bf16 %v1188_v49, %v1187_v48  ;;  %v1191_v17 = vld [vmem:[%s3776_s5 + $0x3e0] sm:$0xff]  ;;  %v1194_v44 = vld [vmem:[%s3776_s5 + $0x3f8] sm:$0xff] }
 0x220   : > { %1388 = vmatprep.mubr.f32.mxu0 %v568_v57  ;;  %1458 = vmatprep.mubr.f32.mxu1 %v639_v58  ;;  %v2393_v57 = vpack.c.bf16 %v1156_v47, %v1155_v46  ;;  %v1172_v58 = vld [vmem:[%s3776_s5 + $0x348] sm:$0xff]  ;;  %v1143_v23 = vld [vmem:[%s3776_s5 + $0x260] sm:$0xff] }
 0x221   : > { %1389 = vmatmul.mubr.f32.vlgmr.msra.gmra.mrb[8].mxu0 %v566_v0  ;;  %1459 = vmatmul.mubr.f32.vlgmr.msra.gmra.mrb[8].mxu1 %v637_v1  ;;  %v1158_v0 = vld [vmem:[%s3776_s5 + $0x2d8] sm:$0xff]  ;;  %v1189_v1 = vld [vmem:[%s3776_s5 + $0x3d0] sm:$0xff]  ;;  %v2427_v42 = vpack.c.bf16 %v1172_v58, %v1171_v37  ;;  %v1243_v37 = vld [vmem:[%s3776_s5 + $0x580] sm:$0xff] }
 0x222   : > { %2380 = vmatpush3.bf16.msra.mxu0 %v2379_v55  ;;  %2412 = vmatpush3.bf16.msra.mxu1 %v2411_v59  ;;  %v1140_v55 = vld [vmem:[%s3776_s5 + $0x248] sm:$0xff]  ;;  %v1157_v59 = vld [vmem:[%s3776_s5 + $0x2d0] sm:$0xff] }
 0x223   : > { %2382 = vmatprep.subr.bf16.mxu0 %v2381_v2  ;;  %2414 = vmatprep.subr.bf16.mxu1 %v2413_v3  ;;  %v1190_v2 = vld [vmem:[%s3776_s5 + $0x3d8] sm:$0xff]  ;;  %v2395_v7 = vpack.c.bf16 %v1140_v55, %v1139_v54  ;;  %v1177_v54 = vld [vmem:[%s3776_s5 + $0x370] sm:$0xff]  ;;  %v1244_v58 = vld [vmem:[%s3776_s5 + $0x588] sm:$0xff] }
 0x224   : > { %v3204_v20 = vpop.f32.mrb[2].mxu0  ;;  %v3206_v21 = vpop.f32.mrb[2].mxu1  ;;  %v1178_v55 = vld [vmem:[%s3776_s5 + $0x378] sm:$0xff] }
 0x225   : > { %v709_v24 = vpop.f32.mrb[3].mxu0  ;;  %v780_v25 = vpop.f32.mrb[3].mxu1 }
 0x226   : > { %v710_v27 = vadd.f32 %v709_v24, %v438_v9  ;;  %v781_v28 = vadd.f32 %v780_v25, %v446_v10  ;;  %2384 = vmatpush3.bf16.msra.mxu0 %v2383_v11  ;;  %2416 = vmatpush3.bf16.msra.mxu1 %v2415_v12  ;;  %v1142_v9 = vld [vmem:[%s3776_s5 + $0x258] sm:$0xff]  ;;  %v433_v10 = vsub.s32 4, %v3099_v29  ;;  %v2397_v11 = vpack.c.bf16 %v1158_v0, %v1157_v59  ;;  %v1144_v24 = vld [vmem:[%s3776_s5 + $0x268] sm:$0xff] }
 0x227   : > { %2386 = vmatprep.subr.bf16.mxu0 %v2385_v15  ;;  %2418 = vmatprep.subr.bf16.mxu1 %v2417_v16  ;;  %v2429_v12 = vpack.c.bf16 %v1190_v2, %v1189_v1  ;;  %v1159_v15 = vld [vmem:[%s3776_s5 + $0x2e0] sm:$0xff]  ;;  %v1160_v16 = vld [vmem:[%s3776_s5 + $0x2e8] sm:$0xff]  ;;  %v2399_v22 = vpack.c.bf16 %v1142_v9, %v1141_v8  ;;  %v2403_v49 = vpack.c.bf16 %v1144_v24, %v1143_v23  ;;  %v1213_v9 = vld [vmem:[%s3776_s5 + $0x490] sm:$0xff] }
 0x228   : > { %1528 = vmatprep.mubr.f32.mxu0 %v710_v27  ;;  %1598 = vmatprep.mubr.f32.mxu1 %v781_v28  ;;  %v466_v19 = vrot.slane %v3105_v31, %v433_v10  ;;  %v2401_v25 = vpack.c.bf16 %v1160_v16, %v1159_v15  ;;  %v1175_v27 = vld [vmem:[%s3776_s5 + $0x360] sm:$0xff]  ;;  %v1176_v28 = vld [vmem:[%s3776_s5 + $0x368] sm:$0xff]  ;;  %v434_v59 = vrot.slane %v3117_v35, %v433_v10  ;;  %v1197_v16 = vld [vmem:[%s3776_s5 + $0x410] sm:$0xff] }
 0x229   : > { %v442_v0 = vrot.slane %v3117_v35, %v441_v30  ;;  %v2473_v2 = vpack.c.bf16 %v1244_v58, %v1243_v37  ;;  %v454_v8 = vrot.slane %v3105_v31, %v421_v33  ;;  %v1227_v30 = vld [vmem:[%s3776_s5 + $0x500] sm:$0xff]  ;;  %v1228_v35 = vld [vmem:[%s3776_s5 + $0x508] sm:$0xff]  ;;  %v462_v10 = vrot.slane %v3105_v31, %v429_v34  ;;  %v1214_v33 = vld [vmem:[%s3776_s5 + $0x498] sm:$0xff] }
 0x22a   : > { %2388 = vmatpush3.bf16.msra.mxu0 %v2387_v26  ;;  %2420 = vmatpush3.bf16.msra.mxu1 %v2419_v38  ;;  %v2433_v26 = vpack.c.bf16 %v1192_v18, %v1191_v17  ;;  %v1161_v38 = vld [vmem:[%s3776_s5 + $0x2f0] sm:$0xff]  ;;  %v708_v14 = vadd.f32 %v3204_v20, %v434_v59  ;;  %v2475_v34 = vpack.c.bf16 %v1228_v35, %v1227_v30  ;;  %v1198_v17 = vld [vmem:[%s3776_s5 + $0x418] sm:$0xff]  ;;  %v1216_v23 = vld [vmem:[%s3776_s5 + $0x4a8] sm:$0xff] }
 0x22b   : > { %2390 = vmatprep.subr.bf16.mxu0 %v2389_v41  ;;  %2422 = vmatprep.subr.bf16.mxu1 %v2421_v43  ;;  %v1162_v41 = vld [vmem:[%s3776_s5 + $0x2f8] sm:$0xff]  ;;  %v1193_v43 = vld [vmem:[%s3776_s5 + $0x3f0] sm:$0xff]  ;;  %v779_v15 = vadd.f32 %v3206_v21, %v442_v0  ;;  %v2445_v20 = vpack.c.bf16 %v1214_v33, %v1213_v9  ;;  %v1219_v37 = vld [vmem:[%s3776_s5 + $0x4c0] sm:$0xff] }
 0x22c   : > { %v849_v61 = vpop.f32.mrb[4].mxu0  ;;  %v920_v62 = vpop.f32.mrb[4].mxu1  ;;  %v1229_v18 = vld [vmem:[%s3776_s5 + $0x510] sm:$0xff]  ;;  %v1230_v21 = vld [vmem:[%s3776_s5 + $0x518] sm:$0xff]  ;;  %v1220_v58 = vld [vmem:[%s3776_s5 + $0x4c8] sm:$0xff] }
 0x22d   : > { %v3271_v3 = vadd.f32 %v849_v61, %v450_v50  ;;  %v3273_v4 = vadd.f32 %v920_v62, %v458_v51  ;;  %v3275_v5 = vpop.f32.mrb[5].mxu0  ;;  %v3277_v6 = vpop.f32.mrb[5].mxu1  ;;  %v2435_v50 = vpack.c.bf16 %v1176_v28, %v1175_v27  ;;  %v1145_v51 = vld [vmem:[%s3776_s5 + $0x270] sm:$0xff]  ;;  %v2439_v62 = vpack.c.bf16 %v1178_v55, %v1177_v54  ;;  %v1202_v54 = vld [vmem:[%s3776_s5 + $0x438] sm:$0xff]  ;;  %v1251_v59 = vld [vmem:[%s3776_s5 + $0x5c0] sm:$0xff] }
 0x22e   : > { %2392 = vmatpush3.bf16.msra.mxu0 %v2391_v52  ;;  %2424 = vmatpush3.bf16.msra.mxu1 %v2423_v53  ;;  %v1146_v52 = vld [vmem:[%s3776_s5 + $0x278] sm:$0xff]  ;;  %v2437_v53 = vpack.c.bf16 %v1194_v44, %v1193_v43  ;;  %v923_v24 = vadd.f32 %v3277_v6, %v462_v10  ;;  %v2479_v27 = vpack.c.bf16 %v1230_v21, %v1229_v18  ;;  %v1199_v6 = vld [vmem:[%s3776_s5 + $0x420] sm:$0xff]  ;;  %v1217_v43 = vld [vmem:[%s3776_s5 + $0x4b0] sm:$0xff] }
 0x22f   : > { %2394 = vmatprep.subr.bf16.mxu0 %v2393_v57  ;;  %2426 = vmatprep.subr.bf16.mxu1 %v2425_v36  ;;  %v1211_v57 = vld [vmem:[%s3776_s5 + $0x480] sm:$0xff]  ;;  %v1212_v36 = vld [vmem:[%s3776_s5 + $0x488] sm:$0xff]  ;;  %v2407_v61 = vpack.c.bf16 %v1146_v52, %v1145_v51  ;;  %v1218_v44 = vld [vmem:[%s3776_s5 + $0x4b8] sm:$0xff] }
 0x230   : > { %v2441_v1 = vpack.c.bf16 %v1212_v36, %v1211_v57  ;;  %v1233_v55 = vld [vmem:[%s3776_s5 + $0x530] sm:$0xff]  ;;  %v1234_v36 = vld [vmem:[%s3776_s5 + $0x538] sm:$0xff]  ;;  %v1236_v30 = vld [vmem:[%s3776_s5 + $0x548] sm:$0xff] }
 0x231   : > { %v2487_v0 = vpack.c.bf16 %v1234_v36, %v1233_v55  ;;  %v1221_v35 = vld [vmem:[%s3776_s5 + $0x4d0] sm:$0xff]  ;;  %v1222_v9 = vld [vmem:[%s3776_s5 + $0x4d8] sm:$0xff]  ;;  %v1223_v18 = vld [vmem:[%s3776_s5 + $0x4e0] sm:$0xff] }
 0x232   : > { %2396 = vmatpush3.bf16.msra.mxu0 %v2395_v7  ;;  %2428 = vmatpush3.bf16.msra.mxu1 %v2427_v42  ;;  %v1195_v7 = vld [vmem:[%s3776_s5 + $0x400] sm:$0xff]  ;;  %v1196_v42 = vld [vmem:[%s3776_s5 + $0x408] sm:$0xff]  ;;  %v1253_v10 = vld [vmem:[%s3776_s5 + $0x5d0] sm:$0xff] }
 0x233   : > { %2398 = vmatprep.subr.bf16.mxu0 %v2397_v11  ;;  %2430 = vmatprep.subr.bf16.mxu1 %v2429_v12  ;;  %v1245_v11 = vld [vmem:[%s3776_s5 + $0x590] sm:$0xff]  ;;  %v1246_v12 = vld [vmem:[%s3776_s5 + $0x598] sm:$0xff]  ;;  %v2443_v13 = vpack.c.bf16 %v1196_v42, %v1195_v7  ;;  %v1204_v7 = vld [vmem:[%s3776_s5 + $0x448] sm:$0xff] }
 0x234   : > { %v991_v39 = vpop.f32.mrb[6].mxu0  ;;  %v1062_v40 = vpop.f32.mrb[6].mxu1  ;;  %v1235_v42 = vld [vmem:[%s3776_s5 + $0x540] sm:$0xff]  ;;  %v1254_v33 = vld [vmem:[%s3776_s5 + $0x5d8] sm:$0xff]  ;;  %v1308_v55 = vld [vmem:[%s3776_s5 + $0x788] sm:$0xff] }
 0x235   : > { %v3329_v45 = vadd.f32 %v991_v39, %v466_v19  ;;  %v3332_v46 = vadd.f32 %v1062_v40, %v3110_v32  ;;  %v3334_v47 = vpop.f32.mrb[7].mxu0  ;;  %v3336_v48 = vpop.f32.mrb[7].mxu1  ;;  %v2405_v32 = vpack.c.bf16 %v1162_v41, %v1161_v38  ;;  %v852_v19 = vadd.f32 %v3275_v5, %v454_v8  ;;  %v1247_v5 = vld [vmem:[%s3776_s5 + $0x5a0] sm:$0xff]  ;;  %v1200_v38 = vld [vmem:[%s3776_s5 + $0x428] sm:$0xff]  ;;  %v1262_v29 = vld [vmem:[%s3776_s5 + $0x618] sm:$0xff] }
 0x236   : > { %2400 = vmatpush3.bf16.msra.mxu0 %v2399_v22  ;;  %2432 = vmatpush3.bf16.msra.mxu1 %v2431_v63  ;;  %v2477_v22 = vpack.c.bf16 %v1246_v12, %v1245_v11  ;;  %v1215_v63 = vld [vmem:[%s3776_s5 + $0x4a0] sm:$0xff]  ;;  %v1232_v41 = vld [vmem:[%s3776_s5 + $0x528] sm:$0xff]  ;;  %v2451_v51 = vpack.c.bf16 %v1200_v38, %v1199_v6  ;;  %v2491_v12 = vpack.c.bf16 %v1236_v30, %v1235_v42  ;;  %v1226_v6 = vld [vmem:[%s3776_s5 + $0x4f8] sm:$0xff] }
 0x237   : > { %2402 = vmatprep.subr.bf16.mxu0 %v2401_v25  ;;  %2434 = vmatprep.subr.bf16.mxu1 %v2433_v26  ;;  %v1248_v25 = vld [vmem:[%s3776_s5 + $0x5a8] sm:$0xff]  ;;  %v2447_v26 = vpack.c.bf16 %v1198_v17, %v1197_v16  ;;  %v2449_v28 = vpack.c.bf16 %v1216_v23, %v1215_v63  ;;  %v1231_v39 = vld [vmem:[%s3776_s5 + $0x520] sm:$0xff]  ;;  %v2493_v16 = vpack.c.bf16 %v1254_v33, %v1253_v10  ;;  %v1238_v17 = vld [vmem:[%s3776_s5 + $0x558] sm:$0xff] }
 0x238   : > { %v2481_v40 = vpack.c.bf16 %v1248_v25, %v1247_v5  ;;  %v2483_v52 = vpack.c.bf16 %v1232_v41, %v1231_v39  ;;  %v1208_v5 = vld [vmem:[%s3776_s5 + $0x468] sm:$0xff]  ;;  %v1239_v25 = vld [vmem:[%s3776_s5 + $0x560] sm:$0xff]  ;;  %v1257_v38 = vld [vmem:[%s3776_s5 + $0x5f0] sm:$0xff]  ;;  %v478_v42 = vrot.slane %v3105_v31, %v445_v60 }
 0x239   : > { %v1258_v39 = vld [vmem:[%s3776_s5 + $0x5f8] sm:$0xff]  ;;  %v1309_v30 = vld [vmem:[%s3776_s5 + $0x790] sm:$0xff]  ;;  %v1279_v33 = vld [vmem:[%s3776_s5 + $0x6a0] sm:$0xff] }
 0x23a   : > { %2404 = vmatpush3.bf16.msra.mxu0 %v2403_v49  ;;  %2436 = vmatpush3.bf16.msra.mxu1 %v2435_v50  ;;  %v1249_v49 = vld [vmem:[%s3776_s5 + $0x5b0] sm:$0xff]  ;;  %v1250_v50 = vld [vmem:[%s3776_s5 + $0x5b8] sm:$0xff] }
 0x23b   : > { %2406 = vmatprep.subr.bf16.mxu0 %v2405_v32  ;;  %2438 = vmatprep.subr.bf16.mxu1 %v2437_v53  ;;  %v2453_v32 = vpack.c.bf16 %v1218_v44, %v1217_v43  ;;  %v1201_v53 = vld [vmem:[%s3776_s5 + $0x430] sm:$0xff]  ;;  %v2485_v57 = vpack.c.bf16 %v1250_v50, %v1249_v49  ;;  %v1210_v49 = vld [vmem:[%s3776_s5 + $0x478] sm:$0xff] }
 0x23c   : > { %v1209_v44 = vld [vmem:[%s3776_s5 + $0x470] sm:$0xff]  ;;  %v1294_v10 = vld [vmem:[%s3776_s5 + $0x718] sm:$0xff] }
 0x23d   : > { %v1241_v50 = vld [vmem:[%s3776_s5 + $0x570] sm:$0xff] }
 0x23e   : > { %2408 = vmatpush3.bf16.msra.mxu0 %v2407_v61  ;;  %2440 = vmatpush3.bf16.msra.mxu1 %v2439_v62  ;;  %v1252_v61 = vld [vmem:[%s3776_s5 + $0x5c8] sm:$0xff]  ;;  %v2455_v62 = vpack.c.bf16 %v1202_v54, %v1201_v53  ;;  %v1307_v54 = vld [vmem:[%s3776_s5 + $0x780] sm:$0xff] }
 0x23f   : > { %2442 = vmatprep.subr.bf16.mxu0 %v2441_v1  ;;  %2474 = vmatprep.subr.bf16.mxu1 %v2473_v2  ;;  %v2457_v1 = vpack.c.bf16 %v1220_v58, %v1219_v37  ;;  %v1203_v2 = vld [vmem:[%s3776_s5 + $0x440] sm:$0xff]  ;;  %v2489_v8 = vpack.c.bf16 %v1252_v61, %v1251_v59  ;;  %v1276_v53 = vld [vmem:[%s3776_s5 + $0x688] sm:$0xff]  ;;  %v2537_v61 = vpack.c.bf16 %v1308_v55, %v1307_v54  ;;  %v1285_v54 = vld [vmem:[%s3776_s5 + $0x6d0] sm:$0xff] }
 0x240   : > { %v2459_v11 = vpack.c.bf16 %v1204_v7, %v1203_v2  ;;  %v1259_v58 = vld [vmem:[%s3776_s5 + $0x600] sm:$0xff]  ;;  %v1260_v59 = vld [vmem:[%s3776_s5 + $0x608] sm:$0xff]  ;;  %v1277_v2 = vld [vmem:[%s3776_s5 + $0x690] sm:$0xff] }
 0x241   : > { %1529 = vmatmul.mubr.f32.vlgmr.msra.gmra.mrb[10].mxu0 %v708_v14  ;;  %1599 = vmatmul.mubr.f32.vlgmr.msra.gmra.mrb[10].mxu1 %v779_v15  ;;  %v1205_v14 = vld [vmem:[%s3776_s5 + $0x450] sm:$0xff]  ;;  %v1206_v15 = vld [vmem:[%s3776_s5 + $0x458] sm:$0xff] }
 0x242   : > { %2444 = vmatpush3.bf16.msra.mxu0 %v2443_v13  ;;  %1668 = vmatprep.mubr.f32.mxu0 %v852_v19  ;;  %v2461_v13 = vpack.c.bf16 %v1222_v9, %v1221_v35  ;;  %v1224_v19 = vld [vmem:[%s3776_s5 + $0x4e8] sm:$0xff]  ;;  %v2463_v21 = vpack.c.bf16 %v1206_v15, %v1205_v14  ;;  %v1278_v7 = vld [vmem:[%s3776_s5 + $0x698] sm:$0xff]  ;;  %v1261_v9 = vld [vmem:[%s3776_s5 + $0x610] sm:$0xff] }
 0x243   : > { %2476 = vmatpush3.bf16.msra.mxu1 %v2475_v34  ;;  %1738 = vmatprep.mubr.f32.mxu1 %v923_v24  ;;  %v1237_v34 = vld [vmem:[%s3776_s5 + $0x550] sm:$0xff]  ;;  %v2465_v23 = vpack.c.bf16 %v1224_v19, %v1223_v18  ;;  %v1207_v24 = vld [vmem:[%s3776_s5 + $0x460] sm:$0xff]  ;;  %v2509_v60 = vpack.c.bf16 %v1278_v7, %v1277_v2  ;;  %v1312_v15 = vld [vmem:[%s3776_s5 + $0x7a8] sm:$0xff] }
 0x244   : > { %2446 = vmatprep.subr.bf16.mxu0 %v2445_v20  ;;  %2478 = vmatprep.subr.bf16.mxu1 %v2477_v22  ;;  %v1255_v20 = vld [vmem:[%s3776_s5 + $0x5e0] sm:$0xff]  ;;  %v1256_v22 = vld [vmem:[%s3776_s5 + $0x5e8] sm:$0xff]  ;;  %v2495_v63 = vpack.c.bf16 %v1238_v17, %v1237_v34  ;;  %v1065_v34 = vadd.f32 %v3336_v48, %v478_v42  ;;  %v1286_v55 = vld [vmem:[%s3776_s5 + $0x6d8] sm:$0xff] }
 0x245   : > { %v1311_v14 = vld [vmem:[%s3776_s5 + $0x7a0] sm:$0xff]  ;;  %v1264_v18 = vld [vmem:[%s3776_s5 + $0x628] sm:$0xff]  ;;  %v1302_v2 = vld [vmem:[%s3776_s5 + $0x758] sm:$0xff] }
 0x246   : > { %2448 = vmatpush3.bf16.msra.mxu0 %v2447_v26  ;;  %v2497_v26 = vpack.c.bf16 %v1256_v22, %v1255_v20  ;;  %v1295_v48 = vld [vmem:[%s3776_s5 + $0x720] sm:$0xff]  ;;  %v1296_v19 = vld [vmem:[%s3776_s5 + $0x728] sm:$0xff]  ;;  %v1281_v20 = vld [vmem:[%s3776_s5 + $0x6b0] sm:$0xff] }
 0x247   : > { %2480 = vmatpush3.bf16.msra.mxu1 %v2479_v27  ;;  %2450 = vmatprep.subr.bf16.mxu0 %v2449_v28  ;;  %v1240_v27 = vld [vmem:[%s3776_s5 + $0x568] sm:$0xff]  ;;  %v1225_v28 = vld [vmem:[%s3776_s5 + $0x4f0] sm:$0xff]  ;;  %v1282_v22 = vld [vmem:[%s3776_s5 + $0x6b8] sm:$0xff] }
 0x248   : > { %2482 = vmatprep.subr.bf16.mxu1 %v2481_v40  ;;  %v2467_v40 = vpack.c.bf16 %v1208_v5, %v1207_v24  ;;  %v2499_v41 = vpack.c.bf16 %v1240_v27, %v1239_v25  ;;  %v2469_v43 = vpack.c.bf16 %v1226_v6, %v1225_v28  ;;  %v2547_v24 = vpack.c.bf16 %v1296_v19, %v1295_v48  ;;  %v1265_v25 = vld [vmem:[%s3776_s5 + $0x630] sm:$0xff]  ;;  %v1298_v6 = vld [vmem:[%s3776_s5 + $0x738] sm:$0xff]  ;;  %v1287_v7 = vld [vmem:[%s3776_s5 + $0x6e0] sm:$0xff] }
 0x249   : > { %v2517_v5 = vpack.c.bf16 %v1282_v22, %v1281_v20  ;;  %v1297_v27 = vld [vmem:[%s3776_s5 + $0x730] sm:$0xff]  ;;  %v1288_v42 = vld [vmem:[%s3776_s5 + $0x6e8] sm:$0xff]  ;;  %v1306_v48 = vld [vmem:[%s3776_s5 + $0x778] sm:$0xff] }
 0x24a   : > { %2452 = vmatpush3.bf16.msra.mxu0 %v2451_v51  ;;  %v2501_v51 = vpack.c.bf16 %v1258_v39, %v1257_v38  ;;  %v1283_v38 = vld [vmem:[%s3776_s5 + $0x6c0] sm:$0xff]  ;;  %v1284_v39 = vld [vmem:[%s3776_s5 + $0x6c8] sm:$0xff] }
 0x24b   : > { %2484 = vmatpush3.bf16.msra.mxu1 %v2483_v52  ;;  %2454 = vmatprep.subr.bf16.mxu0 %v2453_v32  ;;  %v1242_v52 = vld [vmem:[%s3776_s5 + $0x578] sm:$0xff]  ;;  %v1275_v32 = vld [vmem:[%s3776_s5 + $0x680] sm:$0xff] }
 0x24c   : > { %2486 = vmatprep.subr.bf16.mxu1 %v2485_v57  ;;  %v2471_v57 = vpack.c.bf16 %v1210_v49, %v1209_v44  ;;  %v2503_v36 = vpack.c.bf16 %v1242_v52, %v1241_v50  ;;  %v2505_v37 = vpack.c.bf16 %v1276_v53, %v1275_v32  ;;  %v2551_v44 = vpack.c.bf16 %v1298_v6, %v1297_v27  ;;  %v1267_v50 = vld [vmem:[%s3776_s5 + $0x640] sm:$0xff]  ;;  %v1300_v53 = vld [vmem:[%s3776_s5 + $0x748] sm:$0xff] }
 0x24d   : > { %v2521_v49 = vpack.c.bf16 %v1284_v39, %v1283_v38  ;;  %v1299_v52 = vld [vmem:[%s3776_s5 + $0x740] sm:$0xff] }
 0x24e   : > { %2456 = vmatpush3.bf16.msra.mxu0 %v2455_v62  ;;  %v1291_v62 = vld [vmem:[%s3776_s5 + $0x700] sm:$0xff] }
 0x24f   : > { %2488 = vmatpush3.bf16.msra.mxu1 %v2487_v0  ;;  %2458 = vmatprep.subr.bf16.mxu0 %v2457_v1  ;;  %v1292_v0 = vld [vmem:[%s3776_s5 + $0x708] sm:$0xff]  ;;  %v470_v1 = vrot.slane %v3105_v31, %v437_v56  ;;  %v1310_v56 = vld [vmem:[%s3776_s5 + $0x798] sm:$0xff]  ;;  %v1293_v31 = vld [vmem:[%s3776_s5 + $0x710] sm:$0xff] }
 0x250   : > { %2490 = vmatprep.subr.bf16.mxu1 %v2489_v8  ;;  %v2507_v8 = vpack.c.bf16 %v1260_v59, %v1259_v58  ;;  %v2539_v35 = vpack.c.bf16 %v1292_v0, %v1291_v62  ;;  %v2555_v58 = vpack.c.bf16 %v1300_v53, %v1299_v52  ;;  %v2525_v59 = vpack.c.bf16 %v1286_v55, %v1285_v54  ;;  %v1270_v62 = vld [vmem:[%s3776_s5 + $0x658] sm:$0xff]  ;;  %v1301_v0 = vld [vmem:[%s3776_s5 + $0x750] sm:$0xff] }
 0x252   : > { %2460 = vmatpush3.bf16.msra.mxu0 %v2459_v11  ;;  %v1280_v11 = vld [vmem:[%s3776_s5 + $0x6a8] sm:$0xff] }
 0x253   : > { %2492 = vmatpush3.bf16.msra.mxu1 %v2491_v12  ;;  %2462 = vmatprep.subr.bf16.mxu0 %v2461_v13  ;;  %v994_v12 = vadd.f32 %v3334_v47, %v470_v1  ;;  %v2541_v13 = vpack.c.bf16 %v1310_v56, %v1309_v30  ;;  %v2543_v47 = vpack.c.bf16 %v1294_v10, %v1293_v31  ;;  %v1320_v30 = vld [vmem:[%s3776_s5 + $0x7e8] sm:$0xff] }
 0x254   : > { %2494 = vmatprep.subr.bf16.mxu1 %v2493_v16  ;;  %v2511_v16 = vpack.c.bf16 %v1262_v29, %v1261_v9  ;;  %v2513_v17 = vpack.c.bf16 %v1280_v11, %v1279_v33  ;;  %v2529_v9 = vpack.c.bf16 %v1288_v42, %v1287_v7  ;;  %v1271_v29 = vld [vmem:[%s3776_s5 + $0x660] sm:$0xff]  ;;  %v1272_v31 = vld [vmem:[%s3776_s5 + $0x668] sm:$0xff]  ;;  %v1289_v11 = vld [vmem:[%s3776_s5 + $0x6f0] sm:$0xff] }
 0x255   : > { %v1304_v33 = vld [vmem:[%s3776_s5 + $0x768] sm:$0xff] }
 0x256   : > { %2464 = vmatpush3.bf16.msra.mxu0 %v2463_v21  ;;  %v1313_v21 = vld [vmem:[%s3776_s5 + $0x7b0] sm:$0xff] }
 0x257   : > { %2496 = vmatpush3.bf16.msra.mxu1 %v2495_v63  ;;  %2466 = vmatprep.subr.bf16.mxu0 %v2465_v23  ;;  %v1314_v63 = vld [vmem:[%s3776_s5 + $0x7b8] sm:$0xff] }
 0x258   : > { %2498 = vmatprep.subr.bf16.mxu1 %v2497_v26  ;;  %v1266_v26 = vld [vmem:[%s3776_s5 + $0x638] sm:$0xff]  ;;  %v2549_v28 = vpack.c.bf16 %v1314_v63, %v1313_v21  ;;  %v1323_v21 = vld [vmem:[%s3777_s6] sm:$0x1] }
 0x25a   : > { %2468 = vmatpush3.bf16.msra.mxu0 %v2467_v40  ;;  %v1315_v40 = vld [vmem:[%s3776_s5 + $0x7c0] sm:$0xff] }
 0x25b   : > { %2500 = vmatpush3.bf16.msra.mxu1 %v2499_v41  ;;  %2470 = vmatprep.subr.bf16.mxu0 %v2469_v43  ;;  %v1316_v41 = vld [vmem:[%s3776_s5 + $0x7c8] sm:$0xff]  ;;  %v2519_v43 = vpack.c.bf16 %v1266_v26, %v1265_v25 }
 0x25c   : > { %2502 = vmatprep.subr.bf16.mxu1 %v2501_v51  ;;  %v1268_v51 = vld [vmem:[%s3776_s5 + $0x648] sm:$0xff]  ;;  %v2553_v32 = vpack.c.bf16 %v1316_v41, %v1315_v40 }
 0x25e   : > { %2472 = vmatpush3.bf16.msra.mxu0 %v2471_v57  ;;  %v1317_v57 = vld [vmem:[%s3776_s5 + $0x7d0] sm:$0xff] }
 0x25f   : > { %2504 = vmatpush3.bf16.msra.mxu1 %v2503_v36  ;;  %2506 = vmatprep.subr.bf16.mxu0 %v2505_v37  ;;  %v1318_v36 = vld [vmem:[%s3776_s5 + $0x7d8] sm:$0xff]  ;;  %v2523_v37 = vpack.c.bf16 %v1268_v51, %v1267_v50 }
 0x260   : > { %2538 = vmatprep.subr.bf16.mxu1 %v2537_v61  ;;  %v1269_v61 = vld [vmem:[%s3776_s5 + $0x650] sm:$0xff]  ;;  %v2557_v1 = vpack.c.bf16 %v1318_v36, %v1317_v57 }
 0x261   : > { %1669 = vmatmul.mubr.f32.vlgmr.msra.gmra.mrb[12].mxu0 %v3271_v3  ;;  %v1263_v3 = vld [vmem:[%s3776_s5 + $0x620] sm:$0xff]  ;;  %v2527_v56 = vpack.c.bf16 %v1270_v62, %v1269_v61 }
 0x262   : > { %1739 = vmatmul.mubr.f32.vlgmr.msra.gmra.mrb[12].mxu1 %v3273_v4  ;;  %2508 = vmatpush3.bf16.msra.mxu0 %v2507_v8  ;;  %v2545_v4 = vpack.c.bf16 %v1312_v15, %v1311_v14  ;;  %v2515_v23 = vpack.c.bf16 %v1264_v18, %v1263_v3  ;;  %v1319_v8 = vld [vmem:[%s3776_s5 + $0x7e0] sm:$0xff]  ;;  %v1322_v14 = vld [vmem:[%s3776_s5 + $0x7f8] sm:$0xff]  ;;  %v2531_v15 = vpack.c.bf16 %v1272_v31, %v1271_v29  ;;  %v1305_v18 = vld [vmem:[%s3776_s5 + $0x770] sm:$0xff] }
 0x263   : > { %1808 = vmatprep.mubr.f32.mxu0 %v994_v12  ;;  %2540 = vmatpush3.bf16.msra.mxu1 %v2539_v35  ;;  %v2559_v35 = vpack.c.bf16 %v1302_v2, %v1301_v0  ;;  %v2561_v10 = vpack.c.bf16 %v1320_v30, %v1319_v8  ;;  %v1290_v12 = vld [vmem:[%s3776_s5 + $0x6f8] sm:$0xff]  ;;  %v2567_v19 = vpack.c.bf16 %v1306_v48, %v1305_v18 }
 0x264   : > { %1878 = vmatprep.mubr.f32.mxu1 %v1065_v34  ;;  %2510 = vmatprep.subr.bf16.mxu0 %v2509_v60  ;;  %v1303_v60 = vld [vmem:[%s3776_s5 + $0x760] sm:$0xff] }
 0x265   : > { %2542 = vmatprep.subr.bf16.mxu1 %v2541_v13  ;;  %v1321_v13 = vld [vmem:[%s3776_s5 + $0x7f0] sm:$0xff]  ;;  %v2563_v34 = vpack.c.bf16 %v1304_v33, %v1303_v60 }
 0x266   : > { %2512 = vmatpush3.bf16.msra.mxu0 %v2511_v16  ;;  %v2533_v16 = vpack.c.bf16 %v1290_v12, %v1289_v11  ;;  %v2565_v3 = vpack.c.bf16 %v1322_v14, %v1321_v13 }
 0x267   : > { %2544 = vmatpush3.bf16.msra.mxu1 %v2543_v47  ;;  %2514 = vmatprep.subr.bf16.mxu0 %v2513_v17  ;;  %v1273_v47 = vld [vmem:[%s3776_s5 + $0x670] sm:$0xff]  ;;  %v1274_v17 = vld [vmem:[%s3776_s5 + $0x678] sm:$0xff] }
 0x268   : > { %2546 = vmatprep.subr.bf16.mxu1 %v2545_v4  ;;  %v2535_v4 = vpack.c.bf16 %v1274_v17, %v1273_v47 }
 0x26a   : > { %2516 = vmatpush3.bf16.msra.mxu0 %v2515_v23 }
 0x26b   : > { %2548 = vmatpush3.bf16.msra.mxu1 %v2547_v24  ;;  %2518 = vmatprep.subr.bf16.mxu0 %v2517_v5 }
 0x26c   : > { %2550 = vmatprep.subr.bf16.mxu1 %v2549_v28 }
 0x26e   : > { %2520 = vmatpush3.bf16.msra.mxu0 %v2519_v43 }
 0x26f   : > { %2552 = vmatpush3.bf16.msra.mxu1 %v2551_v44  ;;  %2522 = vmatprep.subr.bf16.mxu0 %v2521_v49 }
 0x270   : > { %2554 = vmatprep.subr.bf16.mxu1 %v2553_v32 }
 0x272   : > { %2524 = vmatpush3.bf16.msra.mxu0 %v2523_v37 }
 0x273   : > { %2556 = vmatpush3.bf16.msra.mxu1 %v2555_v58  ;;  %2526 = vmatprep.subr.bf16.mxu0 %v2525_v59  ;;  %v1884_v59 = vld [vmem:[%s3779_s8] sm:$0x1] }
 0x274   : > { %2558 = vmatprep.subr.bf16.mxu1 %v2557_v1 }
 0x276   : > { %2528 = vmatpush3.bf16.msra.mxu0 %v2527_v56 }
 0x277   : > { %2560 = vmatpush3.bf16.msra.mxu1 %v2559_v35  ;;  %2530 = vmatprep.subr.bf16.mxu0 %v2529_v9 }
 0x278   : > { %2562 = vmatprep.subr.bf16.mxu1 %v2561_v10 }
 0x27a   : > { %2532 = vmatpush3.bf16.msra.mxu0 %v2531_v15 }
 0x27b   : > { %2564 = vmatpush3.bf16.msra.mxu1 %v2563_v34  ;;  %2534 = vmatprep.subr.bf16.mxu0 %v2533_v16 }
 0x27c   : > { %2566 = vmatprep.subr.bf16.mxu1 %v2565_v3 }
 0x27e   : > { %2536 = vmatpush3.bf16.msra.mxu0 %v2535_v4 }
 0x27f   : > { %2568 = vmatpush3.bf16.msra.mxu1 %v2567_v19 }
 0x281   : > { %1809 = vmatmul.mubr.f32.vlgmr.msra.gmra.mrb[14].mxu0 %v3329_v45 }
 0x282   : > { %1879 = vmatmul.mubr.f32.vlgmr.msra.gmra.mrb[14].mxu1 %v3332_v46 }
 0x2f4   : > { %v2001_v20 = vpop.f32.mrb[8].mxu0  ;;  %v2036_v22 = vpop.f32.mrb[8].mxu1 }
 0x2f5   : > { %v2002_v63 = vpop.f32.mrb[9].mxu0  ;;  %v2037_v23 = vpop.f32.mrb[9].mxu1 }
 0x2f6   : > { %v2003_v24 = vadd.f32 %v2002_v63, %v2001_v20  ;;  %v2038_v5 = vadd.f32 %v2037_v23, %v2036_v22 }
 0x2f8   : > { %v1391_v25 = vadd.f32 %v2003_v24, %v1323_v21 }
 0x2fa   : > { %v1461_v26 = vadd.f32 %v2038_v5, %v1391_v25 }
 0x314   : > { %v2071_v27 = vpop.f32.mrb[10].mxu0  ;;  %v2106_v28 = vpop.f32.mrb[10].mxu1 }
 0x315   : > { %v2072_v6 = vpop.f32.mrb[11].mxu0  ;;  %v2107_v38 = vpop.f32.mrb[11].mxu1 }
 0x316   : > { %v2073_v39 = vadd.f32 %v2072_v6, %v2071_v27  ;;  %v2108_v45 = vadd.f32 %v2107_v38, %v2106_v28 }
 0x318   : > { %v1531_v40 = vadd.f32 %v2073_v39, %v1461_v26 }
 0x31a   : > { %v1601_v46 = vadd.f32 %v2108_v45, %v1531_v40 }
 0x334   : > { %v2141_v41 = vpop.f32.mrb[12].mxu0 }
 0x335   : > { %v2176_v43 = vpop.f32.mrb[12].mxu1  ;;  %v2142_v44 = vpop.f32.mrb[13].mxu0 }
 0x336   : > { %v2143_v49 = vadd.f32 %v2142_v44, %v2141_v41  ;;  %v2177_v50 = vpop.f32.mrb[13].mxu1 }
 0x337   : > { %v2178_v51 = vadd.f32 %v2177_v50, %v2176_v43 }
 0x338   : > { %v1671_v52 = vadd.f32 %v2143_v49, %v1601_v46 }
 0x33a   : > { %v1741_v32 = vadd.f32 %v2178_v51, %v1671_v52 }
 0x354   : > { %v2211_v53 = vpop.f32.mrb[14].mxu0 }
 0x355   : > { %v2246_v54 = vpop.f32.mrb[14].mxu1  ;;  %v2212_v55 = vpop.f32.mrb[15].mxu0 }
 0x356   : > { %v2213_v57 = vadd.f32 %v2212_v55, %v2211_v53  ;;  %v2247_v36 = vpop.f32.mrb[15].mxu1 }
 0x357   : > { %v2248_v37 = vadd.f32 %v2247_v36, %v2246_v54 }
 0x358   : > { %v1811_v58 = vadd.f32 %v2213_v57, %v1741_v32 }
 0x35a   : > { %v1881_v61 = vadd.f32 %v2248_v37, %v1811_v58 }
 0x35c   : > { %v1885_v62 = vadd.f32 %v1884_v59, %v1881_v61 }
 0x35e   : > { %1886 = vst.msk [vmem:[%s2663_s23] sm:$0x1] %vm330_vm0, %v1885_v62 }
 0x35f PF: > { %s19_s30 = sadd.s32 1, %s2587_s30  }
 0x360   : > { %p16_p4 = scmp.ge.s32.totalorder %s19_s30, 4  }
 0x362   :  { %18 = sbr.rel (!%p16_p4) target bundleno = 1 (0x1), region = 86 }

// kernel: forward.6
= control target key start
LH: loop header
LB: loop body
LE: loop exit
PB: predicated region body
PF: predicated region fallthrough
CT: control target
= control target key end

     0   :  { %s4776_s25 = smov 0   ;;  %s4778_s26 = smov 0   ;;  %s5458_s0 = inlined_call_operand.vmem [shape: f32[2,17,32], index: 0, kind: input, shape index: {}]   ;;  %s5459_s1 = inlined_call_operand.vmem [shape: f32[2,1,32], index: 1, kind: input, shape index: {}]   ;;  %s5460_s2 = inlined_call_operand.vmem [shape: f32[2,1,32], index: 2, kind: input, shape index: {}]   ;;  %s5461_s3 = inlined_call_operand.vmem [shape: f32[2,12,32,8], index: 3, kind: input, shape index: {}]   ;;  %s5462_s4 = inlined_call_operand.vmem [shape: f32[2,12,1,8], index: 4, kind: input, shape index: {}]   ;;  %s5463_s5 = inlined_call_operand.vmem [shape: f32[2,4,8,32], index: 5, kind: input, shape index: {}]   ;;  %s5464_s6 = inlined_call_operand.vmem [shape: f32[2,1,32], index: 6, kind: input, shape index: {}]   ;;  %s5465_s7 = inlined_call_operand.vmem [shape: f32[2,1,32], index: 7, kind: input, shape index: {}]   ;;  %s5466_s8 = inlined_call_operand.vmem [shape: f32[2,1,32], index: 8, kind: input, shape index: {}]   ;;  %s5467_s9 = inlined_call_operand.vmem [shape: f32[2,32,128], index: 9, kind: input, shape index: {}]   ;;  %s5468_s10 = inlined_call_operand.vmem [shape: f32[2,1,128], index: 10, kind: input, shape index: {}]   ;;  %s5469_s11 = inlined_call_operand.vmem [shape: f32[2,128,32], index: 11, kind: input, shape index: {}]   ;;  %s5470_s12 = inlined_call_operand.vmem [shape: f32[2,1,32], index: 12, kind: input, shape index: {}]   ;;  %s5471_s13 = inlined_call_operand.vmem [shape: f32[2,17,32], index: 13, kind: output, shape index: {}]  }
   0x1   :  { %5476 = sst [smem:[#allocation9_spill]] %s5458_s0  ;;  %s4780_s27 = smov 0  }
   0x2   :  { %5477 = sst [smem:[#allocation10_spill]] %s5460_s2  ;;  %s4782_s28 = smov 0  }
   0x3   :  { %5478 = sst [smem:[#allocation11_spill]] %s5461_s3  ;;  %s4784_s29 = smov 0  }
   0x4   :  { %5479 = sst [smem:[#allocation12_spill]] %s5462_s4 }
   0x5   :  { %5480 = sst [smem:[#allocation13_spill]] %s5463_s5 }
   0x6   :  { %5481 = sst [smem:[#allocation14_spill]] %s5471_s13 }
   0x7 LB: > { %5482 = sst [smem:[#allocation3_spill]] %s4685_s25  ;;  %s32_s30 = sadd.s32 1, %s4693_s27  ;;  %s4701_s29 = sphi %s4784_s29, %s23_s29   ;;  %s4697_s28 = sphi %s4782_s28, %s5508_s28   ;;  %s4693_s27 = sphi %s4780_s27, %s5507_s27   ;;  %s4689_s26 = sphi %s4778_s26, %s5506_s26   ;;  %s4685_s25 = sphi %s4776_s25, %s5505_s25  }
   0x8   : > { %5483 = sst [smem:[#allocation4_spill]] %s4693_s27  ;;  %s35_s14 = sadd.s32 1, %s4697_s28 }
   0x9   : > { %5484 = sst [smem:[#allocation5_spill]] %s4697_s28  ;;  %p33_p0 = scmp.ge.s32.totalorder %s32_s30, 2 }
   0xa   : > { %5485 = sst [smem:[#allocation6_spill]] %s4701_s29  ;;  %p3633_p1 = scmp.ge.s32.totalorder %s4701_s29, 1 }
   0xb   : > { %p504_p2 = scmp.lt.s32.totalorder %s4701_s29, 5  ;;  %s5510_s30 = smov (%p33_p0, %s32_s30), 0 }
   0xc   : > { %5486 = sst [smem:[#allocation7_spill]] %s5510_s30  ;;  %s5512_s14 = smov (!%p33_p0, %s35_s14), %s4697_s28 }
   0xd   : > { %p505_p3 = pnand %p3633_p1, %p504_p2  ;;  %p37_p4 = scmp.ge.s32.totalorder %s5512_s14, 2 }
   0xe   : > { %p593_p5 = scmp.lt.s32.totalorder (!%p505_p3), %s4689_s26, 1  ;;  %p598_p6 = scmp.lt.s32.totalorder (!%p505_p3), %s4685_s25, 1 }
   0xf   : > { %s5514_s14 = smov (%p37_p4, %s5512_s14), 0  ;;  %508 = sbr.rel (%p505_p3) target bundleno = 5061 (0x13c5), region = 72 }
  0x10   : > { %5487 = sst [smem:[#allocation8_spill]] %s5514_s14  ;;  %s5489_s0 = sld [smem:[#allocation9_spill]] (!%p505_p3) }
  0x11   : > { %s5490_s3 = sld [smem:[#allocation11_spill]] (!%p505_p3)  ;;  %s5491_s5 = sld [smem:[#allocation13_spill]] (!%p505_p3) }
  0x12   : > { %s5492_s4 = sld [smem:[#allocation12_spill]] (!%p505_p3) }
  0x16   : > { %s5516_s26 = smov (!%p593_p5, %s4689_s26), 1 }
  0x17   : > { %s4810_s15 = scalar_select %p598_p6, %s4685_s25, 1 }
  0x18   : > { %s4548_s16 = smul.u32 24, %s5516_s26 }
  0x19   : > { %s4549_s30 = smul.u32 384, %s4810_s15  ;;  %s3815_s27 = sshll.u32 %s4810_s15, 5 }
  0x1a   : > { %s597_s14 = scalar_lea.vmem %s5489_s0, %s4548_s16  ;;  %s4550_s28 = smul.u32 12, %s4810_s15 }
  0x1b   : > { %s4829_s26 = scalar_lea.vmem %s5490_s3, %s4549_s30  ;;  %s4834_s18 = scalar_lea.vmem %s5491_s5, %s3815_s27 }
  0x1c   : > { %s4839_s21 = scalar_lea.vmem %s5492_s4, %s4550_s28  ;;  %s4856_s5 = scalar_lea.vmem %s5467_s9, %s3815_s27 }
  0x1d   : > { %s634_s20 = scalar_lea.vmem %s5468_s10, %s4810_s15  ;;  %s3817_s4 = sshll.u32 %s4810_s15, 7 }
  0x1e   : > { %s642_s22 = scalar_lea.vmem %s5470_s12, %s4810_s15  ;;  %s4870_s25 = scalar_lea.vmem %s5469_s11, %s3817_s4 }
  0x1f   : > { %s5493_s3 = sld [smem:[#allocation14_spill]]  ;;  %s5494_s27 = sld [smem:[#allocation3_spill]] }
  0x25   : > { %s4875_s13 = scalar_lea.vmem %s5493_s3, %s4548_s16  ;;  %p3643_p7 = scmp.ne.s32.totalorder %s5494_s27, 0 }
  0x26   : > { %v652_v0 = vld [vmem:[%s597_s14] sm:$0xff] (!%p3643_p7)  ;;  %vm655_vm0 = vcmask (!%p3643_p7), 261120   ;;  %v653_v1 = vld [vmem:[%s597_s14 + $0x8] sm:$0xff] (!%p3643_p7)  ;;  %v654_v2 = vld [vmem:[%s597_s14 + $0x10] sm:$0x1] (!%p3643_p7)  ;;  %vm658_vm1 = vcmask (!%p3643_p7), 253952  }
  0x27   : > { %651 = sbr.rel (%p3643_p7) target bundleno = 46 (0x2e), region = 76  ;;  %656 = vst.msk [vmem:[#allocation2] sm:$0xff] (!%p3643_p7), %vm655_vm0, %v652_v0  ;;  %657 = vst.msk [vmem:[#allocation2 + $0x8] sm:$0xff] (!%p3643_p7), %vm655_vm0, %v653_v1 }
  0x28   : > { %659 = vst.msk [vmem:[#allocation2 + $0x10] sm:$0x1] (!%p3643_p7), %vm658_vm1, %v654_v2 }
  0x2e PF: > { %v660_v3 = vld [vmem:[#allocation2] sm:$0xff]  ;;  %vm665_vm2 = vcmask 261120   ;;  %vm672_vm3 = vcmask 253952   ;;  %v661_v5 = vld [vmem:[#allocation2 + $0x8] sm:$0xff]  ;;  %v4703_v27 = vmov 0.0|0.0   ;;  %v727_v28 = vld [vmem:[%s4829_s26 + $0x10] sm:$0xff]  ;;  %s5495_s14 = scalar_lea.vmem %s5459_s1, %s4810_s15  ;;  %s5501_s24 = scalar_lea.vmem %s5465_s7, %s4810_s15 }
  0x2f   : > { %v662_v4 = vld [vmem:[#allocation2 + $0x10] sm:$0x1]  ;;  %v666_v6 = vsel %vm665_vm2, %v660_v3, 0.0  ;;  %v669_v8 = vsel %vm665_vm2, %v661_v5, 0.0  ;;  %v725_v24 = vld [vmem:[%s4829_s26] sm:$0xff]  ;;  %v726_v25 = vld [vmem:[%s4829_s26 + $0x8] sm:$0xff]  ;;  %4418 = vmatprep.subr.bf16.mxu0 %v4703_v27  ;;  %4436 = vmatprep.subr.bf16.mxu1 %v4703_v27  ;;  %s5502_s29 = scalar_lea.vmem %s5466_s8, %s4810_s15 }
  0x30   : > { %v673_v7 = vsel %vm672_vm3, %v662_v4, 0.0  ;;  %667 = vadd.xlane.f32.xlu0 %v666_v6  ;;  %v4419_v26 = vpack.c.bf16 %v726_v25, %v725_v24  ;;  %v728_v29 = vld [vmem:[%s4829_s26 + $0x18] sm:$0xff]  ;;  %vm4704_vm4 = vmmov 0   ;;  %v4705_v31 = vmov 0.0   ;;  %v3644_v42 = vld [vmem:[%s5495_s14] ss:$0 sm:$0xff] }
  0x31   : > { %674 = vadd.xlane.f32.xlu1 %v673_v7  ;;  %v4422_v30 = vpack.c.bf16 %v728_v29, %v727_v28  ;;  %4000 = vmatprep.mubr.msk.f32.mxu0 %vm4704_vm4, %v4705_v31  ;;  %v3650_v44 = vld [vmem:[%s4829_s26 + $0x80] sm:$0xff]  ;;  %v3651_v45 = vld [vmem:[%s4829_s26 + $0x88] sm:$0xff]  ;;  %s5496_s19 = sld [smem:[#allocation10_spill]]  ;;  %v3652_v54 = vld [vmem:[%s4829_s26 + $0x90] sm:$0xff]  ;;  %vm1011_vm5 = vcmask 64512   ;;  %vm1157_vm7 = vcmask 1040384  }
  0x32   : > { %4420 = vmatpush3.bf16.msra.mxu0 %v4419_v26  ;;  %4049 = vmatprep.mubr.msk.f32.mxu1 %vm4704_vm4, %v4705_v31  ;;  %v4425_v49 = vpack.c.bf16 %v3651_v45, %v3650_v44  ;;  %v3653_v55 = vld [vmem:[%s4829_s26 + $0x98] sm:$0xff]  ;;  %v3659_v61 = vld [vmem:[%s4829_s26 + $0x100] sm:$0xff]  ;;  %v3660_v62 = vld [vmem:[%s4829_s26 + $0x108] sm:$0xff]  ;;  %vm1113_vm8 = vcmask 138240   ;;  %vm1120_vm9 = vcmask 131072  }
  0x33   : > { %4421 = vmatprep.subr.bf16.mxu0 %v4703_v27  ;;  %v4428_v57 = vpack.c.bf16 %v3653_v55, %v3652_v54  ;;  %v4431_v63 = vpack.c.bf16 %v3660_v62, %v3659_v61  ;;  %v3661_v0 = vld [vmem:[%s4829_s26 + $0x110] sm:$0xff]  ;;  %v3662_v1 = vld [vmem:[%s4829_s26 + $0x118] sm:$0xff]  ;;  %vm4963_vm6 = vmpackc.low %vm1011_vm5, %vm1011_vm5 }
  0x34   : > { %670 = vadd.xlane.f32.xlu0 %v669_v8  ;;  %v4434_v2 = vpack.c.bf16 %v3662_v1, %v3661_v0  ;;  %v3678_v25 = vld [vmem:[%s4829_s26 + $0x20] sm:$0xff]  ;;  %v3679_v26 = vld [vmem:[%s4829_s26 + $0x28] sm:$0xff] }
  0x35   : > { %v3696_v44 = vld [vmem:[%s4829_s26 + $0x120] sm:$0xff]  ;;  %v3697_v45 = vld [vmem:[%s4829_s26 + $0x128] sm:$0xff] }
  0x36   : > { %4423 = vmatpush3.bf16.msra.mxu0 %v4422_v30 }
  0x37   : > { %4424 = vmatprep.subr.bf16.mxu0 %v4703_v27  ;;  %s5497_s28 = scalar_lea.vmem %s5496_s19, %s4810_s15 }
  0x38   : > { %v3645_v46 = vld [vmem:[%s5497_s28] ss:$0 sm:$0xff] }
  0xbd   : > { %v668_v9 = vpop.xlane.xlu0 %667 }
  0xbe   : > { %v675_v10 = vpop.xlane.xlu1 %674  ;;  %v677_v11 = vmul.f32 0.03125, %v668_v9 }
  0xbf   : > { %v679_v12 = vmul.f32 0.03125, %v675_v10 }
  0xc0   : > { %v680_v13 = vsub.f32 %v660_v3, %v677_v11  ;;  %v3655_v11 = vld [vmem:[%s4839_s21 + $0x4] ss:$0 sm:$0xff] }
  0xc1   : > { %v682_v14 = vsub.f32 %v662_v4, %v679_v12  ;;  %v671_v15 = vpop.xlane.xlu0 %670 }
  0xc2   : > { %v678_v16 = vmul.f32 0.03125, %v671_v15  ;;  %v683_v17 = vmul.f32 %v680_v13, %v680_v13 }
  0xc3   : > { %v685_v18 = vmul.f32 %v682_v14, %v682_v14 }
  0xc4   : > { %v681_v19 = vsub.f32 %v661_v5, %v678_v16  ;;  %v686_v20 = vsel %vm665_vm2, %v683_v17, 0.0 }
  0xc5   : > { %687 = vadd.xlane.f32.xlu1 %v686_v20  ;;  %v692_v21 = vsel %vm672_vm3, %v685_v18, 0.0 }
  0xc6   : > { %v684_v22 = vmul.f32 %v681_v19, %v681_v19 }
  0xc8   : > { %v689_v23 = vsel %vm665_vm2, %v684_v22, 0.0  ;;  %v3664_v22 = vld [vmem:[%s4839_s21 + $0x8] ss:$0 sm:$0xff] }
  0xc9   : > { %693 = vadd.xlane.f32.xlu1 %v692_v21  ;;  %690 = vadd.xlane.f32.xlu0 %v689_v23  ;;  %v3646_v23 = vld [vmem:[%s4839_s21] ss:$0 sm:$0xff] }
 0x152   : > { %v688_v32 = vpop.xlane.xlu1 %687 }
 0x153   : > { %v695_v33 = vmul.f32 0.03125, %v688_v32 }
 0x155   : > { %v698_v34 = vadd.f32 1e-05, %v695_v33 }
 0x156   : > { %v694_v35 = vpop.xlane.xlu1 %693  ;;  %v691_v36 = vpop.xlane.xlu0 %690 }
 0x157   : > { %4594 = vrsqrt.f32 %v698_v34  ;;  %v697_v37 = vmul.f32 0.03125, %v694_v35  ;;  %v696_v38 = vmul.f32 0.03125, %v691_v36  ;;  %v4444_v34 = vpack.c.bf16 %v3679_v26, %v3678_v25  ;;  %v3680_v36 = vld [vmem:[%s4829_s26 + $0x30] sm:$0xff] }
 0x159   : > { %v700_v39 = vadd.f32 1e-05, %v697_v37  ;;  %v699_v40 = vadd.f32 1e-05, %v696_v38  ;;  %v3681_v37 = vld [vmem:[%s4829_s26 + $0x38] sm:$0xff] }
 0x15b   : > { %4596 = vrsqrt.f32 %v700_v39 }
 0x15c   : > { %4598 = vrsqrt.f32 %v699_v40 }
 0x161   : > { %v4595_v41 = vpop.eup %4594 }
 0x162   : > { %v704_v43 = vmul.f32 %v4595_v41, %v680_v13  ;;  %v4447_v41 = vpack.c.bf16 %v3681_v37, %v3680_v36 }
 0x164   : > { %v713_v47 = vmul.f32 %v3644_v42, %v704_v43 }
 0x165   : > { %v4597_v48 = vpop.eup %4596 }
 0x166   : > { %v4599_v50 = vpop.eup %4598  ;;  %v4908_v51 = vadd.f32 %v3645_v46, %v713_v47  ;;  %v706_v52 = vmul.f32 %v4597_v48, %v682_v14  ;;  %v3698_v47 = vld [vmem:[%s4829_s26 + $0x130] sm:$0xff]  ;;  %v3699_v48 = vld [vmem:[%s4829_s26 + $0x138] sm:$0xff] }
 0x167   : > { %v705_v53 = vmul.f32 %v4599_v50, %v681_v19 }
 0x168   : > { %4001 = vmatmul.mubr.msk.f32.vlgmr.msra.gmra.mrb[0].mxu0 %vm665_vm2, %v4908_v51  ;;  %v715_v58 = vmul.f32 %v3644_v42, %v706_v52 }
 0x169   : > { %v714_v56 = vmul.f32 %v3644_v42, %v705_v53  ;;  %4003 = vmatprep.mubr.msk.f32.mxu0 %vm4704_vm4, %v4705_v31  ;;  %4426 = vmatpush3.bf16.msra.mxu0 %v4425_v49  ;;  %v4459_v49 = vpack.c.bf16 %v3699_v48, %v3698_v47 }
 0x16a   : > { %4427 = vmatprep.subr.bf16.mxu0 %v4703_v27  ;;  %v4923_v60 = vadd.f32 %v3645_v46, %v715_v58 }
 0x16b   : > { %v4917_v59 = vadd.f32 %v3645_v46, %v714_v56  ;;  %v4456_v46 = vpack.c.bf16 %v3697_v45, %v3696_v44  ;;  %v3689_v44 = vld [vmem:[%s4829_s26 + $0xb0] sm:$0xff]  ;;  %v3690_v45 = vld [vmem:[%s4829_s26 + $0xb8] sm:$0xff] }
 0x16c   : > { %v4453_v47 = vpack.c.bf16 %v3690_v45, %v3689_v44 }
 0x16d   : > { %4004 = vmatmul.mubr.msk.f32.gmra.mrb[2].mxu0 %vm665_vm2, %v4917_v59 }
 0x16e   : > { %4006 = vmatprep.mubr.msk.f32.mxu0 %vm4704_vm4, %v4705_v31  ;;  %4429 = vmatpush3.bf16.msra.mxu0 %v4428_v57 }
 0x16f   : > { %4430 = vmatprep.subr.bf16.mxu0 %v4703_v27 }
 0x171   : > { %4007 = vmatmul.mubr.msk.f32.gmra.mrb[4].mxu0 %vm665_vm2, %v4923_v60 }
 0x172   : > { %4017 = vmatprep.mubr.msk.f32.mxu0 %vm4704_vm4, %v4705_v31 }
 0x175   : > { %4018 = vmatmul.mubr.msk.f32.vlgmr.msra.gmra.mrb[6].mxu0 %vm665_vm2, %v4908_v51 }
 0x176   : > { %4020 = vmatprep.mubr.msk.f32.mxu0 %vm4704_vm4, %v4705_v31  ;;  %4432 = vmatpush3.bf16.msra.mxu0 %v4431_v63 }
 0x177   : > { %4433 = vmatprep.subr.bf16.mxu0 %v4703_v27 }
 0x179   : > { %4021 = vmatmul.mubr.msk.f32.gmra.mrb[8].mxu0 %vm665_vm2, %v4917_v59 }
 0x17a   : > { %4023 = vmatprep.mubr.msk.f32.mxu0 %vm4704_vm4, %v4705_v31  ;;  %4435 = vmatpush3.bf16.msra.mxu0 %v4434_v2 }
 0x17b   : > { %4440 = vmatprep.subr.bf16.mxu0 %v4703_v27 }
 0x17d   : > { %4024 = vmatmul.mubr.msk.f32.gmra.mrb[10].mxu0 %vm665_vm2, %v4923_v60 }
 0x17e   : > { %4034 = vmatprep.mubr.msk.f32.mxu0 %vm4704_vm4, %v4705_v31 }
 0x181   : > { %4035 = vmatmul.mubr.msk.f32.vlgmr.msra.gmra.mrb[12].mxu0 %vm665_vm2, %v4908_v51 }
 0x182   : > { %4037 = vmatprep.mubr.msk.f32.mxu0 %vm4704_vm4, %v4705_v31 }
 0x185   : > { %4038 = vmatmul.mubr.msk.f32.gmra.mrb[14].mxu0 %vm665_vm2, %v4917_v59 }
 0x186   : > { %4040 = vmatprep.mubr.msk.f32.mxu0 %vm4704_vm4, %v4705_v31 }
 0x189   : > { %4041 = vmatmul.mubr.msk.f32.gmra.mrb[16].mxu0 %vm665_vm2, %v4923_v60 }
 0x18a   : > { %4064 = vmatprep.mubr.msk.f32.mxu0 %vm4704_vm4, %v4705_v31 }
 0x23b   : > { %v811_v3 = vpop.f32.mrb[0].mxu0 }
 0x23c   : > { %v4002_v4 = vpop.f32.mrb[1].mxu0  ;;  %v812_v33 = vadd.f32 %v3646_v23, %v811_v3 }
 0x240   : > { %v816_v5 = vpop.f32.mrb[2].mxu0 }
 0x241   : > { %v4005_v6 = vpop.f32.mrb[3].mxu0  ;;  %v817_v40 = vadd.f32 %v3646_v23, %v816_v5 }
 0x244   : > { %v821_v7 = vpop.f32.mrb[4].mxu0 }
 0x245   : > { %v4008_v8 = vpop.f32.mrb[5].mxu0  ;;  %v822_v43 = vadd.f32 %v3646_v23, %v821_v7 }
 0x248   : > { %v904_v9 = vpop.f32.mrb[6].mxu0 }
 0x249   : > { %v4019_v10 = vpop.f32.mrb[7].mxu0  ;;  %v905_v13 = vadd.f32 %v3655_v11, %v904_v9  ;;  %v3701_v9 = vld [vmem:[%s4839_s21 + $0x9] ss:$0 sm:$0xff] }
 0x24c   : > { %v909_v12 = vpop.f32.mrb[8].mxu0 }
 0x24d   : > { %v910_v14 = vadd.f32 %v3655_v11, %v909_v12  ;;  %v4022_v15 = vpop.f32.mrb[9].mxu0 }
 0x24f   : > { %v4437_v17 = vpack.c.bf16 %v910_v14, %v905_v13 }
 0x250   : > { %v914_v18 = vpop.f32.mrb[10].mxu0 }
 0x251   : > { %v4025_v19 = vpop.f32.mrb[11].mxu0  ;;  %4439 = vmatpush3.bf16.xpose.msk.msra.mxu1 %vm4963_vm6, %v4437_v17  ;;  %v915_v24 = vadd.f32 %v3655_v11, %v914_v18 }
 0x252   : > { %4047 = vmatprep.subr.mxu1 %v4705_v31 }
 0x254   : > { %v997_v20 = vpop.f32.mrb[12].mxu0 }
 0x255   : > { %v4036_v21 = vpop.f32.mrb[13].mxu0  ;;  %v998_v29 = vadd.f32 %v3664_v22, %v997_v20 }
 0x258   : > { %v1002_v28 = vpop.f32.mrb[14].mxu0 }
 0x259   : > { %v1003_v30 = vadd.f32 %v3664_v22, %v1002_v28  ;;  %v4039_v32 = vpop.f32.mrb[15].mxu0  ;;  %4048 = vmatpush3.xpose.msk.msra.mxu1 %vm1011_vm5, %v915_v24 }
 0x25a   : > { %4443 = vmatprep.subr.bf16.mxu1 %v4703_v27 }
 0x25b   : > { %v4441_v35 = vpack.c.bf16 %v1003_v30, %v998_v29 }
 0x25c   : > { %v1007_v38 = vpop.f32.mrb[16].mxu0  ;;  %4050 = vmatmul.mubr.msk.f32.vlgmr.msra.gmra.mrb[0].mxu1 %vm1011_vm5, %v812_v33 }
 0x25d   : > { %v4042_v39 = vpop.f32.mrb[17].mxu0  ;;  %4442 = vmatpush3.bf16.msra.mxu0 %v4441_v35  ;;  %4052 = vmatprep.mubr.msk.f32.mxu1 %vm4704_vm4, %v4705_v31  ;;  %v1008_v42 = vadd.f32 %v3664_v22, %v1007_v38 }
 0x25e   : > { %4062 = vmatprep.subr.mxu0 %v4705_v31  ;;  %4445 = vmatpush3.bf16.msra.mxu1 %v4444_v34  ;;  %v3687_v39 = vld [vmem:[%s4829_s26 + $0xa0] sm:$0xff] }
 0x25f   : > { %4446 = vmatprep.subr.bf16.mxu1 %v4703_v27 }
 0x260   : > { %4053 = vmatmul.mubr.msk.f32.gmra.mrb[2].mxu1 %vm1011_vm5, %v817_v40  ;;  %v3688_v40 = vld [vmem:[%s4829_s26 + $0xa8] sm:$0xff] }
 0x261   : > { %4063 = vmatpush3.msk.msra.mxu0 %vm1157_vm7, %v1008_v42  ;;  %4055 = vmatprep.mubr.msk.f32.mxu1 %vm4704_vm4, %v4705_v31  ;;  %v4450_v42 = vpack.c.bf16 %v3688_v40, %v3687_v39 }
 0x262   : > { %4448 = vmatpush3.bf16.msra.mxu1 %v4447_v41  ;;  %4449 = vmatprep.subr.bf16.mxu0 %v4703_v27 }
 0x263   : > { %4455 = vmatprep.subr.bf16.mxu1 %v4703_v27 }
 0x264   : > { %4056 = vmatmul.mubr.msk.f32.gmra.mrb[4].mxu1 %vm1011_vm5, %v822_v43 }
 0x265   : > { %4081 = vmatprep.mubr.msk.f32.mxu1 %vm4704_vm4, %v4705_v31 }
 0x268   : > { %4082 = vmatmul.mubr.msk.f32.vlgmr.msra.gmra.mrb[6].mxu1 %vm665_vm2, %v4908_v51 }
 0x269   : > { %4084 = vmatprep.mubr.msk.f32.mxu1 %vm4704_vm4, %v4705_v31  ;;  %4457 = vmatpush3.bf16.msra.mxu1 %v4456_v46 }
 0x26a   : > { %4458 = vmatprep.subr.bf16.mxu1 %v4703_v27 }
 0x26c   : > { %4085 = vmatmul.mubr.msk.f32.gmra.mrb[8].mxu1 %vm665_vm2, %v4917_v59 }
 0x26d   : > { %4087 = vmatprep.mubr.msk.f32.mxu1 %vm4704_vm4, %v4705_v31  ;;  %4460 = vmatpush3.bf16.msra.mxu1 %v4459_v49 }
 0x26e   : > { %4465 = vmatprep.subr.bf16.mxu1 %v4703_v27 }
 0x270   : > { %4088 = vmatmul.mubr.msk.f32.gmra.mrb[10].mxu1 %vm665_vm2, %v4923_v60 }
 0x271   : > { %4115 = vmatprep.mubr.msk.f32.mxu1 %vm4704_vm4, %v4705_v31 }
 0x274   : > { %4116 = vmatmul.mubr.msk.f32.vlgmr.msra.gmra.mrb[12].mxu1 %vm665_vm2, %v4908_v51 }
 0x275   : > { %4118 = vmatprep.mubr.msk.f32.mxu1 %vm4704_vm4, %v4705_v31 }
 0x278   : > { %4119 = vmatmul.mubr.msk.f32.gmra.mrb[14].mxu1 %vm665_vm2, %v4917_v59 }
 0x279   : > { %4121 = vmatprep.mubr.msk.f32.mxu1 %vm4704_vm4, %v4705_v31 }
 0x27c   : > { %4122 = vmatmul.mubr.msk.f32.gmra.mrb[16].mxu1 %vm665_vm2, %v4923_v60 }
 0x27d   : > { %4145 = vmatprep.mubr.msk.f32.mxu1 %vm4704_vm4, %v4705_v31 }
 0x32f   : > { %v1096_v50 = vpop.f32.mrb[0].mxu1 }
 0x330   : > { %v1110_v52 = vmul.f32 0.35355338, %v1096_v50  ;;  %v4051_v53 = vpop.f32.mrb[1].mxu1 }
 0x332   : > { %v1114_v54 = vsel %vm1113_vm8, %v1110_v52, -inf }
 0x333   : > { %1115 = vmax.xlane.f32.xlu0 %v1114_v54  ;;  %v1101_v55 = vpop.f32.mrb[2].mxu1 }
 0x334   : > { %v1111_v56 = vmul.f32 0.35355338, %v1101_v55  ;;  %v4054_v57 = vpop.f32.mrb[3].mxu1 }
 0x336   : > { %v1117_v58 = vsel %vm1113_vm8, %v1111_v56, -inf }
 0x337   : > { %1118 = vmax.xlane.f32.xlu1 %v1117_v58  ;;  %v1106_v61 = vpop.f32.mrb[4].mxu1 }
 0x338   : > { %v1112_v62 = vmul.f32 0.35355338, %v1106_v61  ;;  %v4057_v63 = vpop.f32.mrb[5].mxu1 }
 0x33a   : > { %v1121_v0 = vsel %vm1120_vm9, %v1112_v62, -inf }
 0x33b   : > { %1122 = vmax.xlane.f32.xlu0 %v1121_v0  ;;  %v5025_v1 = vpop.f32.mrb[6].mxu1 }
 0x33c   : > { %v4083_v2 = vpop.f32.mrb[7].mxu1 }
 0x33f   : > { %v5027_v3 = vpop.f32.mrb[8].mxu1 }
 0x340   : > { %v4086_v4 = vpop.f32.mrb[9].mxu1 }
 0x343   : > { %v5029_v5 = vpop.f32.mrb[10].mxu1 }
 0x344   : > { %v4089_v6 = vpop.f32.mrb[11].mxu1 }
 0x347   : > { %v1507_v7 = vpop.f32.mrb[12].mxu1 }
 0x348   : > { %v4117_v8 = vpop.f32.mrb[13].mxu1  ;;  %v1508_v11 = vadd.f32 %v3701_v9, %v1507_v7 }
 0x34b   : > { %v1512_v10 = vpop.f32.mrb[14].mxu1 }
 0x34c   : > { %v1513_v12 = vadd.f32 %v3701_v9, %v1512_v10  ;;  %v4120_v13 = vpop.f32.mrb[15].mxu1 }
 0x34e   : > { %v4466_v14 = vpack.c.bf16 %v1513_v12, %v1508_v11 }
 0x34f   : > { %v1517_v15 = vpop.f32.mrb[16].mxu1 }
 0x350   : > { %v4123_v17 = vpop.f32.mrb[17].mxu1  ;;  %4467 = vmatpush3.bf16.msra.mxu1 %v4466_v14  ;;  %v1518_v18 = vadd.f32 %v3701_v9, %v1517_v15  ;;  %v3683_v9 = vld [vmem:[%s4839_s21 + $0x1] ss:$0 sm:$0xff] }
 0x351   : > { %4143 = vmatprep.subr.mxu1 %v4705_v31  ;;  %v1322_v11 = vadd.f32 %v3683_v9, %v5025_v1  ;;  %v1327_v12 = vadd.f32 %v3683_v9, %v5027_v3  ;;  %v1332_v13 = vadd.f32 %v3683_v9, %v5029_v5 }
 0x354   : > { %4144 = vmatpush3.msk.msra.mxu1 %vm1157_vm7, %v1518_v18 }
 0x355   : > { %4165 = vmatprep.subr.mxu1 %v4705_v31 }
 0x3c0   : > { %v1116_v19 = vpop.xlane.xlu0 %1115 }
 0x3c1   : > { %v1124_v20 = vsub.f32 %v1110_v52, %v1116_v19 }
 0x3c3   : > { %v1127_v21 = vmul.f32 1.442695, %v1124_v20 }
 0x3c4   : > { %v1119_v22 = vpop.xlane.xlu1 %1118 }
 0x3c5   : > { %4600 = vpow2.f32 %v1127_v21  ;;  %v1125_v23 = vsub.f32 %v1111_v56, %v1119_v22 }
 0x3c7   : > { %v1129_v24 = vmul.f32 1.442695, %v1125_v23 }
 0x3c8   : > { %v1123_v25 = vpop.xlane.xlu0 %1122 }
 0x3c9   : > { %4602 = vpow2.f32 %v1129_v24  ;;  %v1126_v26 = vsub.f32 %v1112_v62, %v1123_v25  ;;  %v3692_v62 = vld [vmem:[%s4839_s21 + $0x5] ss:$0 sm:$0xff] }
 0x3cb   : > { %v1131_v28 = vmul.f32 1.442695, %v1126_v26 }
 0x3cd   : > { %4604 = vpow2.f32 %v1131_v28 }
 0x3cf   : > { %v4601_v29 = vpop.eup %4600 }
 0x3d0   : > { %v1133_v30 = vsel %vm1113_vm8, %v4601_v29, 0.0 }
 0x3d1   : > { %1134 = vadd.xlane.f32.xlu1 %v1133_v30 }
 0x3d3   : > { %v4603_v32 = vpop.eup %4602 }
 0x3d4   : > { %v1136_v33 = vsel %vm1113_vm8, %v4603_v32, 0.0 }
 0x3d5   : > { %1137 = vadd.xlane.f32.xlu0 %v1136_v33 }
 0x3d7   : > { %v4605_v34 = vpop.eup %4604 }
 0x3d8   : > { %v1139_v35 = vsel %vm1120_vm9, %v4605_v34, 0.0 }
 0x3d9   : > { %1140 = vadd.xlane.f32.xlu1 %v1139_v35 }
 0x45e   : > { %v1135_v36 = vpop.xlane.xlu1 %1134 }
 0x45f   : > { %4606 = vrcp.f32 %v1135_v36 }
 0x462   : > { %v1138_v37 = vpop.xlane.xlu0 %1137 }
 0x463   : > { %4608 = vrcp.f32 %v1138_v37 }
 0x466   : > { %v1141_v38 = vpop.xlane.xlu1 %1140 }
 0x467   : > { %4610 = vrcp.f32 %v1141_v38 }
 0x469   : > { %v4607_v41 = vpop.eup %4606 }
 0x46a   : > { %v1145_v43 = vmul.f32 %v4607_v41, %v4601_v29  ;;  %v3715_v41 = vld [vmem:[%s4834_s18 + $0x8] sm:$0xff] }
 0x46c   : > { %4065 = vmatmul.mubr.msk.f32.vlgmr.msra.gmra.mrb[18].mxu0 %vm1113_vm8, %v1145_v43 }
 0x46d   : > { %v4609_v46 = vpop.eup %4608  ;;  %4067 = vmatprep.mubr.msk.f32.mxu0 %vm4704_vm4, %v4705_v31  ;;  %4451 = vmatpush3.bf16.msra.mxu0 %v4450_v42 }
 0x46e   : > { %v1146_v48 = vmul.f32 %v4609_v46, %v4603_v32  ;;  %4452 = vmatprep.subr.bf16.mxu0 %v4703_v27 }
 0x470   : > { %4068 = vmatmul.mubr.msk.f32.gmra.mrb[20].mxu0 %vm1113_vm8, %v1146_v48 }
 0x471   : > { %v4611_v49 = vpop.eup %4610  ;;  %4070 = vmatprep.mubr.msk.f32.mxu0 %vm4704_vm4, %v4705_v31  ;;  %4454 = vmatpush3.bf16.msra.mxu0 %v4453_v47  ;;  %v1241_v47 = vld [vmem:[%s4834_s18] sm:$0xff] }
 0x472   : > { %v1147_v50 = vmul.f32 %v4611_v49, %v4605_v34  ;;  %4461 = vmatprep.subr.bf16.mxu0 %v4703_v27 }
 0x474   : > { %4071 = vmatmul.mubr.msk.f32.gmra.mrb[22].mxu0 %vm1113_vm8, %v1147_v50 }
 0x475   : > { %4098 = vmatprep.mubr.msk.f32.mxu0 %vm4704_vm4, %v4705_v31 }
 0x478   : > { %4099 = vmatmul.mubr.msk.f32.vlgmr.msra.gmra.mrb[24].mxu0 %vm665_vm2, %v4908_v51 }
 0x479   : > { %4101 = vmatprep.mubr.msk.f32.mxu0 %vm4704_vm4, %v4705_v31 }
 0x47c   : > { %4102 = vmatmul.mubr.msk.f32.gmra.mrb[26].mxu0 %vm665_vm2, %v4917_v59 }
 0x47d   : > { %4104 = vmatprep.mubr.msk.f32.mxu0 %vm4704_vm4, %v4705_v31 }
 0x480   : > { %4105 = vmatmul.mubr.msk.f32.gmra.mrb[28].mxu0 %vm665_vm2, %v4923_v60 }
 0x481   : > { %4130 = vmatprep.mubr.msk.f32.mxu0 %vm4704_vm4, %v4705_v31 }
 0x53f   : > { %v5065_v52 = vpop.f32.mrb[18].mxu0 }
 0x540   : > { %v4066_v53 = vpop.f32.mrb[19].mxu0 }
 0x543   : > { %v5067_v54 = vpop.f32.mrb[20].mxu0 }
 0x544   : > { %v4069_v55 = vpop.f32.mrb[21].mxu0 }
 0x545   : > { %v3731_v55 = vld [vmem:[%s4829_s26 + $0xc0] sm:$0xff] }
 0x547   : > { %v5069_v56 = vpop.f32.mrb[22].mxu0 }
 0x548   : > { %v4072_v57 = vpop.f32.mrb[23].mxu0 }
 0x549   : > { %v3732_v57 = vld [vmem:[%s4829_s26 + $0xc8] sm:$0xff] }
 0x54b   : > { %v1414_v58 = vpop.f32.mrb[24].mxu0 }
 0x54c   : > { %v4100_v61 = vpop.f32.mrb[25].mxu0  ;;  %v1415_v0 = vadd.f32 %v3692_v62, %v1414_v58  ;;  %v4475_v58 = vpack.c.bf16 %v3732_v57, %v3731_v55 }
 0x54d   : > { %v3733_v61 = vld [vmem:[%s4829_s26 + $0xd0] sm:$0xff] }
 0x54f   : > { %v1419_v63 = vpop.f32.mrb[26].mxu0 }
 0x550   : > { %v1420_v2 = vadd.f32 %v3692_v62, %v1419_v63  ;;  %v4103_v4 = vpop.f32.mrb[27].mxu0 }
 0x552   : > { %v4462_v6 = vpack.c.bf16 %v1420_v2, %v1415_v0  ;;  %v3724_v0 = vld [vmem:[%s4829_s26 + $0x50] sm:$0xff]  ;;  %v3725_v2 = vld [vmem:[%s4829_s26 + $0x58] sm:$0xff] }
 0x553   : > { %v1424_v7 = vpop.f32.mrb[28].mxu0 }
 0x554   : > { %v4106_v8 = vpop.f32.mrb[29].mxu0  ;;  %4464 = vmatpush3.bf16.xpose.msk.msra.mxu0 %vm4963_vm6, %v4462_v6  ;;  %v1425_v10 = vadd.f32 %v3692_v62, %v1424_v7  ;;  %v3734_v62 = vld [vmem:[%s4829_s26 + $0xd8] sm:$0xff]  ;;  %v4472_v7 = vpack.c.bf16 %v3725_v2, %v3724_v0 }
 0x555   : > { %4128 = vmatprep.subr.mxu0 %v4705_v31  ;;  %v4478_v63 = vpack.c.bf16 %v3734_v62, %v3733_v61  ;;  %v3745_v62 = vld [vmem:[%s4839_s21 + $0xa] ss:$0 sm:$0xff] }
 0x55c   : > { %4129 = vmatpush3.xpose.msk.msra.mxu0 %vm1011_vm5, %v1425_v10  ;;  %v3740_v10 = vld [vmem:[%s4829_s26 + $0x140] sm:$0xff] }
 0x55d   : > { %4154 = vmatprep.subr.mxu0 %v4705_v31 }
 0x55f   : > { %4131 = vmatmul.mubr.msk.f32.vlgmr.msra.gmra.mrb[30].mxu0 %vm1011_vm5, %v1322_v11  ;;  %v3741_v11 = vld [vmem:[%s4829_s26 + $0x148] sm:$0xff] }
 0x560   : > { %4133 = vmatprep.mubr.msk.f32.mxu0 %vm4704_vm4, %v4705_v31  ;;  %4155 = vmatpush3.msra.mxu0 %v3715_v41 }
 0x561   : > { %4468 = vmatprep.subr.bf16.mxu0 %v4703_v27 }
 0x563   : > { %4134 = vmatmul.mubr.msk.f32.gmra.mrb[32].mxu0 %vm1011_vm5, %v1327_v12 }
 0x564   : > { %4136 = vmatprep.mubr.msk.f32.mxu0 %vm4704_vm4, %v4705_v31 }
 0x567   : > { %4137 = vmatmul.mubr.msk.f32.gmra.mrb[34].mxu0 %vm1011_vm5, %v1332_v13 }
 0x568   : > { %4156 = vmatprep.mubr.msk.f32.mxu0 %vm4704_vm4, %v4705_v31 }
 0x632   : > { %v1605_v1 = vpop.f32.mrb[30].mxu0 }
 0x633   : > { %v1619_v14 = vmul.f32 0.35355338, %v1605_v1  ;;  %v4132_v15 = vpop.f32.mrb[31].mxu0  ;;  %v4481_v1 = vpack.c.bf16 %v3741_v11, %v3740_v10 }
 0x634   : > { %v3743_v15 = vld [vmem:[%s4829_s26 + $0x158] sm:$0xff] }
 0x635   : > { %v1622_v17 = vsel %vm1113_vm8, %v1619_v14, -inf }
 0x636   : > { %1623 = vmax.xlane.f32.xlu0 %v1622_v17  ;;  %v1610_v18 = vpop.f32.mrb[32].mxu0 }
 0x637   : > { %v1620_v3 = vmul.f32 0.35355338, %v1610_v18  ;;  %v4135_v19 = vpop.f32.mrb[33].mxu0 }
 0x639   : > { %v1625_v20 = vsel %vm1113_vm8, %v1620_v3, -inf }
 0x63a   : > { %1626 = vmax.xlane.f32.xlu1 %v1625_v20  ;;  %v1615_v21 = vpop.f32.mrb[34].mxu0 }
 0x63b   : > { %v1621_v22 = vmul.f32 0.35355338, %v1615_v21  ;;  %v4138_v5 = vpop.f32.mrb[35].mxu0 }
 0x63d   : > { %v1628_v23 = vsel %vm1120_vm9, %v1621_v22, -inf }
 0x63e   : > { %1629 = vmax.xlane.f32.xlu0 %v1628_v23 }
 0x6c3   : > { %v1624_v24 = vpop.xlane.xlu0 %1623 }
 0x6c4   : > { %v1631_v25 = vsub.f32 %v1619_v14, %v1624_v24  ;;  %v3742_v14 = vld [vmem:[%s4829_s26 + $0x150] sm:$0xff]  ;;  %v3736_v24 = vld [vmem:[%s4839_s21 + $0x6] ss:$0 sm:$0xff] }
 0x6c6   : > { %v1634_v26 = vmul.f32 1.442695, %v1631_v25 }
 0x6c7   : > { %v1627_v28 = vpop.xlane.xlu1 %1626 }
 0x6c8   : > { %4612 = vpow2.f32 %v1634_v26  ;;  %v1632_v29 = vsub.f32 %v1620_v3, %v1627_v28  ;;  %v4484_v3 = vpack.c.bf16 %v3743_v15, %v3742_v14 }
 0x6ca   : > { %v1636_v30 = vmul.f32 1.442695, %v1632_v29 }
 0x6cb   : > { %v1630_v32 = vpop.xlane.xlu0 %1629 }
 0x6cc   : > { %4614 = vpow2.f32 %v1636_v30  ;;  %v1633_v33 = vsub.f32 %v1621_v22, %v1630_v32 }
 0x6ce   : > { %v1638_v34 = vmul.f32 1.442695, %v1633_v33 }
 0x6d0   : > { %4616 = vpow2.f32 %v1638_v34 }
 0x6d2   : > { %v4613_v35 = vpop.eup %4612 }
 0x6d3   : > { %v1640_v36 = vsel %vm1113_vm8, %v4613_v35, 0.0 }
 0x6d4   : > { %1641 = vadd.xlane.f32.xlu1 %v1640_v36 }
 0x6d6   : > { %v4615_v37 = vpop.eup %4614 }
 0x6d7   : > { %v1643_v38 = vsel %vm1113_vm8, %v4615_v37, 0.0 }
 0x6d8   : > { %1644 = vadd.xlane.f32.xlu0 %v1643_v38 }
 0x6da   : > { %v4617_v39 = vpop.eup %4616 }
 0x6db   : > { %v1646_v40 = vsel %vm1120_vm9, %v4617_v39, 0.0 }
 0x6dc   : > { %1647 = vadd.xlane.f32.xlu1 %v1646_v40 }
 0x761   : > { %v1642_v42 = vpop.xlane.xlu1 %1641 }
 0x762   : > { %4618 = vrcp.f32 %v1642_v42 }
 0x765   : > { %v1645_v43 = vpop.xlane.xlu0 %1644 }
 0x766   : > { %4620 = vrcp.f32 %v1645_v43 }
 0x769   : > { %v1648_v44 = vpop.xlane.xlu1 %1647 }
 0x76a   : > { %4622 = vrcp.f32 %v1648_v44  ;;  %v3727_v44 = vld [vmem:[%s4839_s21 + $0x2] ss:$0 sm:$0xff] }
 0x76c   : > { %v4619_v45 = vpop.eup %4618 }
 0x76d   : > { %v1652_v46 = vmul.f32 %v4619_v45, %v4613_v35 }
 0x76f   : > { %4146 = vmatmul.mubr.msk.f32.vlgmr.msra.gmra.mrb[18].mxu1 %vm1113_vm8, %v1652_v46 }
 0x770   : > { %v4621_v48 = vpop.eup %4620  ;;  %4148 = vmatprep.mubr.msk.f32.mxu1 %vm4704_vm4, %v4705_v31  ;;  %4166 = vmatpush3.msra.mxu1 %v1241_v47 }
 0x771   : > { %v1653_v49 = vmul.f32 %v4621_v48, %v4615_v37  ;;  %4474 = vmatprep.subr.bf16.mxu1 %v4703_v27 }
 0x773   : > { %4149 = vmatmul.mubr.msk.f32.gmra.mrb[20].mxu1 %vm1113_vm8, %v1653_v49 }
 0x774   : > { %v4623_v50 = vpop.eup %4622  ;;  %4151 = vmatprep.mubr.msk.f32.mxu1 %vm4704_vm4, %v4705_v31 }
 0x775   : > { %v1654_v53 = vmul.f32 %v4623_v50, %v4617_v39 }
 0x777   : > { %4152 = vmatmul.mubr.msk.f32.gmra.mrb[22].mxu1 %vm1113_vm8, %v1654_v53 }
 0x778   : > { %4167 = vmatprep.mubr.msk.f32.mxu1 %vm4704_vm4, %v4705_v31 }
 0x77b   : > { %4168 = vmatmul.mubr.msk.f32.vlgmr.msra.gmra.mrb[24].mxu1 %vm1011_vm5, %v5065_v52  ;;  %v3722_v52 = vld [vmem:[%s4829_s26 + $0x40] sm:$0xff] }
 0x77c   : > { %4170 = vmatprep.mubr.msk.f32.mxu1 %vm4704_vm4, %v4705_v31  ;;  %4476 = vmatpush3.bf16.msra.mxu1 %v4475_v58 }
 0x77d   : > { %4477 = vmatprep.subr.bf16.mxu1 %v4703_v27 }
 0x77f   : > { %4171 = vmatmul.mubr.msk.f32.gmra.mrb[26].mxu1 %vm1011_vm5, %v5067_v54  ;;  %v3723_v54 = vld [vmem:[%s4829_s26 + $0x48] sm:$0xff] }
 0x780   : > { %4173 = vmatprep.mubr.msk.f32.mxu1 %vm4704_vm4, %v4705_v31  ;;  %4479 = vmatpush3.bf16.msra.mxu1 %v4478_v63 }
 0x781   : > { %4486 = vmatprep.subr.bf16.mxu1 %v4703_v27 }
 0x783   : > { %4174 = vmatmul.mubr.msk.f32.gmra.mrb[28].mxu1 %vm1011_vm5, %v5069_v56  ;;  %v4469_v56 = vpack.c.bf16 %v3723_v54, %v3722_v52 }
 0x784   : > { %4201 = vmatprep.mubr.msk.f32.mxu1 %vm4704_vm4, %v4705_v31 }
 0x787   : > { %4202 = vmatmul.mubr.msk.f32.vlgmr.msra.gmra.mrb[30].mxu1 %vm665_vm2, %v4908_v51 }
 0x788   : > { %4204 = vmatprep.mubr.msk.f32.mxu1 %vm4704_vm4, %v4705_v31 }
 0x78b   : > { %4205 = vmatmul.mubr.msk.f32.gmra.mrb[32].mxu1 %vm665_vm2, %v4917_v59 }
 0x78c   : > { %4207 = vmatprep.mubr.msk.f32.mxu1 %vm4704_vm4, %v4705_v31 }
 0x78f   : > { %4208 = vmatmul.mubr.msk.f32.gmra.mrb[34].mxu1 %vm665_vm2, %v4923_v60 }
 0x790   : > { %4233 = vmatprep.mubr.msk.f32.mxu1 %vm4704_vm4, %v4705_v31 }
 0x842   : > { %v1733_v4 = vpop.f32.mrb[18].mxu1 }
 0x843   : > { %v4147_v6 = vpop.f32.mrb[19].mxu1  ;;  %4157 = vmatmul.mubr.msk.f32.vlgmr.msra.gmra.mrb[36].mxu0 %vm1011_vm5, %v1733_v4 }
 0x844   : > { %4159 = vmatprep.mubr.msk.f32.mxu0 %vm4704_vm4, %v4705_v31  ;;  %4470 = vmatpush3.bf16.msra.mxu0 %v4469_v56 }
 0x845   : > { %4471 = vmatprep.subr.bf16.mxu0 %v4703_v27 }
 0x846   : > { %v1738_v8 = vpop.f32.mrb[20].mxu1 }
 0x847   : > { %v4150_v9 = vpop.f32.mrb[21].mxu1  ;;  %4160 = vmatmul.mubr.msk.f32.gmra.mrb[38].mxu0 %vm1011_vm5, %v1738_v8 }
 0x848   : > { %4162 = vmatprep.mubr.msk.f32.mxu0 %vm4704_vm4, %v4705_v31  ;;  %4473 = vmatpush3.bf16.msra.mxu0 %v4472_v7 }
 0x849   : > { %4480 = vmatprep.subr.bf16.mxu0 %v4703_v27 }
 0x84a   : > { %v1743_v12 = vpop.f32.mrb[22].mxu1 }
 0x84b   : > { %v4153_v13 = vpop.f32.mrb[23].mxu1  ;;  %4163 = vmatmul.mubr.msk.f32.gmra.mrb[40].mxu0 %vm1011_vm5, %v1743_v12 }
 0x84c   : > { %4184 = vmatprep.mubr.msk.f32.mxu0 %vm4704_vm4, %v4705_v31 }
 0x84e   : > { %v1913_v17 = vpop.f32.mrb[24].mxu1 }
 0x84f   : > { %v4169_v18 = vpop.f32.mrb[25].mxu1  ;;  %4185 = vmatmul.mubr.msk.f32.vlgmr.msra.gmra.mrb[42].mxu0 %vm665_vm2, %v4908_v51 }
 0x850   : > { %4187 = vmatprep.mubr.msk.f32.mxu0 %vm4704_vm4, %v4705_v31  ;;  %4482 = vmatpush3.bf16.msra.mxu0 %v4481_v1 }
 0x851   : > { %4483 = vmatprep.subr.bf16.mxu0 %v4703_v27 }
 0x852   : > { %v1918_v19 = vpop.f32.mrb[26].mxu1 }
 0x853   : > { %v4172_v20 = vpop.f32.mrb[27].mxu1  ;;  %4188 = vmatmul.mubr.msk.f32.gmra.mrb[44].mxu0 %vm665_vm2, %v4917_v59 }
 0x854   : > { %4190 = vmatprep.mubr.msk.f32.mxu0 %vm4704_vm4, %v4705_v31  ;;  %4485 = vmatpush3.bf16.msra.mxu0 %v4484_v3 }
 0x855   : > { %4490 = vmatprep.subr.bf16.mxu0 %v4703_v27 }
 0x856   : > { %v1923_v21 = vpop.f32.mrb[28].mxu1 }
 0x857   : > { %v4175_v22 = vpop.f32.mrb[29].mxu1  ;;  %4191 = vmatmul.mubr.msk.f32.gmra.mrb[46].mxu0 %vm665_vm2, %v4923_v60 }
 0x858   : > { %4218 = vmatprep.mubr.msk.f32.mxu0 %vm4704_vm4, %v4705_v31 }
 0x85a   : > { %v2099_v5 = vpop.f32.mrb[30].mxu1 }
 0x85b   : > { %v4203_v23 = vpop.f32.mrb[31].mxu1  ;;  %4219 = vmatmul.mubr.msk.f32.vlgmr.msra.gmra.mrb[48].mxu0 %vm665_vm2, %v4908_v51  ;;  %v2100_v26 = vadd.f32 %v3736_v24, %v2099_v5 }
 0x85c   : > { %4221 = vmatprep.mubr.msk.f32.mxu0 %vm4704_vm4, %v4705_v31 }
 0x85e   : > { %v2104_v25 = vpop.f32.mrb[32].mxu1 }
 0x85f   : > { %v2105_v28 = vadd.f32 %v3736_v24, %v2104_v25  ;;  %v4206_v29 = vpop.f32.mrb[33].mxu1  ;;  %4222 = vmatmul.mubr.msk.f32.gmra.mrb[50].mxu0 %vm665_vm2, %v4917_v59 }
 0x860   : > { %4224 = vmatprep.mubr.msk.f32.mxu0 %vm4704_vm4, %v4705_v31 }
 0x861   : > { %v4487_v30 = vpack.c.bf16 %v2105_v28, %v2100_v26 }
 0x862   : > { %v2109_v32 = vpop.f32.mrb[34].mxu1 }
 0x863   : > { %v4209_v33 = vpop.f32.mrb[35].mxu1  ;;  %4225 = vmatmul.mubr.msk.f32.gmra.mrb[52].mxu0 %vm665_vm2, %v4923_v60  ;;  %4489 = vmatpush3.bf16.xpose.msk.msra.mxu1 %vm4963_vm6, %v4487_v30  ;;  %v2110_v34 = vadd.f32 %v3736_v24, %v2109_v32 }
 0x864   : > { %4231 = vmatprep.subr.mxu1 %v4705_v31  ;;  %4248 = vmatprep.mubr.msk.f32.mxu0 %vm4704_vm4, %v4705_v31 }
 0x86b   : > { %4232 = vmatpush3.xpose.msk.msra.mxu1 %vm1011_vm5, %v2110_v34  ;;  %v3759_v34 = vld [vmem:[%s4834_s18 + $0x10] sm:$0xff] }
 0x86c   : > { %4257 = vmatprep.subr.mxu1 %v4705_v31 }
 0x916   : > { %v1824_v35 = vpop.f32.mrb[36].mxu0 }
 0x917   : > { %v5190_v36 = vadd.f32 %v1913_v17, %v1824_v35  ;;  %v4158_v37 = vpop.f32.mrb[37].mxu0 }
 0x91a   : > { %v1829_v38 = vpop.f32.mrb[38].mxu0 }
 0x91b   : > { %v5192_v39 = vadd.f32 %v1918_v19, %v1829_v38  ;;  %v4161_v40 = vpop.f32.mrb[39].mxu0 }
 0x91c   : > { %v3763_v40 = vld [vmem:[%s4829_s26 + $0x60] sm:$0xff] }
 0x91e   : > { %v1834_v41 = vpop.f32.mrb[40].mxu0 }
 0x91f   : > { %v5194_v42 = vadd.f32 %v1923_v21, %v1834_v41  ;;  %v4164_v43 = vpop.f32.mrb[41].mxu0  ;;  %v3764_v41 = vld [vmem:[%s4829_s26 + $0x68] sm:$0xff] }
 0x922   : > { %v2006_v45 = vpop.f32.mrb[42].mxu0 }
 0x923   : > { %v2007_v46 = vadd.f32 %v3727_v44, %v2006_v45  ;;  %v4186_v47 = vpop.f32.mrb[43].mxu0 }
 0x924   : > { %v3766_v47 = vld [vmem:[%s4829_s26 + $0x78] sm:$0xff] }
 0x925   : > { %4234 = vmatmul.mubr.msk.f32.vlgmr.msra.gmra.mrb[36].mxu1 %vm1011_vm5, %v2007_v46  ;;  %v3765_v46 = vld [vmem:[%s4829_s26 + $0x70] sm:$0xff] }
 0x926   : > { %v2011_v48 = vpop.f32.mrb[44].mxu0  ;;  %4236 = vmatprep.mubr.msk.f32.mxu1 %vm4704_vm4, %v4705_v31  ;;  %4258 = vmatpush3.msra.mxu1 %v3759_v34 }
 0x927   : > { %v2012_v49 = vadd.f32 %v3727_v44, %v2011_v48  ;;  %v4189_v50 = vpop.f32.mrb[45].mxu0  ;;  %4499 = vmatprep.subr.bf16.mxu1 %v4703_v27 }
 0x929   : > { %4237 = vmatmul.mubr.msk.f32.gmra.mrb[38].mxu1 %vm1011_vm5, %v2012_v49  ;;  %v4497_v49 = vpack.c.bf16 %v3766_v47, %v3765_v46 }
 0x92a   : > { %v2016_v53 = vpop.f32.mrb[46].mxu0  ;;  %4239 = vmatprep.mubr.msk.f32.mxu1 %vm4704_vm4, %v4705_v31 }
 0x92b   : > { %v2017_v55 = vadd.f32 %v3727_v44, %v2016_v53  ;;  %v4192_v57 = vpop.f32.mrb[47].mxu0  ;;  %v4494_v44 = vpack.c.bf16 %v3764_v41, %v3763_v40  ;;  %v3777_v40 = vld [vmem:[%s4839_s21 + $0x7] ss:$0 sm:$0xff] }
 0x92c   : > { %v3781_v57 = vld [vmem:[%s4829_s26 + $0x160] sm:$0xff] }
 0x92d   : > { %4240 = vmatmul.mubr.msk.f32.gmra.mrb[40].mxu1 %vm1011_vm5, %v2017_v55 }
 0x92e   : > { %v2192_v58 = vpop.f32.mrb[48].mxu0  ;;  %4259 = vmatprep.mubr.msk.f32.mxu1 %vm4704_vm4, %v4705_v31 }
 0x92f   : > { %v4220_v61 = vpop.f32.mrb[49].mxu0  ;;  %v2193_v52 = vadd.f32 %v3745_v62, %v2192_v58  ;;  %v3782_v58 = vld [vmem:[%s4829_s26 + $0x168] sm:$0xff] }
 0x930   : > { %v4506_v61 = vpack.c.bf16 %v3782_v58, %v3781_v57 }
 0x932   : > { %v2197_v63 = vpop.f32.mrb[50].mxu0 }
 0x933   : > { %v2198_v54 = vadd.f32 %v3745_v62, %v2197_v63  ;;  %v4223_v56 = vpop.f32.mrb[51].mxu0  ;;  %v3784_v63 = vld [vmem:[%s4829_s26 + $0x178] sm:$0xff] }
 0x934   : > { %v3773_v56 = vld [vmem:[%s4829_s26 + $0xe8] sm:$0xff] }
 0x935   : > { %v4491_v0 = vpack.c.bf16 %v2198_v54, %v2193_v52  ;;  %v3772_v54 = vld [vmem:[%s4829_s26 + $0xe0] sm:$0xff] }
 0x936   : > { %v2202_v2 = vpop.f32.mrb[52].mxu0 }
 0x937   : > { %v4226_v4 = vpop.f32.mrb[53].mxu0  ;;  %4492 = vmatpush3.bf16.msra.mxu0 %v4491_v0  ;;  %v2203_v6 = vadd.f32 %v3745_v62, %v2202_v2  ;;  %v3783_v62 = vld [vmem:[%s4829_s26 + $0x170] sm:$0xff]  ;;  %v4500_v0 = vpack.c.bf16 %v3773_v56, %v3772_v54 }
 0x938   : > { %4246 = vmatprep.subr.mxu0 %v4705_v31  ;;  %v4509_v52 = vpack.c.bf16 %v3784_v63, %v3783_v62  ;;  %v3774_v2 = vld [vmem:[%s4829_s26 + $0xf0] sm:$0xff]  ;;  %v3775_v4 = vld [vmem:[%s4829_s26 + $0xf8] sm:$0xff] }
 0x93b   : > { %4247 = vmatpush3.msk.msra.mxu0 %vm1157_vm7, %v2203_v6 }
 0x93c   : > { %4493 = vmatprep.subr.bf16.mxu0 %v4703_v27 }
 0x9f8   : > { %v2290_v7 = vpop.f32.mrb[36].mxu1 }
 0x9f9   : > { %v2304_v8 = vmul.f32 0.35355338, %v2290_v7  ;;  %v4235_v9 = vpop.f32.mrb[37].mxu1 }
 0x9fb   : > { %v2307_v10 = vsel %vm1113_vm8, %v2304_v8, -inf }
 0x9fc   : > { %2308 = vmax.xlane.f32.xlu0 %v2307_v10  ;;  %v2295_v11 = vpop.f32.mrb[38].mxu1 }
 0x9fd   : > { %v2305_v12 = vmul.f32 0.35355338, %v2295_v11  ;;  %v4238_v13 = vpop.f32.mrb[39].mxu1 }
 0x9ff   : > { %v2310_v1 = vsel %vm1113_vm8, %v2305_v12, -inf }
 0xa00   : > { %2311 = vmax.xlane.f32.xlu1 %v2310_v1  ;;  %v2300_v14 = vpop.f32.mrb[40].mxu1 }
 0xa01   : > { %v2306_v15 = vmul.f32 0.35355338, %v2300_v14  ;;  %v4241_v17 = vpop.f32.mrb[41].mxu1 }
 0xa03   : > { %v2313_v18 = vsel %vm1120_vm9, %v2306_v15, -inf }
 0xa04   : > { %2314 = vmax.xlane.f32.xlu0 %v2313_v18 }
 0xa89   : > { %v2309_v3 = vpop.xlane.xlu0 %2308 }
 0xa8a   : > { %v2316_v19 = vsub.f32 %v2304_v8, %v2309_v3  ;;  %v4503_v8 = vpack.c.bf16 %v3775_v4, %v3774_v2 }
 0xa8c   : > { %v2319_v20 = vmul.f32 1.442695, %v2316_v19  ;;  %v3786_v19 = vld [vmem:[%s4839_s21 + $0xb] ss:$0 sm:$0xff] }
 0xa8d   : > { %v2312_v21 = vpop.xlane.xlu1 %2311 }
 0xa8e   : > { %4624 = vpow2.f32 %v2319_v20  ;;  %v2317_v22 = vsub.f32 %v2305_v12, %v2312_v21 }
 0xa90   : > { %v2321_v5 = vmul.f32 1.442695, %v2317_v22 }
 0xa91   : > { %v2315_v23 = vpop.xlane.xlu0 %2314 }
 0xa92   : > { %4626 = vpow2.f32 %v2321_v5  ;;  %v2318_v24 = vsub.f32 %v2306_v15, %v2315_v23 }
 0xa94   : > { %v2323_v25 = vmul.f32 1.442695, %v2318_v24 }
 0xa96   : > { %4628 = vpow2.f32 %v2323_v25 }
 0xa98   : > { %v4625_v26 = vpop.eup %4624 }
 0xa99   : > { %v2325_v28 = vsel %vm1113_vm8, %v4625_v26, 0.0 }
 0xa9a   : > { %2326 = vadd.xlane.f32.xlu1 %v2325_v28 }
 0xa9c   : > { %v4627_v29 = vpop.eup %4626 }
 0xa9d   : > { %v2328_v30 = vsel %vm1113_vm8, %v4627_v29, 0.0 }
 0xa9e   : > { %2329 = vadd.xlane.f32.xlu0 %v2328_v30 }
 0xaa0   : > { %v4629_v32 = vpop.eup %4628 }
 0xaa1   : > { %v2331_v33 = vsel %vm1120_vm9, %v4629_v32, 0.0 }
 0xaa2   : > { %2332 = vadd.xlane.f32.xlu1 %v2331_v33 }
 0xb27   : > { %v2327_v35 = vpop.xlane.xlu1 %2326 }
 0xb28   : > { %4630 = vrcp.f32 %v2327_v35 }
 0xb2b   : > { %v2330_v37 = vpop.xlane.xlu0 %2329 }
 0xb2c   : > { %4632 = vrcp.f32 %v2330_v37 }
 0xb2f   : > { %v2333_v38 = vpop.xlane.xlu1 %2332 }
 0xb30   : > { %4634 = vrcp.f32 %v2333_v38 }
 0xb32   : > { %v4631_v43 = vpop.eup %4630 }
 0xb33   : > { %v2337_v45 = vmul.f32 %v4631_v43, %v4625_v26 }
 0xb35   : > { %4249 = vmatmul.mubr.msk.f32.vlgmr.msra.gmra.mrb[54].mxu0 %vm1113_vm8, %v2337_v45 }
 0xb36   : > { %v4633_v48 = vpop.eup %4632  ;;  %4251 = vmatprep.mubr.msk.f32.mxu0 %vm4704_vm4, %v4705_v31  ;;  %4495 = vmatpush3.bf16.msra.mxu0 %v4494_v44 }
 0xb37   : > { %v2338_v50 = vmul.f32 %v4633_v48, %v4627_v29  ;;  %4496 = vmatprep.subr.bf16.mxu0 %v4703_v27 }
 0xb39   : > { %4252 = vmatmul.mubr.msk.f32.gmra.mrb[56].mxu0 %vm1113_vm8, %v2338_v50 }
 0xb3a   : > { %v4635_v53 = vpop.eup %4634  ;;  %4254 = vmatprep.mubr.msk.f32.mxu0 %vm4704_vm4, %v4705_v31  ;;  %4498 = vmatpush3.bf16.msra.mxu0 %v4497_v49 }
 0xb3b   : > { %v2339_v55 = vmul.f32 %v4635_v53, %v4629_v32  ;;  %4505 = vmatprep.subr.bf16.mxu0 %v4703_v27 }
 0xb3d   : > { %4255 = vmatmul.mubr.msk.f32.gmra.mrb[58].mxu0 %vm1113_vm8, %v2339_v55 }
 0xb3e   : > { %4276 = vmatprep.mubr.msk.f32.mxu0 %vm4704_vm4, %v4705_v31 }
 0xb41   : > { %4277 = vmatmul.mubr.msk.f32.vlgmr.msra.gmra.mrb[60].mxu0 %vm665_vm2, %v4908_v51 }
 0xb42   : > { %4279 = vmatprep.mubr.msk.f32.mxu0 %vm4704_vm4, %v4705_v31  ;;  %4507 = vmatpush3.bf16.msra.mxu0 %v4506_v61 }
 0xb43   : > { %4508 = vmatprep.subr.bf16.mxu0 %v4703_v27 }
 0xb45   : > { %4280 = vmatmul.mubr.msk.f32.gmra.mrb[62].mxu0 %vm665_vm2, %v4917_v59 }
 0xb46   : > { %4282 = vmatprep.mubr.msk.f32.mxu0 %vm4704_vm4, %v4705_v31  ;;  %4510 = vmatpush3.bf16.msra.mxu0 %v4509_v52 }
 0xb47   : > { %4515 = vmatprep.subr.bf16.mxu0 %v4703_v27 }
 0xb49   : > { %4283 = vmatmul.mubr.msk.f32.gmra.mrb[64].mxu0 %vm665_vm2, %v4923_v60 }
 0xb4a   : > { %4310 = vmatprep.mubr.msk.f32.mxu0 %vm4704_vm4, %v4705_v31 }
 0xb4d   : > { %4311 = vmatmul.mubr.msk.f32.vlgmr.msra.gmra.mrb[66].mxu0 %vm665_vm2, %v4908_v51 }
 0xb4e   : > { %4313 = vmatprep.mubr.msk.f32.mxu0 %vm4704_vm4, %v4705_v31 }
 0xb51   : > { %4314 = vmatmul.mubr.msk.f32.gmra.mrb[68].mxu0 %vm665_vm2, %v4917_v59 }
 0xb52   : > { %4316 = vmatprep.mubr.msk.f32.mxu0 %vm4704_vm4, %v4705_v31 }
 0xb55   : > { %4317 = vmatmul.mubr.msk.f32.gmra.mrb[70].mxu0 %vm665_vm2, %v4923_v60 }
 0xb56   : > { %4340 = vmatprep.mubr.msk.f32.mxu0 %vm4704_vm4, %v4705_v31 }
 0xc08   : > { %v2418_v6 = vpop.f32.mrb[54].mxu0 }
 0xc09   : > { %v4250_v7 = vpop.f32.mrb[55].mxu0  ;;  %4260 = vmatmul.mubr.msk.f32.vlgmr.msra.gmra.mrb[42].mxu1 %vm1011_vm5, %v2418_v6 }
 0xc0a   : > { %4262 = vmatprep.mubr.msk.f32.mxu1 %vm4704_vm4, %v4705_v31  ;;  %4501 = vmatpush3.bf16.msra.mxu1 %v4500_v0 }
 0xc0b   : > { %4502 = vmatprep.subr.bf16.mxu1 %v4703_v27 }
 0xc0c   : > { %v2423_v9 = vpop.f32.mrb[56].mxu0 }
 0xc0d   : > { %v4253_v10 = vpop.f32.mrb[57].mxu0  ;;  %4263 = vmatmul.mubr.msk.f32.gmra.mrb[44].mxu1 %vm1011_vm5, %v2423_v9 }
 0xc0e   : > { %4265 = vmatprep.mubr.msk.f32.mxu1 %vm4704_vm4, %v4705_v31  ;;  %4504 = vmatpush3.bf16.msra.mxu1 %v4503_v8 }
 0xc0f   : > { %4511 = vmatprep.subr.bf16.mxu1 %v4703_v27 }
 0xc10   : > { %v2428_v11 = vpop.f32.mrb[58].mxu0 }
 0xc11   : > { %v4256_v12 = vpop.f32.mrb[59].mxu0  ;;  %4266 = vmatmul.mubr.msk.f32.gmra.mrb[46].mxu1 %vm1011_vm5, %v2428_v11 }
 0xc12   : > { %4293 = vmatprep.mubr.msk.f32.mxu1 %vm4704_vm4, %v4705_v31 }
 0xc14   : > { %v2605_v13 = vpop.f32.mrb[60].mxu0 }
 0xc15   : > { %v4278_v1 = vpop.f32.mrb[61].mxu0  ;;  %4294 = vmatmul.mubr.msk.f32.vlgmr.msra.gmra.mrb[48].mxu1 %vm665_vm2, %v4908_v51 }
 0xc16   : > { %4296 = vmatprep.mubr.msk.f32.mxu1 %vm4704_vm4, %v4705_v31 }
 0xc18   : > { %v2610_v14 = vpop.f32.mrb[62].mxu0 }
 0xc19   : > { %v4281_v15 = vpop.f32.mrb[63].mxu0  ;;  %4297 = vmatmul.mubr.msk.f32.gmra.mrb[50].mxu1 %vm665_vm2, %v4917_v59 }
 0xc1a   : > { %4299 = vmatprep.mubr.msk.f32.mxu1 %vm4704_vm4, %v4705_v31 }
 0xc1c   : > { %v2615_v17 = vpop.f32.mrb[64].mxu0 }
 0xc1d   : > { %v4284_v18 = vpop.f32.mrb[65].mxu0  ;;  %4300 = vmatmul.mubr.msk.f32.gmra.mrb[52].mxu1 %vm665_vm2, %v4923_v60 }
 0xc1e   : > { %4325 = vmatprep.mubr.msk.f32.mxu1 %vm4704_vm4, %v4705_v31 }
 0xc20   : > { %v2791_v51 = vpop.f32.mrb[66].mxu0 }
 0xc21   : > { %v4312_v3 = vpop.f32.mrb[67].mxu0  ;;  %v2792_v21 = vadd.f32 %v3786_v19, %v2791_v51  ;;  %v3800_v51 = vld [vmem:[%s4834_s18 + $0x18] sm:$0xff] }
 0xc24   : > { %v2796_v20 = vpop.f32.mrb[68].mxu0 }
 0xc25   : > { %v2797_v22 = vadd.f32 %v3786_v19, %v2796_v20  ;;  %v4315_v5 = vpop.f32.mrb[69].mxu0 }
 0xc27   : > { %v4516_v23 = vpack.c.bf16 %v2797_v22, %v2792_v21 }
 0xc28   : > { %v2801_v59 = vpop.f32.mrb[70].mxu0 }
 0xc29   : > { %v4318_v24 = vpop.f32.mrb[71].mxu0  ;;  %4517 = vmatpush3.bf16.msra.mxu0 %v4516_v23  ;;  %v2802_v25 = vadd.f32 %v3786_v19, %v2801_v59 }
 0xc2a   : > { %4338 = vmatprep.subr.mxu0 %v4705_v31 }
 0xc2d   : > { %4339 = vmatpush3.msk.msra.mxu0 %vm1157_vm7, %v2802_v25 }
 0xc2e   : > { %4518 = vmatprep.subr.bf16.mxu0 %v4703_v27 }
 0xcdc   : > { %v2509_v60 = vpop.f32.mrb[42].mxu1 }
 0xcdd   : > { %v5295_v26 = vadd.f32 %v2509_v60, %v5190_v36  ;;  %v4261_v28 = vpop.f32.mrb[43].mxu1 }
 0xce0   : > { %v2514_v29 = vpop.f32.mrb[44].mxu1 }
 0xce1   : > { %v5298_v30 = vadd.f32 %v2514_v29, %v5192_v39  ;;  %v4264_v32 = vpop.f32.mrb[45].mxu1  ;;  %v3768_v39 = vld [vmem:[%s4839_s21 + $0x3] ss:$0 sm:$0xff]  ;;  %s5500_s21 = scalar_lea.vmem %s5464_s6, %s4810_s15  ;;  %s5503_s15 = sld [smem:[#allocation3_spill]] }
 0xce2   : > { %v2611_v49 = vadd.f32 %v3768_v39, %v2610_v14  ;;  %v2616_v16 = vadd.f32 %v3768_v39, %v2615_v17 }
 0xce4   : > { %v2519_v33 = vpop.f32.mrb[46].mxu1 }
 0xce5   : > { %v5301_v34 = vadd.f32 %v2519_v33, %v5194_v42  ;;  %v4267_v35 = vpop.f32.mrb[47].mxu1  ;;  %v2606_v42 = vadd.f32 %v3768_v39, %v2605_v13 }
 0xce7   : > { %p3812_p8 = scmp.ne.s32.totalorder %s5503_s15, 1 }
 0xce8   : > { %v2698_v37 = vpop.f32.mrb[48].mxu1 }
 0xce9   : > { %v4295_v38 = vpop.f32.mrb[49].mxu1  ;;  %v2699_v43 = vadd.f32 %v3777_v40, %v2698_v37 }
 0xcec   : > { %v2703_v41 = vpop.f32.mrb[50].mxu1 }
 0xced   : > { %v2704_v44 = vadd.f32 %v3777_v40, %v2703_v41  ;;  %v4298_v36 = vpop.f32.mrb[51].mxu1  ;;  %v4660_v41 = vld [vmem:[#allocation2] sm:$0xff] }
 0xcef   : > { %v4512_v45 = vpack.c.bf16 %v2704_v44, %v2699_v43 }
 0xcf0   : > { %v2708_v46 = vpop.f32.mrb[52].mxu1 }
 0xcf1   : > { %v4301_v47 = vpop.f32.mrb[53].mxu1  ;;  %4514 = vmatpush3.bf16.xpose.msk.msra.mxu1 %vm4963_vm6, %v4512_v45  ;;  %v2709_v48 = vadd.f32 %v3777_v40, %v2708_v46  ;;  %v3804_v40 = vld [vmem:[%s5500_s21] ss:$0 sm:$0xff] }
 0xcf2   : > { %4323 = vmatprep.subr.mxu1 %v4705_v31  ;;  %v4661_v47 = vld [vmem:[#allocation2 + $0x8] sm:$0xff] }
 0xcf9   : > { %4324 = vmatpush3.xpose.msk.msra.mxu1 %vm1011_vm5, %v2709_v48 }
 0xcfa   : > { %4349 = vmatprep.subr.mxu1 %v4705_v31 }
 0xcfc   : > { %4326 = vmatmul.mubr.msk.f32.vlgmr.msra.gmra.mrb[54].mxu1 %vm1011_vm5, %v2606_v42 }
 0xcfd   : > { %4328 = vmatprep.mubr.msk.f32.mxu1 %vm4704_vm4, %v4705_v31  ;;  %4350 = vmatpush3.msra.mxu1 %v3800_v51 }
 0xcfe   : > { %4524 = vmatprep.subr.bf16.mxu1 %v4703_v27 }
 0xd00   : > { %4329 = vmatmul.mubr.msk.f32.gmra.mrb[56].mxu1 %vm1011_vm5, %v2611_v49 }
 0xd01   : > { %4331 = vmatprep.mubr.msk.f32.mxu1 %vm4704_vm4, %v4705_v31 }
 0xd04   : > { %4332 = vmatmul.mubr.msk.f32.gmra.mrb[58].mxu1 %vm1011_vm5, %v2616_v16 }
 0xd05   : > { %4351 = vmatprep.mubr.msk.f32.mxu1 %vm4704_vm4, %v4705_v31 }
 0xdcf   : > { %v2889_v50 = vpop.f32.mrb[54].mxu1 }
 0xdd0   : > { %v2903_v53 = vmul.f32 0.35355338, %v2889_v50  ;;  %v4327_v55 = vpop.f32.mrb[55].mxu1  ;;  %v4662_v50 = vld [vmem:[#allocation2 + $0x10] sm:$0x1] }
 0xdd2   : > { %v2906_v57 = vsel %vm1113_vm8, %v2903_v53, -inf }
 0xdd3   : > { %2907 = vmax.xlane.f32.xlu0 %v2906_v57  ;;  %v2894_v58 = vpop.f32.mrb[56].mxu1 }
 0xdd4   : > { %v2904_v61 = vmul.f32 0.35355338, %v2894_v58  ;;  %v4330_v62 = vpop.f32.mrb[57].mxu1 }
 0xdd6   : > { %v2909_v63 = vsel %vm1113_vm8, %v2904_v61, -inf }
 0xdd7   : > { %2910 = vmax.xlane.f32.xlu1 %v2909_v63  ;;  %v2899_v52 = vpop.f32.mrb[58].mxu1 }
 0xdd8   : > { %v2905_v54 = vmul.f32 0.35355338, %v2899_v52  ;;  %v4333_v56 = vpop.f32.mrb[59].mxu1 }
 0xdda   : > { %v2912_v0 = vsel %vm1120_vm9, %v2905_v54, -inf }
 0xddb   : > { %2913 = vmax.xlane.f32.xlu0 %v2912_v0 }
 0xe60   : > { %v2908_v2 = vpop.xlane.xlu0 %2907 }
 0xe61   : > { %v2915_v4 = vsub.f32 %v2903_v53, %v2908_v2 }
 0xe63   : > { %v2918_v6 = vmul.f32 1.442695, %v2915_v4 }
 0xe64   : > { %v2911_v7 = vpop.xlane.xlu1 %2910 }
 0xe65   : > { %4636 = vpow2.f32 %v2918_v6  ;;  %v2916_v8 = vsub.f32 %v2904_v61, %v2911_v7 }
 0xe67   : > { %v2920_v9 = vmul.f32 1.442695, %v2916_v8 }
 0xe68   : > { %v2914_v10 = vpop.xlane.xlu0 %2913 }
 0xe69   : > { %4638 = vpow2.f32 %v2920_v9  ;;  %v2917_v11 = vsub.f32 %v2905_v54, %v2914_v10  ;;  %v3197_v10 = vld [vmem:[%s4856_s5] sm:$0xff] }
 0xe6b   : > { %v2922_v12 = vmul.f32 1.442695, %v2917_v11  ;;  %v3198_v11 = vld [vmem:[%s4856_s5 + $0x8] sm:$0xff] }
 0xe6d   : > { %4640 = vpow2.f32 %v2922_v12  ;;  %v4519_v12 = vpack.c.bf16 %v3198_v11, %v3197_v10 }
 0xe6f   : > { %v4637_v13 = vpop.eup %4636 }
 0xe70   : > { %v2924_v1 = vsel %vm1113_vm8, %v4637_v13, 0.0 }
 0xe71   : > { %2925 = vadd.xlane.f32.xlu1 %v2924_v1  ;;  %v3200_v1 = vld [vmem:[%s4856_s5 + $0x18] sm:$0xff] }
 0xe73   : > { %v4639_v14 = vpop.eup %4638 }
 0xe74   : > { %v2927_v15 = vsel %vm1113_vm8, %v4639_v14, 0.0 }
 0xe75   : > { %2928 = vadd.xlane.f32.xlu0 %v2927_v15  ;;  %v3324_v15 = vld [vmem:[%s4870_s25] sm:$0xff] }
 0xe77   : > { %v4641_v17 = vpop.eup %4640 }
 0xe78   : > { %v2930_v18 = vsel %vm1120_vm9, %v4641_v17, 0.0 }
 0xe79   : > { %2931 = vadd.xlane.f32.xlu1 %v2930_v18 }
 0xefe   : > { %v2926_v3 = vpop.xlane.xlu1 %2925 }
 0xeff   : > { %4642 = vrcp.f32 %v2926_v3 }
 0xf02   : > { %v2929_v19 = vpop.xlane.xlu0 %2928 }
 0xf03   : > { %4644 = vrcp.f32 %v2929_v19 }
 0xf06   : > { %v2932_v20 = vpop.xlane.xlu1 %2931 }
 0xf07   : > { %4646 = vrcp.f32 %v2932_v20 }
 0xf09   : > { %v4643_v21 = vpop.eup %4642 }
 0xf0a   : > { %v2936_v22 = vmul.f32 %v4643_v21, %v4637_v13  ;;  %v3199_v13 = vld [vmem:[%s4856_s5 + $0x10] sm:$0xff] }
 0xf0c   : > { %4341 = vmatmul.mubr.msk.f32.vlgmr.msra.gmra.mrb[72].mxu0 %vm1113_vm8, %v2936_v22 }
 0xf0d   : > { %v4645_v5 = vpop.eup %4644  ;;  %4343 = vmatprep.mubr.msk.f32.mxu0 %vm4704_vm4, %v4705_v31  ;;  %4520 = vmatpush3.bf16.msra.mxu0 %v4519_v12 }
 0xf0e   : > { %v2937_v23 = vmul.f32 %v4645_v5, %v4639_v14  ;;  %4521 = vmatprep.subr.bf16.mxu0 %v4703_v27  ;;  %v4522_v14 = vpack.c.bf16 %v3200_v1, %v3199_v13 }
 0xf10   : > { %4344 = vmatmul.mubr.msk.f32.gmra.mrb[74].mxu0 %vm1113_vm8, %v2937_v23 }
 0xf11   : > { %v4647_v59 = vpop.eup %4646  ;;  %4346 = vmatprep.mubr.msk.f32.mxu0 %vm4704_vm4, %v4705_v31  ;;  %4523 = vmatpush3.bf16.msra.mxu0 %v4522_v14 }
 0xf12   : > { %v2938_v24 = vmul.f32 %v4647_v59, %v4641_v17  ;;  %v3325_v17 = vld [vmem:[%s4870_s25 + $0x8] sm:$0xff] }
 0xf13   : > { %v4525_v18 = vpack.c.bf16 %v3325_v17, %v3324_v15 }
 0xf14   : > { %4347 = vmatmul.mubr.msk.f32.gmra.mrb[76].mxu0 %vm1113_vm8, %v2938_v24 }
 0xf15   : > { %4368 = vmatprep.mubr.msk.f32.mxu0 %vm4704_vm4, %v4705_v31 }
 0xfdf   : > { %v3017_v25 = vpop.f32.mrb[72].mxu0 }
 0xfe0   : > { %v4342_v60 = vpop.f32.mrb[73].mxu0  ;;  %4352 = vmatmul.mubr.msk.f32.vlgmr.msra.gmra.mrb[60].mxu1 %vm1011_vm5, %v3017_v25  ;;  %v3805_v25 = vld [vmem:[%s5501_s24] ss:$0 sm:$0xff] }
 0xfe1   : > { %4354 = vmatprep.mubr.msk.f32.mxu1 %vm4704_vm4, %v4705_v31  ;;  %4526 = vmatpush3.bf16.msra.mxu1 %v4525_v18 }
 0xfe2   : > { %4527 = vmatprep.subr.bf16.mxu1 %v4703_v27 }
 0xfe3   : > { %v3022_v28 = vpop.f32.mrb[74].mxu0 }
 0xfe4   : > { %v4345_v29 = vpop.f32.mrb[75].mxu0  ;;  %4355 = vmatmul.mubr.msk.f32.gmra.mrb[62].mxu1 %vm1011_vm5, %v3022_v28  ;;  %v3806_v28 = vld [vmem:[%s5502_s29] ss:$0 sm:$0xff] }
 0xfe5   : > { %4357 = vmatprep.mubr.msk.f32.mxu1 %vm4704_vm4, %v4705_v31 }
 0xfe7   : > { %v3027_v32 = vpop.f32.mrb[76].mxu0 }
 0xfe8   : > { %v4348_v33 = vpop.f32.mrb[77].mxu0  ;;  %4358 = vmatmul.mubr.msk.f32.gmra.mrb[64].mxu1 %vm1011_vm5, %v3027_v32 }
 0xfe9   : > { %4409 = vmatprep.mubr.msk.f32.mxu1 %vm4704_vm4, %v4705_v31 }
0x10b3   : > { %v3108_v35 = vpop.f32.mrb[60].mxu1 }
0x10b4   : > { %v3122_v37 = vadd.f32 %v3108_v35, %v5295_v26  ;;  %v4353_v38 = vpop.f32.mrb[61].mxu1 }
0x10b6   : > { %v3125_v43 = vadd.f32 %v4660_v41, %v3122_v37 }
0x10b7   : > { %v3113_v44 = vpop.f32.mrb[62].mxu1 }
0x10b8   : > { %v5351_v36 = vadd.f32 %v3804_v40, %v3125_v43  ;;  %v3123_v45 = vadd.f32 %v3113_v44, %v5298_v30  ;;  %v4356_v46 = vpop.f32.mrb[63].mxu1 }
0x10b9   : > { %v3327_v46 = vld [vmem:[%s4870_s25 + $0x18] sm:$0xff] }
0x10ba   : > { %v3126_v39 = vadd.f32 %v4661_v47, %v3123_v45  ;;  %v3140_v48 = vsel %vm665_vm2, %v5351_v36, 0.0  ;;  %v3326_v45 = vld [vmem:[%s4870_s25 + $0x10] sm:$0xff] }
0x10bb   : > { %3141 = vadd.xlane.f32.xlu0 %v3140_v48  ;;  %v3118_v26 = vpop.f32.mrb[64].mxu1  ;;  %v4528_v47 = vpack.c.bf16 %v3327_v46, %v3326_v45  ;;  %v3329_v48 = vld [vmem:[%s4870_s25 + $0x28] sm:$0xff] }
0x10bc   : > { %v5356_v42 = vadd.f32 %v3804_v40, %v3126_v39  ;;  %v3124_v49 = vadd.f32 %v3118_v26, %v5301_v34  ;;  %v4359_v16 = vpop.f32.mrb[65].mxu1  ;;  %v3328_v39 = vld [vmem:[%s4870_s25 + $0x20] sm:$0xff] }
0x10bd   : > { %4529 = vmatpush3.bf16.msra.mxu1 %v4528_v47  ;;  %v4531_v26 = vpack.c.bf16 %v3329_v48, %v3328_v39  ;;  %v3331_v16 = vld [vmem:[%s4870_s25 + $0x38] sm:$0xff] }
0x10be   : > { %v3127_v53 = vadd.f32 %v4662_v50, %v3124_v49  ;;  %v3143_v55 = vsel %vm665_vm2, %v5356_v42, 0.0  ;;  %4530 = vmatprep.subr.bf16.mxu1 %v4703_v27  ;;  %v3330_v49 = vld [vmem:[%s4870_s25 + $0x30] sm:$0xff] }
0x10bf   : > { %3144 = vadd.xlane.f32.xlu1 %v3143_v55  ;;  %v4534_v50 = vpack.c.bf16 %v3331_v16, %v3330_v49  ;;  %v3333_v55 = vld [vmem:[%s4870_s25 + $0x48] sm:$0xff] }
0x10c0   : > { %v5361_v30 = vadd.f32 %v3804_v40, %v3127_v53  ;;  %v3332_v53 = vld [vmem:[%s4870_s25 + $0x40] sm:$0xff] }
0x10c1   : > { %4532 = vmatpush3.bf16.msra.mxu1 %v4531_v26 }
0x10c2   : > { %v3146_v57 = vsel %vm672_vm3, %v5361_v30, 0.0  ;;  %4533 = vmatprep.subr.bf16.mxu1 %v4703_v27 }
0x10c3   : > { %3147 = vadd.xlane.f32.xlu0 %v3146_v57  ;;  %v4537_v57 = vpack.c.bf16 %v3333_v55, %v3332_v53 }
0x10c5   : > { %4535 = vmatpush3.bf16.msra.mxu1 %v4534_v50 }
0x10c6   : > { %4536 = vmatprep.subr.bf16.mxu1 %v4703_v27 }
0x10c9   : > { %4538 = vmatpush3.bf16.msra.mxu1 %v4537_v57 }
0x10ca   : > { %4539 = vmatprep.subr.bf16.mxu1 %v4703_v27 }
0x1148   : > { %v3142_v58 = vpop.xlane.xlu0 %3141 }
0x1149   : > { %v3149_v61 = vmul.f32 0.03125, %v3142_v58  ;;  %v3334_v58 = vld [vmem:[%s4870_s25 + $0x50] sm:$0xff] }
0x114b   : > { %v3152_v62 = vsub.f32 %v5351_v36, %v3149_v61  ;;  %v3335_v61 = vld [vmem:[%s4870_s25 + $0x58] sm:$0xff] }
0x114c   : > { %v3145_v63 = vpop.xlane.xlu1 %3144 }
0x114d   : > { %v3150_v34 = vmul.f32 0.03125, %v3145_v63  ;;  %v3155_v52 = vmul.f32 %v3152_v62, %v3152_v62  ;;  %v3336_v63 = vld [vmem:[%s4870_s25 + $0x60] sm:$0xff] }
0x114f   : > { %v3153_v54 = vsub.f32 %v5356_v42, %v3150_v34  ;;  %v3158_v56 = vsel %vm665_vm2, %v3155_v52, 0.0  ;;  %v3337_v34 = vld [vmem:[%s4870_s25 + $0x68] sm:$0xff] }
0x1150   : > { %3159 = vadd.xlane.f32.xlu1 %v3158_v56  ;;  %v3148_v0 = vpop.xlane.xlu0 %3147  ;;  %v4543_v52 = vpack.c.bf16 %v3337_v34, %v3336_v63  ;;  %v3339_v56 = vld [vmem:[%s4870_s25 + $0x78] sm:$0xff] }
0x1151   : > { %v3151_v2 = vmul.f32 0.03125, %v3148_v0  ;;  %v3156_v4 = vmul.f32 %v3153_v54, %v3153_v54 }
0x1153   : > { %v3154_v6 = vsub.f32 %v5361_v30, %v3151_v2  ;;  %v3161_v7 = vsel %vm665_vm2, %v3156_v4, 0.0  ;;  %v3807_v2 = vld [vmem:[%s634_s20] ss:$0 sm:$0xff] }
0x1154   : > { %3162 = vadd.xlane.f32.xlu0 %v3161_v7 }
0x1155   : > { %v3157_v8 = vmul.f32 %v3154_v6, %v3154_v6 }
0x1157   : > { %v3164_v9 = vsel %vm672_vm3, %v3157_v8, 0.0 }
0x1158   : > { %3165 = vadd.xlane.f32.xlu1 %v3164_v9 }
0x11dd   : > { %v3160_v51 = vpop.xlane.xlu1 %3159 }
0x11de   : > { %v3167_v3 = vmul.f32 0.03125, %v3160_v51 }
0x11e0   : > { %v3170_v19 = vadd.f32 1e-05, %v3167_v3 }
0x11e1   : > { %v3163_v20 = vpop.xlane.xlu0 %3162 }
0x11e2   : > { %4648 = vrsqrt.f32 %v3170_v19  ;;  %v3168_v21 = vmul.f32 0.03125, %v3163_v20 }
0x11e4   : > { %v3171_v22 = vadd.f32 1e-05, %v3168_v21 }
0x11e5   : > { %v3166_v5 = vpop.xlane.xlu1 %3165 }
0x11e6   : > { %4650 = vrsqrt.f32 %v3171_v22  ;;  %v3169_v23 = vmul.f32 0.03125, %v3166_v5 }
0x11e8   : > { %v3172_v59 = vadd.f32 1e-05, %v3169_v23 }
0x11ea   : > { %4652 = vrsqrt.f32 %v3172_v59 }
0x11ec   : > { %v4649_v24 = vpop.eup %4648 }
0x11ed   : > { %v3176_v60 = vmul.f32 %v4649_v24, %v3152_v62  ;;  %v4540_v62 = vpack.c.bf16 %v3335_v61, %v3334_v58 }
0x11ef   : > { %v3185_v29 = vmul.f32 %v3805_v25, %v3176_v60  ;;  %4541 = vmatpush3.bf16.msra.mxu1 %v4540_v62 }
0x11f0   : > { %v4651_v32 = vpop.eup %4650  ;;  %4542 = vmatprep.subr.bf16.mxu1 %v4703_v27 }
0x11f1   : > { %v3194_v33 = vadd.f32 %v3806_v28, %v3185_v29  ;;  %v3177_v35 = vmul.f32 %v4651_v32, %v3153_v54  ;;  %v3338_v54 = vld [vmem:[%s4870_s25 + $0x70] sm:$0xff] }
0x11f2   : > { %v4546_v0 = vpack.c.bf16 %v3339_v56, %v3338_v54 }
0x11f3   : > { %4369 = vmatmul.mubr.msk.f32.vlgmr.msra.gmra.mrb[78].mxu0 %vm665_vm2, %v3194_v33  ;;  %v3186_v37 = vmul.f32 %v3805_v25, %v3177_v35  ;;  %4544 = vmatpush3.bf16.msra.mxu1 %v4543_v52 }
0x11f4   : > { %v4653_v38 = vpop.eup %4652  ;;  %4371 = vmatprep.mubr.msk.f32.mxu0 %vm4704_vm4, %v4705_v31  ;;  %4545 = vmatprep.subr.bf16.mxu1 %v4703_v27 }
0x11f5   : > { %v3195_v40 = vadd.f32 %v3806_v28, %v3186_v37  ;;  %v3178_v41 = vmul.f32 %v4653_v38, %v3154_v6 }
0x11f7   : > { %4372 = vmatmul.mubr.msk.f32.gmra.mrb[80].mxu0 %vm665_vm2, %v3195_v40  ;;  %v3187_v43 = vmul.f32 %v3805_v25, %v3178_v41  ;;  %4547 = vmatpush3.bf16.msra.mxu1 %v4546_v0 }
0x11f8   : > { %4374 = vmatprep.mubr.msk.f32.mxu0 %vm4704_vm4, %v4705_v31 }
0x11f9   : > { %v3196_v44 = vadd.f32 %v3806_v28, %v3187_v43  ;;  %v3811_v43 = vld [vmem:[%s642_s22] ss:$0 sm:$0xff] }
0x11fb   : > { %4375 = vmatmul.mubr.msk.f32.gmra.mrb[82].mxu0 %vm665_vm2, %v3196_v44 }
0x12c6   : > { %v3283_v4 = vpop.f32.mrb[78].mxu0 }
0x12c7   : > { %v3284_v6 = vadd.f32 %v3807_v2, %v3283_v4  ;;  %v4370_v7 = vpop.f32.mrb[79].mxu0 }
0x12c9   : > { %v3297_v8 = vmul.f32 %v3284_v6, %v3284_v6 }
0x12ca   : > { %v3288_v9 = vpop.f32.mrb[80].mxu0 }
0x12cb   : > { %v3300_v10 = vmul.f32 %v3297_v8, %v3284_v6  ;;  %v3289_v11 = vadd.f32 %v3807_v2, %v3288_v9  ;;  %v4373_v12 = vpop.f32.mrb[81].mxu0 }
0x12cd   : > { %v3303_v13 = vmul.f32 0.044715, %v3300_v10  ;;  %v3298_v1 = vmul.f32 %v3289_v11, %v3289_v11 }
0x12ce   : > { %v3293_v27 = vpop.f32.mrb[82].mxu0 }
0x12cf   : > { %v3306_v14 = vadd.f32 %v3303_v13, %v3284_v6  ;;  %v3301_v15 = vmul.f32 %v3298_v1, %v3289_v11  ;;  %v3294_v17 = vadd.f32 %v3807_v2, %v3293_v27  ;;  %v4376_v18 = vpop.f32.mrb[83].mxu0 }
0x12d1   : > { %v3309_v51 = vmul.f32 0.7978846, %v3306_v14  ;;  %v3304_v3 = vmul.f32 0.044715, %v3301_v15  ;;  %v3299_v19 = vmul.f32 %v3294_v17, %v3294_v17 }
0x12d3   : > { %4654 = vtanh.f32 %v3309_v51  ;;  %v3307_v20 = vadd.f32 %v3304_v3, %v3289_v11  ;;  %v3302_v21 = vmul.f32 %v3299_v19, %v3294_v17 }
0x12d5   : > { %v3310_v22 = vmul.f32 0.7978846, %v3307_v20  ;;  %v3305_v5 = vmul.f32 0.044715, %v3302_v21 }
0x12d7   : > { %v3308_v23 = vadd.f32 %v3305_v5, %v3294_v17  ;;  %4656 = vtanh.f32 %v3310_v22 }
0x12d9   : > { %v3311_v59 = vmul.f32 0.7978846, %v3308_v23 }
0x12db   : > { %4658 = vtanh.f32 %v3311_v59 }
0x12dd   : > { %v4655_v24 = vpop.eup %4654 }
0x12de   : > { %v3315_v25 = vadd.f32 1.0, %v4655_v24 }
0x12e0   : > { %v3318_v60 = vmul.f32 0.5, %v3315_v25 }
0x12e1   : > { %v4657_v28 = vpop.eup %4656 }
0x12e2   : > { %v3321_v29 = vmul.f32 %v3318_v60, %v3284_v6  ;;  %v3316_v32 = vadd.f32 1.0, %v4657_v28 }
0x12e4   : > { %4410 = vmatmul.mubr.f32.vlgmr.msra.gmra.mrb[66].mxu1 %v3321_v29  ;;  %v3319_v33 = vmul.f32 0.5, %v3316_v32 }
0x12e5   : > { %v4659_v35 = vpop.eup %4658  ;;  %4412 = vmatprep.mubr.msk.f32.mxu1 %vm4704_vm4, %v4705_v31 }
0x12e6   : > { %v3322_v37 = vmul.f32 %v3319_v33, %v3289_v11  ;;  %v3317_v38 = vadd.f32 1.0, %v4659_v35 }
0x12e8   : > { %4413 = vmatmul.mubr.f32.gmra.mrb[68].mxu1 %v3322_v37  ;;  %v3320_v40 = vmul.f32 0.5, %v3317_v38 }
0x12e9   : > { %4415 = vmatprep.mubr.msk.f32.mxu1 %vm4704_vm4, %v4705_v31 }
0x12ea   : > { %v3323_v41 = vmul.f32 %v3320_v40, %v3294_v17 }
0x12ec   : > { %4416 = vmatmul.mubr.f32.gmra.mrb[70].mxu1 %v3323_v41 }
0x13b7   : > { %v3413_v44 = vpop.f32.mrb[66].mxu1 }
0x13b8   : > { %v3414_v45 = vadd.f32 %v3811_v43, %v3413_v44  ;;  %v4411_v46 = vpop.f32.mrb[67].mxu1 }
0x13ba   : > { %v3427_v47 = vadd.f32 %v3414_v45, %v5351_v36 }
0x13bb   : > { %v3418_v39 = vpop.f32.mrb[68].mxu1 }
0x13bc   : > { %3430 = vst.msk [vmem:[#allocation2] sm:$0xff] %vm665_vm2, %v3427_v47  ;;  %v3419_v48 = vadd.f32 %v3811_v43, %v3418_v39  ;;  %v4414_v26 = vpop.f32.mrb[69].mxu1  ;;  %3437 = vst.msk [vmem:[%s4875_s13] sm:$0xff] (!%p3812_p8), %vm665_vm2, %v3427_v47 }
0x13be   : > { %v3428_v49 = vadd.f32 %v3419_v48, %v5356_v42  ;;  %3436 = sbr.rel (%p3812_p8) target bundleno = 5061 (0x13c5), region = 80 }
0x13bf   : > { %v3423_v31 = vpop.f32.mrb[70].mxu1 }
0x13c0   : > { %3431 = vst.msk [vmem:[#allocation2 + $0x8] sm:$0xff] %vm665_vm2, %v3428_v49  ;;  %v3424_v16 = vadd.f32 %v3811_v43, %v3423_v31  ;;  %v4417_v50 = vpop.f32.mrb[71].mxu1  ;;  %3438 = vst.msk [vmem:[%s4875_s13 + $0x8] sm:$0xff] (!%p3812_p8), %vm665_vm2, %v3428_v49 }
0x13c2   : > { %v3429_v53 = vadd.f32 %v3424_v16, %v5361_v30 }
0x13c4   : > { %3432 = vst.msk [vmem:[#allocation2 + $0x10] sm:$0x1] %vm672_vm3, %v3429_v53  ;;  %3439 = vst.msk [vmem:[%s4875_s13 + $0x10] sm:$0x1] (!%p3812_p8), %vm672_vm3, %v3429_v53 }
0x13c5 PF: > { %s5504_s22 = sld [smem:[#allocation6_spill]]  ;;  %s5505_s25 = sld [smem:[#allocation4_spill]] }
0x13c6   : > { %s5506_s26 = sld [smem:[#allocation5_spill]]  ;;  %s5507_s27 = sld [smem:[#allocation7_spill]] }
0x13c7   : > { %s5508_s28 = sld [smem:[#allocation8_spill]] }
0x13cb   : > { %s23_s29 = sadd.s32 1, %s5504_s22  }
0x13cc   : > { %p20_p9 = scmp.ge.s32.totalorder %s23_s29, 6  }
0x13ce   :  { %22 = sbr.rel (!%p20_p9) target bundleno = 7 (0x7), region = 171 }

</bundles_post_ra>
